<compile_context>
chip_gen: v7x
topology: tpu7x:2x2x1
jax: 0.10.0
libtpu: 0.0.40
codegen_flags: <defaults>
</compile_context>

<pallas_src>
import jax
import jax.numpy as jnp
import numpy as np
from jax.experimental import pallas as pl
from jax.experimental.pallas import tpu as pltpu


# ----------------------------------------------------------------------------
# Pallas kernel: one agent per grid step, full time recurrence unrolled inside.
# ----------------------------------------------------------------------------
def _make_kernel(n_layers, rnn_dim, h_dim, T, fs, burn_in):
    R = rnn_dim
    f32 = jnp.float32

    def kernel(*refs):
        # refs layout:
        #   [y, cur, nxt,
        #    wdech, bd1, wd2, bd2, wm, bm,
        #    w_y0, b_ih0, w_hh0, b_hh0,
        #    (w_ih_l, w_hh_l, b_ih_l, b_hh_l) for l = 1..n_layers-1,
        #    out_rec, out_pos, out_vel]
        y_ref, cur_ref, nxt_ref = refs[0:3]
        wdech, bd1, wd2, bd2, wm, bm = refs[3:9]
        w_y0, b_ih0, w_hh0, b_hh0 = refs[9:13]
        n_rest = 4 * (n_layers - 1)
        rest = refs[13:13 + n_rest]
        out_rec, out_pos, out_vel = refs[13 + n_rest:13 + n_rest + 3]

        B = y_ref.shape[1]

        # Load weights for this agent once (single-buffered in registers/VMEM).
        wdech_v = wdech[0]          # (R, h_dim + 3R)  -> 128 lanes
        bd1_v = bd1[0]
        wd2_v = wd2[0]
        bd2_v = bd2[0]
        wm_v = wm[0]
        bm_v = bm[0]
        w_y0_v = w_y0[0]            # (y_dim, 3R) with cur_vel rows folded in
        b_ih0_v = b_ih0[0]
        w_hh0_v = w_hh0[0]
        b_hh0_v = b_hh0[0]
        rest_v = [r[0] for r in rest]

        h = [jnp.zeros((B, R), f32) for _ in range(n_layers)]
        rec_acc = jnp.zeros((B, 1), f32)
        pos_acc = jnp.zeros((B, 1), f32)
        vel_acc = jnp.zeros((B, 1), f32)

        for t in range(T):                       # static unroll (T small)
            y_t = y_ref[t]                       # (B, y_dim)
            cur_t = cur_ref[0, t]                # (B, 4) = [cur_pos(2), cur_vel(2)]
            nxt_t = nxt_ref[0, t]                # (B, 4) = [next_pos(2), next_vel(2)]
            h_last = h[-1]

            # Fused h_last matmul: decoder layer-1 pre-act + layer-0 gi(h part).
            fused = jnp.dot(h_last, wdech_v, preferred_element_type=f32)   # (B, 128)
            d1 = jnp.maximum(fused[:, :h_dim] + bd1_v, 0.0)
            gi_h = fused[:, h_dim:]                                        # (B, 3R)

            d2 = jnp.maximum(jnp.dot(d1, wd2_v, preferred_element_type=f32) + bd2_v, 0.0)
            dec_mean = jnp.dot(d2, wm_v, preferred_element_type=f32) + bm_v   # (B, x_dim)

            # --- stacked GRU update (gate order r, z, n; matches nn.GRU) ----
            # layer 0: input = [cur_vel, y_t, h_last]; cur_vel folded into w_y0.
            gi = jnp.dot(y_t, w_y0_v, preferred_element_type=f32) + gi_h + b_ih0_v
            gh = jnp.dot(h[0], w_hh0_v, preferred_element_type=f32) + b_hh0_v
            r = jax.nn.sigmoid(gi[:, 0:R] + gh[:, 0:R])
            z = jax.nn.sigmoid(gi[:, R:2 * R] + gh[:, R:2 * R])
            n = jnp.tanh(gi[:, 2 * R:3 * R] + r * gh[:, 2 * R:3 * R])
            h_new = [(1.0 - z) * n + z * h[0]]
            inp = h_new[0]
            for l in range(1, n_layers):
                w_ih_l, w_hh_l, b_ih_l, b_hh_l = rest_v[4 * (l - 1):4 * l]
                gi = jnp.dot(inp, w_ih_l, preferred_element_type=f32) + b_ih_l
                gh = jnp.dot(h[l], w_hh_l, preferred_element_type=f32) + b_hh_l
                r = jax.nn.sigmoid(gi[:, 0:R] + gh[:, 0:R])
                z = jax.nn.sigmoid(gi[:, R:2 * R] + gh[:, R:2 * R])
                n = jnp.tanh(gi[:, 2 * R:3 * R] + r * gh[:, 2 * R:3 * R])
                hl = (1.0 - z) * n + z * h[l]
                h_new.append(hl)
                inp = hl
            h = h_new

            # --- errors: batch_error = sum_b || pred_b - true_b ||_2 --------
            x_t = nxt_t[:, 2:4]                  # true next velocity
            diff = dec_mean - x_t                # valid because x_dim == 2
            rec_acc = rec_acc + jnp.sqrt(jnp.sum(diff * diff, axis=1, keepdims=True))

            if t >= burn_in or burn_in == T:     # static (hoisted) burn-in gate
                next_pos = cur_t[:, 0:2] + cur_t[:, 2:4] * fs
                dpos = next_pos - nxt_t[:, 0:2]
                pos_acc = pos_acc + jnp.sqrt(jnp.sum(dpos * dpos, axis=1, keepdims=True))
                dvel = dec_mean[:, 0:2] - x_t
                vel_acc = vel_acc + jnp.sqrt(jnp.sum(dvel * dvel, axis=1, keepdims=True))

        # Single lane-dense write per agent (wrapper reads element [0, 0]).
        out_rec[...] = jnp.broadcast_to(jnp.sum(rec_acc, keepdims=True), out_rec.shape)
        out_pos[...] = jnp.broadcast_to(jnp.sum(pos_acc, keepdims=True), out_pos.shape)
        out_vel[...] = jnp.broadcast_to(jnp.sum(vel_acc, keepdims=True), out_vel.shape)

    return kernel


# ----------------------------------------------------------------------------
# Wrapper: per-agent weight folding/stacking + one pallas_call for all agents.
# ----------------------------------------------------------------------------
def _stack_agent_weights(weights, cfg):
    n_agents, n_feat = cfg['n_agents'], cfg['n_feat']
    x_dim, y_dim = cfg['x_dim'], cfg['y_dim']
    n_layers = cfg['n_layers']
    assert x_dim == 2, "module assumes current_vel width (2) == x_dim"

    keys = ['wdech', 'bd1', 'wd2', 'bd2', 'wm', 'bm',
            'w_y0', 'b_ih0', 'w_hh0', 'b_hh0']
    per_agent = {k: [] for k in keys}
    rest = [[] for _ in range(4 * (n_layers - 1))]

    for i in range(n_agents):
        i_net = 0 if i <= 11 else (1 if i <= 22 else 2)
        w = weights[i_net]
        off = n_feat * i
        w_ih0 = w['w_ih'][0]                       # (x_dim + y_dim + R, 3R)
        w_v = w_ih0[:x_dim]                        # cur_vel rows
        w_y = w_ih0[x_dim:x_dim + y_dim]           # y rows
        w_h = w_ih0[x_dim + y_dim:]                # h_last rows
        # Fold cur_vel (= y[:, off+2:off+4]) contribution into the y weight.
        w_y_eff = w_y.at[off + 2:off + 4].add(w_v)

        per_agent['wdech'].append(jnp.concatenate([w['wd1'], w_h], axis=1))  # (R, h_dim+3R)
        per_agent['bd1'].append(w['bd1'])
        per_agent['wd2'].append(w['wd2'])
        per_agent['bd2'].append(w['bd2'])
        per_agent['wm'].append(w['wm'])
        per_agent['bm'].append(w['bm'])
        per_agent['w_y0'].append(w_y_eff)
        per_agent['b_ih0'].append(w['b_ih'][0])
        per_agent['w_hh0'].append(w['w_hh'][0])
        per_agent['b_hh0'].append(w['b_hh'][0])
        for l in range(1, n_layers):
            rest[4 * (l - 1) + 0].append(w['w_ih'][l])
            rest[4 * (l - 1) + 1].append(w['w_hh'][l])
            rest[4 * (l - 1) + 2].append(w['b_ih'][l])
            rest[4 * (l - 1) + 3].append(w['b_hh'][l])

    stacked = [jnp.stack(per_agent[k]) for k in keys]
    stacked += [jnp.stack(r) for r in rest]
    return stacked


def rnn_forward(states, weights, cfg):
    T, n_agents, n_feat = cfg['horizon'], cfg['n_agents'], cfg['n_feat']
    burn_in = cfg['burn_in']
    R, n_layers, h_dim = cfg['rnn_dim'], cfg['n_layers'], cfg['h_dim']

    y = states[:T, 0]                                              # (T, B, y_dim)
    cur = jnp.stack([y[:, :, n_feat * i:n_feat * i + 4]
                     for i in range(n_agents)])                    # (A, T, B, 4)
    nxt = jnp.stack([states[1:T + 1, 0, :, n_feat * i:n_feat * i + 4]
                     for i in range(n_agents)])                    # (A, T, B, 4)

    stacked = _stack_agent_weights(weights, cfg)
    kern = _make_kernel(n_layers, R, h_dim, T, cfg['fs'], burn_in)

    def agent_spec(a):
        nd = a.ndim
        return pl.BlockSpec((1,) + a.shape[1:],
                            lambda i, _nd=nd: (i,) + (0,) * (_nd - 1))

    in_specs = ([pl.BlockSpec(y.shape, lambda i: (0, 0, 0)),       # shared y
                 agent_spec(cur), agent_spec(nxt)]
                + [agent_spec(a) for a in stacked])
    out_specs = [pl.BlockSpec((1, 8, 128), lambda i: (i, 0, 0))] * 3
    out_shape = [jax.ShapeDtypeStruct((n_agents, 8, 128), jnp.float32)] * 3

    rec, pos, vel = pl.pallas_call(
        kern,
        out_shape=out_shape,
        grid_spec=pltpu.PrefetchScalarGridSpec(
            num_scalar_prefetch=0,
            grid=(n_agents,),
            in_specs=in_specs,
            out_specs=out_specs,
        ),
        compiler_params=pltpu.CompilerParams(
            dimension_semantics=("parallel",)),  # agents across cores on v7x
    )(y, cur, nxt, *stacked)

    L_rec = jnp.sum(rec[:, 0, 0])
    e_pos = jnp.sum(pos[:, 0, 0])
    e_vel = jnp.sum(vel[:, 0, 0])

    out = {'L_rec': L_rec / (T * n_agents)}
    out2 = {'e_pos': e_pos / ((T - burn_in) * n_agents),
            'e_vel': e_vel / ((T - burn_in) * n_agents)}
    return out, out2


# ----------------------------------------------------------------------------
# Pure-JAX reference (for correctness check only).
# ----------------------------------------------------------------------------
def reference_forward(states, weights, cfg):
    T, n_agents, n_feat = cfg['horizon'], cfg['n_agents'], cfg['n_feat']
    fs, burn_in = cfg['fs'], cfg['burn_in']
    R, n_layers = cfg['rnn_dim'], cfg['n_layers']
    B = states.shape[2]

    def berr(a, b):
        return jnp.sum(jnp.sqrt(jnp.sum((a - b) ** 2, axis=1)))

    L_rec = e_pos = e_vel = jnp.float32(0.0)
    for i in range(n_agents):
        i_net = 0 if i <= 11 else (1 if i <= 22 else 2)
        w = weights[i_net]
        h = jnp.zeros((n_layers, B, R), jnp.float32)
        for t in range(T):
            y_t = states[t, 0]
            x_t0 = states[t + 1, 0, :, n_feat * i:n_feat * i + n_feat]
            x_t = x_t0[:, 2:4]
            cur_pos = y_t[:, n_feat * i:n_feat * i + 2]
            cur_vel = y_t[:, n_feat * i + 2:n_feat * i + 4]
            enc_in = jnp.concatenate([cur_vel, y_t, h[-1]], axis=1)
            d1 = jax.nn.relu(h[-1] @ w['wd1'] + w['bd1'])
            d2 = jax.nn.relu(d1 @ w['wd2'] + w['bd2'])
            dec_mean = d2 @ w['wm'] + w['bm']
            inp = enc_in
            new_h = []
            for l in range(n_layers):
                gi = inp @ w['w_ih'][l] + w['b_ih'][l]
                gh = h[l] @ w['w_hh'][l] + w['b_hh'][l]
                r = jax.nn.sigmoid(gi[:, :R] + gh[:, :R])
                z = jax.nn.sigmoid(gi[:, R:2 * R] + gh[:, R:2 * R])
                n = jnp.tanh(gi[:, 2 * R:] + r * gh[:, 2 * R:])
                hl = (1.0 - z) * n + z * h[l]
                new_h.append(hl)
                inp = hl
            h = jnp.stack(new_h, axis=0)
            L_rec = L_rec + berr(dec_mean, x_t)
            if t >= burn_in or burn_in == T:
                e_pos = e_pos + berr(cur_pos + cur_vel * fs, x_t0[:, :2])
                e_vel = e_vel + berr(dec_mean[:, :2], x_t)
    return (L_rec / (T * n_agents),
            e_pos / ((T - burn_in) * n_agents),
            e_vel / ((T - burn_in) * n_agents))


# ----------------------------------------------------------------------------
# Deterministic parameter init (shapes follow the module's __init__).
# ----------------------------------------------------------------------------
def init_weights(key, cfg):
    x_dim, y_dim, h_dim = cfg['x_dim'], cfg['y_dim'], cfg['h_dim']
    R, n_layers = cfg['rnn_dim'], cfg['n_layers']
    in_enc = x_dim + y_dim + R
    n_agents = cfg['n_agents']
    n_network = 1 if n_agents <= 11 else (2 if n_agents <= 22 else 3)

    nets = []
    for _ in range(n_network):
        def nxt(shape):
            nonlocal key
            key, sub = jax.random.split(key)
            return (0.1 * jax.random.normal(sub, shape)).astype(jnp.float32)

        w = {
            'wd1': nxt((R, h_dim)),     'bd1': nxt((1, h_dim)),
            'wd2': nxt((h_dim, h_dim)), 'bd2': nxt((1, h_dim)),
            'wm':  nxt((h_dim, x_dim)), 'bm':  nxt((1, x_dim)),
            'w_ih': [], 'w_hh': [], 'b_ih': [], 'b_hh': [],
        }
        for l in range(n_layers):
            in_l = in_enc if l == 0 else R
            w['w_ih'].append(nxt((in_l, 3 * R)))   # transposed (in, 3R), gate order r,z,n
            w['w_hh'].append(nxt((R, 3 * R)))
            w['b_ih'].append(nxt((1, 3 * R)))
            w['b_hh'].append(nxt((1, 3 * R)))
        nets.append(w)
    return nets


if __name__ == "__main__":
    cfg = dict(
        x_dim=2, y_dim=16, z_dim=8, h_dim=32, rnn_dim=32, n_layers=2,
        n_agents=3, n_all_agents=3, n_feat=4, ball_dim=4,
        len_seq=8, embed_size=8, embed_ball_size=8,
        fs=0.1, burn_in=2, horizon=6, cuda=False,
    )
    B = 4

    key = jax.random.PRNGKey(0)
    key, k_states = jax.random.split(key)
    # states: (horizon + 1, 1, batch, y_dim)
    states = jax.random.normal(
        k_states, (cfg['horizon'] + 1, 1, B, cfg['y_dim']), dtype=jnp.float32)
    weights = init_weights(key, cfg)

    out, out2 = rnn_forward(states, weights, cfg)
    L_rec = jax.block_until_ready(out['L_rec'])
    e_pos = jax.block_until_ready(out2['e_pos'])
    e_vel = jax.block_until_ready(out2['e_vel'])

    r_rec, r_pos, r_vel = reference_forward(states, weights, cfg)
    assert np.allclose(np.asarray(L_rec), np.asarray(r_rec), rtol=1e-2, atol=1e-2)
    assert np.allclose(np.asarray(e_pos), np.asarray(r_pos), rtol=1e-2, atol=1e-2)
    assert np.allclose(np.asarray(e_vel), np.asarray(r_vel), rtol=1e-2, atol=1e-2)

    print("KERNEL_OK")
</pallas_src>

<mosaic_0001>
module attributes {stable_mosaic.version = 11 : i64} {
  func.func @kernel(%arg0: i32, %arg1: memref<6x4x16xf32, #tpu.memory_space<vmem>>, %arg2: memref<1x6x4x4xf32, #tpu.memory_space<vmem>>, %arg3: memref<1x6x4x4xf32, #tpu.memory_space<vmem>>, %arg4: memref<1x32x128xf32, #tpu.memory_space<vmem>>, %arg5: memref<1x1x32xf32, #tpu.memory_space<vmem>>, %arg6: memref<1x32x32xf32, #tpu.memory_space<vmem>>, %arg7: memref<1x1x32xf32, #tpu.memory_space<vmem>>, %arg8: memref<1x32x2xf32, #tpu.memory_space<vmem>>, %arg9: memref<1x1x2xf32, #tpu.memory_space<vmem>>, %arg10: memref<1x16x96xf32, #tpu.memory_space<vmem>>, %arg11: memref<1x1x96xf32, #tpu.memory_space<vmem>>, %arg12: memref<1x32x96xf32, #tpu.memory_space<vmem>>, %arg13: memref<1x1x96xf32, #tpu.memory_space<vmem>>, %arg14: memref<1x32x96xf32, #tpu.memory_space<vmem>>, %arg15: memref<1x32x96xf32, #tpu.memory_space<vmem>>, %arg16: memref<1x1x96xf32, #tpu.memory_space<vmem>>, %arg17: memref<1x1x96xf32, #tpu.memory_space<vmem>>, %arg18: memref<1x8x128xf32, #tpu.memory_space<vmem>>, %arg19: memref<1x8x128xf32, #tpu.memory_space<vmem>>, %arg20: memref<1x8x128xf32, #tpu.memory_space<vmem>>) attributes {dimension_semantics = [#tpu.dimension_semantics<parallel>], iteration_bounds = array<i64: 3>, scalar_prefetch = 0 : i64, scratch_operands = 0 : i64, tpu.core_type = #tpu.core_type<tc>, window_params = [{pipeline_mode = #tpu.pipeline_mode<synchronous>, transform_indices = @transform_0, window_bounds = array<i64: 6, 4, 16>}, {transform_indices = @transform_1, window_bounds = array<i64: 1, 6, 4, 4>}, {transform_indices = @transform_2, window_bounds = array<i64: 1, 6, 4, 4>}, {transform_indices = @transform_3, window_bounds = array<i64: 1, 32, 128>}, {transform_indices = @transform_4, window_bounds = array<i64: 1, 1, 32>}, {transform_indices = @transform_5, window_bounds = array<i64: 1, 32, 32>}, {transform_indices = @transform_6, window_bounds = array<i64: 1, 1, 32>}, {transform_indices = @transform_7, window_bounds = array<i64: 1, 32, 2>}, {transform_indices = @transform_8, window_bounds = array<i64: 1, 1, 2>}, {transform_indices = @transform_9, window_bounds = array<i64: 1, 16, 96>}, {transform_indices = @transform_10, window_bounds = array<i64: 1, 1, 96>}, {transform_indices = @transform_11, window_bounds = array<i64: 1, 32, 96>}, {transform_indices = @transform_12, window_bounds = array<i64: 1, 1, 96>}, {transform_indices = @transform_13, window_bounds = array<i64: 1, 32, 96>}, {transform_indices = @transform_14, window_bounds = array<i64: 1, 32, 96>}, {transform_indices = @transform_15, window_bounds = array<i64: 1, 1, 96>}, {transform_indices = @transform_16, window_bounds = array<i64: 1, 1, 96>}, {transform_indices = @transform_17, window_bounds = array<i64: 1, 8, 128>}, {transform_indices = @transform_18, window_bounds = array<i64: 1, 8, 128>}, {transform_indices = @transform_19, window_bounds = array<i64: 1, 8, 128>}]} {
    %c0 = arith.constant 0 : index
    %c0_0 = arith.constant 0 : index
    %c0_1 = arith.constant 0 : index
    %0 = vector.load %arg4[%c0, %c0_0, %c0_1] : memref<1x32x128xf32, #tpu.memory_space<vmem>>, vector<1x32x128xf32>
    %1 = vector.shape_cast %0 : vector<1x32x128xf32> to vector<32x128xf32>
    %c0_2 = arith.constant 0 : index
    %c0_3 = arith.constant 0 : index
    %c0_4 = arith.constant 0 : index
    %2 = vector.load %arg5[%c0_2, %c0_3, %c0_4] : memref<1x1x32xf32, #tpu.memory_space<vmem>>, vector<1x1x32xf32>
    %3 = vector.shape_cast %2 : vector<1x1x32xf32> to vector<1x32xf32>
    %c0_5 = arith.constant 0 : index
    %c0_6 = arith.constant 0 : index
    %c0_7 = arith.constant 0 : index
    %4 = vector.load %arg6[%c0_5, %c0_6, %c0_7] : memref<1x32x32xf32, #tpu.memory_space<vmem>>, vector<1x32x32xf32>
    %5 = vector.shape_cast %4 : vector<1x32x32xf32> to vector<32x32xf32>
    %c0_8 = arith.constant 0 : index
    %c0_9 = arith.constant 0 : index
    %c0_10 = arith.constant 0 : index
    %6 = vector.load %arg7[%c0_8, %c0_9, %c0_10] : memref<1x1x32xf32, #tpu.memory_space<vmem>>, vector<1x1x32xf32>
    %7 = vector.shape_cast %6 : vector<1x1x32xf32> to vector<1x32xf32>
    %c0_11 = arith.constant 0 : index
    %c0_12 = arith.constant 0 : index
    %c0_13 = arith.constant 0 : index
    %8 = vector.load %arg8[%c0_11, %c0_12, %c0_13] : memref<1x32x2xf32, #tpu.memory_space<vmem>>, vector<1x32x2xf32>
    %9 = vector.shape_cast %8 : vector<1x32x2xf32> to vector<32x2xf32>
    %c0_14 = arith.constant 0 : index
    %c0_15 = arith.constant 0 : index
    %c0_16 = arith.constant 0 : index
    %10 = vector.load %arg9[%c0_14, %c0_15, %c0_16] : memref<1x1x2xf32, #tpu.memory_space<vmem>>, vector<1x1x2xf32>
    %11 = vector.shape_cast %10 : vector<1x1x2xf32> to vector<1x2xf32>
    %c0_17 = arith.constant 0 : index
    %c0_18 = arith.constant 0 : index
    %c0_19 = arith.constant 0 : index
    %12 = vector.load %arg10[%c0_17, %c0_18, %c0_19] : memref<1x16x96xf32, #tpu.memory_space<vmem>>, vector<1x16x96xf32>
    %13 = vector.shape_cast %12 : vector<1x16x96xf32> to vector<16x96xf32>
    %c0_20 = arith.constant 0 : index
    %c0_21 = arith.constant 0 : index
    %c0_22 = arith.constant 0 : index
    %14 = vector.load %arg11[%c0_20, %c0_21, %c0_22] : memref<1x1x96xf32, #tpu.memory_space<vmem>>, vector<1x1x96xf32>
    %15 = vector.shape_cast %14 : vector<1x1x96xf32> to vector<1x96xf32>
    %c0_23 = arith.constant 0 : index
    %c0_24 = arith.constant 0 : index
    %c0_25 = arith.constant 0 : index
    %16 = vector.load %arg12[%c0_23, %c0_24, %c0_25] : memref<1x32x96xf32, #tpu.memory_space<vmem>>, vector<1x32x96xf32>
    %17 = vector.shape_cast %16 : vector<1x32x96xf32> to vector<32x96xf32>
    %c0_26 = arith.constant 0 : index
    %c0_27 = arith.constant 0 : index
    %c0_28 = arith.constant 0 : index
    %18 = vector.load %arg13[%c0_26, %c0_27, %c0_28] : memref<1x1x96xf32, #tpu.memory_space<vmem>>, vector<1x1x96xf32>
    %19 = vector.shape_cast %18 : vector<1x1x96xf32> to vector<1x96xf32>
    %c0_29 = arith.constant 0 : index
    %c0_30 = arith.constant 0 : index
    %c0_31 = arith.constant 0 : index
    %20 = vector.load %arg14[%c0_29, %c0_30, %c0_31] : memref<1x32x96xf32, #tpu.memory_space<vmem>>, vector<1x32x96xf32>
    %21 = vector.shape_cast %20 : vector<1x32x96xf32> to vector<32x96xf32>
    %c0_32 = arith.constant 0 : index
    %c0_33 = arith.constant 0 : index
    %c0_34 = arith.constant 0 : index
    %22 = vector.load %arg15[%c0_32, %c0_33, %c0_34] : memref<1x32x96xf32, #tpu.memory_space<vmem>>, vector<1x32x96xf32>
    %23 = vector.shape_cast %22 : vector<1x32x96xf32> to vector<32x96xf32>
    %c0_35 = arith.constant 0 : index
    %c0_36 = arith.constant 0 : index
    %c0_37 = arith.constant 0 : index
    %24 = vector.load %arg16[%c0_35, %c0_36, %c0_37] : memref<1x1x96xf32, #tpu.memory_space<vmem>>, vector<1x1x96xf32>
    %25 = vector.shape_cast %24 : vector<1x1x96xf32> to vector<1x96xf32>
    %c0_38 = arith.constant 0 : index
    %c0_39 = arith.constant 0 : index
    %c0_40 = arith.constant 0 : index
    %26 = vector.load %arg17[%c0_38, %c0_39, %c0_40] : memref<1x1x96xf32, #tpu.memory_space<vmem>>, vector<1x1x96xf32>
    %27 = vector.shape_cast %26 : vector<1x1x96xf32> to vector<1x96xf32>
    %cst = arith.constant 0.000000e+00 : f32
    %28 = vector.broadcast %cst : f32 to vector<4x32xf32>
    %cst_41 = arith.constant 0.000000e+00 : f32
    %29 = vector.broadcast %cst_41 : f32 to vector<4x32xf32>
    %cst_42 = arith.constant 0.000000e+00 : f32
    %30 = vector.broadcast %cst_42 : f32 to vector<4x1xf32>
    %cst_43 = arith.constant 0.000000e+00 : f32
    %31 = vector.broadcast %cst_43 : f32 to vector<4x1xf32>
    %cst_44 = arith.constant 0.000000e+00 : f32
    %32 = vector.broadcast %cst_44 : f32 to vector<4x1xf32>
    %c0_45 = arith.constant 0 : index
    %c0_46 = arith.constant 0 : index
    %c0_47 = arith.constant 0 : index
    %33 = vector.load %arg1[%c0_45, %c0_46, %c0_47] : memref<6x4x16xf32, #tpu.memory_space<vmem>>, vector<1x4x16xf32>
    %34 = vector.shape_cast %33 : vector<1x4x16xf32> to vector<4x16xf32>
    %c0_48 = arith.constant 0 : index
    %c0_49 = arith.constant 0 : index
    %c0_50 = arith.constant 0 : index
    %c0_51 = arith.constant 0 : index
    %35 = vector.load %arg3[%c0_48, %c0_49, %c0_50, %c0_51] : memref<1x6x4x4xf32, #tpu.memory_space<vmem>>, vector<1x1x4x4xf32>
    %36 = vector.shape_cast %35 : vector<1x1x4x4xf32> to vector<4x4xf32>
    %cst_52 = arith.constant dense<0.000000e+00> : vector<4x128xf32>
    %37 = tpu.matmul %29, %1, %cst_52 {dimension_numbers = #tpu.dot_dimension_numbers<[1], [0], [0], [1], [0, 0, 1, 1], [], []>} : vector<4x32xf32>, vector<32x128xf32>, vector<4x128xf32> -> vector<4x128xf32>
    %38 = vector.extract_strided_slice %37 {offsets = [0, 0], sizes = [4, 32], strides = [1, 1]} : vector<4x128xf32> to vector<4x32xf32>
    %39 = vector.broadcast %3 : vector<1x32xf32> to vector<4x32xf32>
    %40 = arith.addf %38, %39 : vector<4x32xf32>
    %cst_53 = arith.constant 0.000000e+00 : f32
    %41 = vector.broadcast %cst_53 : f32 to vector<4x32xf32>
    %42 = arith.maximumf %40, %41 : vector<4x32xf32>
    %43 = vector.extract_strided_slice %37 {offsets = [0, 32], sizes = [4, 96], strides = [1, 1]} : vector<4x128xf32> to vector<4x96xf32>
    %cst_54 = arith.constant dense<0.000000e+00> : vector<4x32xf32>
    %44 = tpu.matmul %42, %5, %cst_54 {dimension_numbers = #tpu.dot_dimension_numbers<[1], [0], [0], [1], [0, 0, 1, 1], [], []>} : vector<4x32xf32>, vector<32x32xf32>, vector<4x32xf32> -> vector<4x32xf32>
    %45 = vector.broadcast %7 : vector<1x32xf32> to vector<4x32xf32>
    %46 = arith.addf %44, %45 : vector<4x32xf32>
    %cst_55 = arith.constant 0.000000e+00 : f32
    %47 = vector.broadcast %cst_55 : f32 to vector<4x32xf32>
    %48 = arith.maximumf %46, %47 : vector<4x32xf32>
    %cst_56 = arith.constant dense<0.000000e+00> : vector<4x2xf32>
    %49 = tpu.matmul %48, %9, %cst_56 {dimension_numbers = #tpu.dot_dimension_numbers<[1], [0], [0], [1], [0, 0, 1, 1], [], []>} : vector<4x32xf32>, vector<32x2xf32>, vector<4x2xf32> -> vector<4x2xf32>
    %50 = vector.broadcast %11 : vector<1x2xf32> to vector<4x2xf32>
    %51 = arith.addf %49, %50 : vector<4x2xf32>
    %cst_57 = arith.constant dense<0.000000e+00> : vector<4x96xf32>
    %52 = tpu.matmul %34, %13, %cst_57 {dimension_numbers = #tpu.dot_dimension_numbers<[1], [0], [0], [1], [0, 0, 1, 1], [], []>} : vector<4x16xf32>, vector<16x96xf32>, vector<4x96xf32> -> vector<4x96xf32>
    %53 = arith.addf %52, %43 : vector<4x96xf32>
    %54 = vector.broadcast %15 : vector<1x96xf32> to vector<4x96xf32>
    %55 = arith.addf %53, %54 : vector<4x96xf32>
    %cst_58 = arith.constant dense<0.000000e+00> : vector<4x96xf32>
    %56 = tpu.matmul %28, %17, %cst_58 {dimension_numbers = #tpu.dot_dimension_numbers<[1], [0], [0], [1], [0, 0, 1, 1], [], []>} : vector<4x32xf32>, vector<32x96xf32>, vector<4x96xf32> -> vector<4x96xf32>
    %57 = vector.broadcast %19 : vector<1x96xf32> to vector<4x96xf32>
    %58 = arith.addf %56, %57 : vector<4x96xf32>
    %59 = vector.extract_strided_slice %55 {offsets = [0, 0], sizes = [4, 32], strides = [1, 1]} : vector<4x96xf32> to vector<4x32xf32>
    %60 = vector.extract_strided_slice %58 {offsets = [0, 0], sizes = [4, 32], strides = [1, 1]} : vector<4x96xf32> to vector<4x32xf32>
    %61 = arith.addf %59, %60 : vector<4x32xf32>
    %62 = arith.negf %61 : vector<4x32xf32>
    %63 = math.exp %62 : vector<4x32xf32>
    %cst_59 = arith.constant 1.000000e+00 : f32
    %64 = vector.broadcast %cst_59 : f32 to vector<4x32xf32>
    %65 = arith.addf %64, %63 : vector<4x32xf32>
    %66 = arith.divf %64, %65 : vector<4x32xf32>
    %67 = vector.extract_strided_slice %55 {offsets = [0, 32], sizes = [4, 32], strides = [1, 1]} : vector<4x96xf32> to vector<4x32xf32>
    %68 = vector.extract_strided_slice %58 {offsets = [0, 32], sizes = [4, 32], strides = [1, 1]} : vector<4x96xf32> to vector<4x32xf32>
    %69 = arith.addf %67, %68 : vector<4x32xf32>
    %70 = arith.negf %69 : vector<4x32xf32>
    %71 = math.exp %70 : vector<4x32xf32>
    %cst_60 = arith.constant 1.000000e+00 : f32
    %72 = vector.broadcast %cst_60 : f32 to vector<4x32xf32>
    %73 = arith.addf %72, %71 : vector<4x32xf32>
    %74 = arith.divf %72, %73 : vector<4x32xf32>
    %75 = vector.extract_strided_slice %55 {offsets = [0, 64], sizes = [4, 32], strides = [1, 1]} : vector<4x96xf32> to vector<4x32xf32>
    %76 = vector.extract_strided_slice %58 {offsets = [0, 64], sizes = [4, 32], strides = [1, 1]} : vector<4x96xf32> to vector<4x32xf32>
    %77 = arith.mulf %66, %76 : vector<4x32xf32>
    %78 = arith.addf %75, %77 : vector<4x32xf32>
    %79 = math.tanh %78 : vector<4x32xf32>
    %cst_61 = arith.constant 1.000000e+00 : f32
    %80 = vector.broadcast %cst_61 : f32 to vector<4x32xf32>
    %81 = arith.subf %80, %74 : vector<4x32xf32>
    %82 = arith.mulf %81, %79 : vector<4x32xf32>
    %83 = arith.mulf %74, %28 : vector<4x32xf32>
    %84 = arith.addf %82, %83 : vector<4x32xf32>
    %cst_62 = arith.constant dense<0.000000e+00> : vector<4x96xf32>
    %85 = tpu.matmul %84, %21, %cst_62 {dimension_numbers = #tpu.dot_dimension_numbers<[1], [0], [0], [1], [0, 0, 1, 1], [], []>} : vector<4x32xf32>, vector<32x96xf32>, vector<4x96xf32> -> vector<4x96xf32>
    %86 = vector.broadcast %25 : vector<1x96xf32> to vector<4x96xf32>
    %87 = arith.addf %85, %86 : vector<4x96xf32>
    %cst_63 = arith.constant dense<0.000000e+00> : vector<4x96xf32>
    %88 = tpu.matmul %29, %23, %cst_63 {dimension_numbers = #tpu.dot_dimension_numbers<[1], [0], [0], [1], [0, 0, 1, 1], [], []>} : vector<4x32xf32>, vector<32x96xf32>, vector<4x96xf32> -> vector<4x96xf32>
    %89 = vector.broadcast %27 : vector<1x96xf32> to vector<4x96xf32>
    %90 = arith.addf %88, %89 : vector<4x96xf32>
    %91 = vector.extract_strided_slice %87 {offsets = [0, 0], sizes = [4, 32], strides = [1, 1]} : vector<4x96xf32> to vector<4x32xf32>
    %92 = vector.extract_strided_slice %90 {offsets = [0, 0], sizes = [4, 32], strides = [1, 1]} : vector<4x96xf32> to vector<4x32xf32>
    %93 = arith.addf %91, %92 : vector<4x32xf32>
    %94 = arith.negf %93 : vector<4x32xf32>
    %95 = math.exp %94 : vector<4x32xf32>
    %cst_64 = arith.constant 1.000000e+00 : f32
    %96 = vector.broadcast %cst_64 : f32 to vector<4x32xf32>
    %97 = arith.addf %96, %95 : vector<4x32xf32>
    %98 = arith.divf %96, %97 : vector<4x32xf32>
    %99 = vector.extract_strided_slice %87 {offsets = [0, 32], sizes = [4, 32], strides = [1, 1]} : vector<4x96xf32> to vector<4x32xf32>
    %100 = vector.extract_strided_slice %90 {offsets = [0, 32], sizes = [4, 32], strides = [1, 1]} : vector<4x96xf32> to vector<4x32xf32>
    %101 = arith.addf %99, %100 : vector<4x32xf32>
    %102 = arith.negf %101 : vector<4x32xf32>
    %103 = math.exp %102 : vector<4x32xf32>
    %cst_65 = arith.constant 1.000000e+00 : f32
    %104 = vector.broadcast %cst_65 : f32 to vector<4x32xf32>
    %105 = arith.addf %104, %103 : vector<4x32xf32>
    %106 = arith.divf %104, %105 : vector<4x32xf32>
    %107 = vector.extract_strided_slice %87 {offsets = [0, 64], sizes = [4, 32], strides = [1, 1]} : vector<4x96xf32> to vector<4x32xf32>
    %108 = vector.extract_strided_slice %90 {offsets = [0, 64], sizes = [4, 32], strides = [1, 1]} : vector<4x96xf32> to vector<4x32xf32>
    %109 = arith.mulf %98, %108 : vector<4x32xf32>
    %110 = arith.addf %107, %109 : vector<4x32xf32>
    %111 = math.tanh %110 : vector<4x32xf32>
    %cst_66 = arith.constant 1.000000e+00 : f32
    %112 = vector.broadcast %cst_66 : f32 to vector<4x32xf32>
    %113 = arith.subf %112, %106 : vector<4x32xf32>
    %114 = arith.mulf %113, %111 : vector<4x32xf32>
    %115 = arith.mulf %106, %29 : vector<4x32xf32>
    %116 = arith.addf %114, %115 : vector<4x32xf32>
    %117 = vector.extract_strided_slice %36 {offsets = [0, 2], sizes = [4, 2], strides = [1, 1]} : vector<4x4xf32> to vector<4x2xf32>
    %118 = arith.subf %51, %117 : vector<4x2xf32>
    %119 = arith.mulf %118, %118 : vector<4x2xf32>
    %cst_67 = arith.constant dense<0.000000e+00> : vector<4xf32>
    %120 = vector.multi_reduction <add>, %119, %cst_67 [1] : vector<4x2xf32> to vector<4xf32>
    %121 = vector.shape_cast %120 : vector<4xf32> to vector<4x1xf32>
    %122 = math.sqrt %121 : vector<4x1xf32>
    %123 = arith.addf %30, %122 : vector<4x1xf32>
    %c1 = arith.constant 1 : index
    %c0_68 = arith.constant 0 : index
    %c0_69 = arith.constant 0 : index
    %124 = vector.load %arg1[%c1, %c0_68, %c0_69] : memref<6x4x16xf32, #tpu.memory_space<vmem>>, vector<1x4x16xf32>
    %125 = vector.shape_cast %124 : vector<1x4x16xf32> to vector<4x16xf32>
    %c0_70 = arith.constant 0 : index
    %c1_71 = arith.constant 1 : index
    %c0_72 = arith.constant 0 : index
    %c0_73 = arith.constant 0 : index
    %126 = vector.load %arg3[%c0_70, %c1_71, %c0_72, %c0_73] : memref<1x6x4x4xf32, #tpu.memory_space<vmem>>, vector<1x1x4x4xf32>
    %127 = vector.shape_cast %126 : vector<1x1x4x4xf32> to vector<4x4xf32>
    %cst_74 = arith.constant dense<0.000000e+00> : vector<4x128xf32>
    %128 = tpu.matmul %116, %1, %cst_74 {dimension_numbers = #tpu.dot_dimension_numbers<[1], [0], [0], [1], [0, 0, 1, 1], [], []>} : vector<4x32xf32>, vector<32x128xf32>, vector<4x128xf32> -> vector<4x128xf32>
    %129 = vector.extract_strided_slice %128 {offsets = [0, 0], sizes = [4, 32], strides = [1, 1]} : vector<4x128xf32> to vector<4x32xf32>
    %130 = vector.broadcast %3 : vector<1x32xf32> to vector<4x32xf32>
    %131 = arith.addf %129, %130 : vector<4x32xf32>
    %cst_75 = arith.constant 0.000000e+00 : f32
    %132 = vector.broadcast %cst_75 : f32 to vector<4x32xf32>
    %133 = arith.maximumf %131, %132 : vector<4x32xf32>
    %134 = vector.extract_strided_slice %128 {offsets = [0, 32], sizes = [4, 96], strides = [1, 1]} : vector<4x128xf32> to vector<4x96xf32>
    %cst_76 = arith.constant dense<0.000000e+00> : vector<4x32xf32>
    %135 = tpu.matmul %133, %5, %cst_76 {dimension_numbers = #tpu.dot_dimension_numbers<[1], [0], [0], [1], [0, 0, 1, 1], [], []>} : vector<4x32xf32>, vector<32x32xf32>, vector<4x32xf32> -> vector<4x32xf32>
    %136 = vector.broadcast %7 : vector<1x32xf32> to vector<4x32xf32>
    %137 = arith.addf %135, %136 : vector<4x32xf32>
    %cst_77 = arith.constant 0.000000e+00 : f32
    %138 = vector.broadcast %cst_77 : f32 to vector<4x32xf32>
    %139 = arith.maximumf %137, %138 : vector<4x32xf32>
    %cst_78 = arith.constant dense<0.000000e+00> : vector<4x2xf32>
    %140 = tpu.matmul %139, %9, %cst_78 {dimension_numbers = #tpu.dot_dimension_numbers<[1], [0], [0], [1], [0, 0, 1, 1], [], []>} : vector<4x32xf32>, vector<32x2xf32>, vector<4x2xf32> -> vector<4x2xf32>
    %141 = vector.broadcast %11 : vector<1x2xf32> to vector<4x2xf32>
    %142 = arith.addf %140, %141 : vector<4x2xf32>
    %cst_79 = arith.constant dense<0.000000e+00> : vector<4x96xf32>
    %143 = tpu.matmul %125, %13, %cst_79 {dimension_numbers = #tpu.dot_dimension_numbers<[1], [0], [0], [1], [0, 0, 1, 1], [], []>} : vector<4x16xf32>, vector<16x96xf32>, vector<4x96xf32> -> vector<4x96xf32>
    %144 = arith.addf %143, %134 : vector<4x96xf32>
    %145 = vector.broadcast %15 : vector<1x96xf32> to vector<4x96xf32>
    %146 = arith.addf %144, %145 : vector<4x96xf32>
    %cst_80 = arith.constant dense<0.000000e+00> : vector<4x96xf32>
    %147 = tpu.matmul %84, %17, %cst_80 {dimension_numbers = #tpu.dot_dimension_numbers<[1], [0], [0], [1], [0, 0, 1, 1], [], []>} : vector<4x32xf32>, vector<32x96xf32>, vector<4x96xf32> -> vector<4x96xf32>
    %148 = vector.broadcast %19 : vector<1x96xf32> to vector<4x96xf32>
    %149 = arith.addf %147, %148 : vector<4x96xf32>
    %150 = vector.extract_strided_slice %146 {offsets = [0, 0], sizes = [4, 32], strides = [1, 1]} : vector<4x96xf32> to vector<4x32xf32>
    %151 = vector.extract_strided_slice %149 {offsets = [0, 0], sizes = [4, 32], strides = [1, 1]} : vector<4x96xf32> to vector<4x32xf32>
    %152 = arith.addf %150, %151 : vector<4x32xf32>
    %153 = arith.negf %152 : vector<4x32xf32>
    %154 = math.exp %153 : vector<4x32xf32>
    %cst_81 = arith.constant 1.000000e+00 : f32
    %155 = vector.broadcast %cst_81 : f32 to vector<4x32xf32>
    %156 = arith.addf %155, %154 : vector<4x32xf32>
    %157 = arith.divf %155, %156 : vector<4x32xf32>
    %158 = vector.extract_strided_slice %146 {offsets = [0, 32], sizes = [4, 32], strides = [1, 1]} : vector<4x96xf32> to vector<4x32xf32>
    %159 = vector.extract_strided_slice %149 {offsets = [0, 32], sizes = [4, 32], strides = [1, 1]} : vector<4x96xf32> to vector<4x32xf32>
    %160 = arith.addf %158, %159 : vector<4x32xf32>
    %161 = arith.negf %160 : vector<4x32xf32>
    %162 = math.exp %161 : vector<4x32xf32>
    %cst_82 = arith.constant 1.000000e+00 : f32
    %163 = vector.broadcast %cst_82 : f32 to vector<4x32xf32>
    %164 = arith.addf %163, %162 : vector<4x32xf32>
    %165 = arith.divf %163, %164 : vector<4x32xf32>
    %166 = vector.extract_strided_slice %146 {offsets = [0, 64], sizes = [4, 32], strides = [1, 1]} : vector<4x96xf32> to vector<4x32xf32>
    %167 = vector.extract_strided_slice %149 {offsets = [0, 64], sizes = [4, 32], strides = [1, 1]} : vector<4x96xf32> to vector<4x32xf32>
    %168 = arith.mulf %157, %167 : vector<4x32xf32>
    %169 = arith.addf %166, %168 : vector<4x32xf32>
    %170 = math.tanh %169 : vector<4x32xf32>
    %cst_83 = arith.constant 1.000000e+00 : f32
    %171 = vector.broadcast %cst_83 : f32 to vector<4x32xf32>
    %172 = arith.subf %171, %165 : vector<4x32xf32>
    %173 = arith.mulf %172, %170 : vector<4x32xf32>
    %174 = arith.mulf %165, %84 : vector<4x32xf32>
    %175 = arith.addf %173, %174 : vector<4x32xf32>
    %cst_84 = arith.constant dense<0.000000e+00> : vector<4x96xf32>
    %176 = tpu.matmul %175, %21, %cst_84 {dimension_numbers = #tpu.dot_dimension_numbers<[1], [0], [0], [1], [0, 0, 1, 1], [], []>} : vector<4x32xf32>, vector<32x96xf32>, vector<4x96xf32> -> vector<4x96xf32>
    %177 = vector.broadcast %25 : vector<1x96xf32> to vector<4x96xf32>
    %178 = arith.addf %176, %177 : vector<4x96xf32>
    %cst_85 = arith.constant dense<0.000000e+00> : vector<4x96xf32>
    %179 = tpu.matmul %116, %23, %cst_85 {dimension_numbers = #tpu.dot_dimension_numbers<[1], [0], [0], [1], [0, 0, 1, 1], [], []>} : vector<4x32xf32>, vector<32x96xf32>, vector<4x96xf32> -> vector<4x96xf32>
    %180 = vector.broadcast %27 : vector<1x96xf32> to vector<4x96xf32>
    %181 = arith.addf %179, %180 : vector<4x96xf32>
    %182 = vector.extract_strided_slice %178 {offsets = [0, 0], sizes = [4, 32], strides = [1, 1]} : vector<4x96xf32> to vector<4x32xf32>
    %183 = vector.extract_strided_slice %181 {offsets = [0, 0], sizes = [4, 32], strides = [1, 1]} : vector<4x96xf32> to vector<4x32xf32>
    %184 = arith.addf %182, %183 : vector<4x32xf32>
    %185 = arith.negf %184 : vector<4x32xf32>
    %186 = math.exp %185 : vector<4x32xf32>
    %cst_86 = arith.constant 1.000000e+00 : f32
    %187 = vector.broadcast %cst_86 : f32 to vector<4x32xf32>
    %188 = arith.addf %187, %186 : vector<4x32xf32>
    %189 = arith.divf %187, %188 : vector<4x32xf32>
    %190 = vector.extract_strided_slice %178 {offsets = [0, 32], sizes = [4, 32], strides = [1, 1]} : vector<4x96xf32> to vector<4x32xf32>
    %191 = vector.extract_strided_slice %181 {offsets = [0, 32], sizes = [4, 32], strides = [1, 1]} : vector<4x96xf32> to vector<4x32xf32>
    %192 = arith.addf %190, %191 : vector<4x32xf32>
    %193 = arith.negf %192 : vector<4x32xf32>
    %194 = math.exp %193 : vector<4x32xf32>
    %cst_87 = arith.constant 1.000000e+00 : f32
    %195 = vector.broadcast %cst_87 : f32 to vector<4x32xf32>
    %196 = arith.addf %195, %194 : vector<4x32xf32>
    %197 = arith.divf %195, %196 : vector<4x32xf32>
    %198 = vector.extract_strided_slice %178 {offsets = [0, 64], sizes = [4, 32], strides = [1, 1]} : vector<4x96xf32> to vector<4x32xf32>
    %199 = vector.extract_strided_slice %181 {offsets = [0, 64], sizes = [4, 32], strides = [1, 1]} : vector<4x96xf32> to vector<4x32xf32>
    %200 = arith.mulf %189, %199 : vector<4x32xf32>
    %201 = arith.addf %198, %200 : vector<4x32xf32>
    %202 = math.tanh %201 : vector<4x32xf32>
    %cst_88 = arith.constant 1.000000e+00 : f32
    %203 = vector.broadcast %cst_88 : f32 to vector<4x32xf32>
    %204 = arith.subf %203, %197 : vector<4x32xf32>
    %205 = arith.mulf %204, %202 : vector<4x32xf32>
    %206 = arith.mulf %197, %116 : vector<4x32xf32>
    %207 = arith.addf %205, %206 : vector<4x32xf32>
    %208 = vector.extract_strided_slice %127 {offsets = [0, 2], sizes = [4, 2], strides = [1, 1]} : vector<4x4xf32> to vector<4x2xf32>
    %209 = arith.subf %142, %208 : vector<4x2xf32>
    %210 = arith.mulf %209, %209 : vector<4x2xf32>
    %cst_89 = arith.constant dense<0.000000e+00> : vector<4xf32>
    %211 = vector.multi_reduction <add>, %210, %cst_89 [1] : vector<4x2xf32> to vector<4xf32>
    %212 = vector.shape_cast %211 : vector<4xf32> to vector<4x1xf32>
    %213 = math.sqrt %212 : vector<4x1xf32>
    %214 = arith.addf %123, %213 : vector<4x1xf32>
    %c2 = arith.constant 2 : index
    %c0_90 = arith.constant 0 : index
    %c0_91 = arith.constant 0 : index
    %215 = vector.load %arg1[%c2, %c0_90, %c0_91] : memref<6x4x16xf32, #tpu.memory_space<vmem>>, vector<1x4x16xf32>
    %216 = vector.shape_cast %215 : vector<1x4x16xf32> to vector<4x16xf32>
    %c0_92 = arith.constant 0 : index
    %c2_93 = arith.constant 2 : index
    %c0_94 = arith.constant 0 : index
    %c0_95 = arith.constant 0 : index
    %217 = vector.load %arg2[%c0_92, %c2_93, %c0_94, %c0_95] : memref<1x6x4x4xf32, #tpu.memory_space<vmem>>, vector<1x1x4x4xf32>
    %218 = vector.shape_cast %217 : vector<1x1x4x4xf32> to vector<4x4xf32>
    %c0_96 = arith.constant 0 : index
    %c2_97 = arith.constant 2 : index
    %c0_98 = arith.constant 0 : index
    %c0_99 = arith.constant 0 : index
    %219 = vector.load %arg3[%c0_96, %c2_97, %c0_98, %c0_99] : memref<1x6x4x4xf32, #tpu.memory_space<vmem>>, vector<1x1x4x4xf32>
    %220 = vector.shape_cast %219 : vector<1x1x4x4xf32> to vector<4x4xf32>
    %cst_100 = arith.constant dense<0.000000e+00> : vector<4x128xf32>
    %221 = tpu.matmul %207, %1, %cst_100 {dimension_numbers = #tpu.dot_dimension_numbers<[1], [0], [0], [1], [0, 0, 1, 1], [], []>} : vector<4x32xf32>, vector<32x128xf32>, vector<4x128xf32> -> vector<4x128xf32>
    %222 = vector.extract_strided_slice %221 {offsets = [0, 0], sizes = [4, 32], strides = [1, 1]} : vector<4x128xf32> to vector<4x32xf32>
    %223 = vector.broadcast %3 : vector<1x32xf32> to vector<4x32xf32>
    %224 = arith.addf %222, %223 : vector<4x32xf32>
    %cst_101 = arith.constant 0.000000e+00 : f32
    %225 = vector.broadcast %cst_101 : f32 to vector<4x32xf32>
    %226 = arith.maximumf %224, %225 : vector<4x32xf32>
    %227 = vector.extract_strided_slice %221 {offsets = [0, 32], sizes = [4, 96], strides = [1, 1]} : vector<4x128xf32> to vector<4x96xf32>
    %cst_102 = arith.constant dense<0.000000e+00> : vector<4x32xf32>
    %228 = tpu.matmul %226, %5, %cst_102 {dimension_numbers = #tpu.dot_dimension_numbers<[1], [0], [0], [1], [0, 0, 1, 1], [], []>} : vector<4x32xf32>, vector<32x32xf32>, vector<4x32xf32> -> vector<4x32xf32>
    %229 = vector.broadcast %7 : vector<1x32xf32> to vector<4x32xf32>
    %230 = arith.addf %228, %229 : vector<4x32xf32>
    %cst_103 = arith.constant 0.000000e+00 : f32
    %231 = vector.broadcast %cst_103 : f32 to vector<4x32xf32>
    %232 = arith.maximumf %230, %231 : vector<4x32xf32>
    %cst_104 = arith.constant dense<0.000000e+00> : vector<4x2xf32>
    %233 = tpu.matmul %232, %9, %cst_104 {dimension_numbers = #tpu.dot_dimension_numbers<[1], [0], [0], [1], [0, 0, 1, 1], [], []>} : vector<4x32xf32>, vector<32x2xf32>, vector<4x2xf32> -> vector<4x2xf32>
    %234 = vector.broadcast %11 : vector<1x2xf32> to vector<4x2xf32>
    %235 = arith.addf %233, %234 : vector<4x2xf32>
    %cst_105 = arith.constant dense<0.000000e+00> : vector<4x96xf32>
    %236 = tpu.matmul %216, %13, %cst_105 {dimension_numbers = #tpu.dot_dimension_numbers<[1], [0], [0], [1], [0, 0, 1, 1], [], []>} : vector<4x16xf32>, vector<16x96xf32>, vector<4x96xf32> -> vector<4x96xf32>
    %237 = arith.addf %236, %227 : vector<4x96xf32>
    %238 = vector.broadcast %15 : vector<1x96xf32> to vector<4x96xf32>
    %239 = arith.addf %237, %238 : vector<4x96xf32>
    %cst_106 = arith.constant dense<0.000000e+00> : vector<4x96xf32>
    %240 = tpu.matmul %175, %17, %cst_106 {dimension_numbers = #tpu.dot_dimension_numbers<[1], [0], [0], [1], [0, 0, 1, 1], [], []>} : vector<4x32xf32>, vector<32x96xf32>, vector<4x96xf32> -> vector<4x96xf32>
    %241 = vector.broadcast %19 : vector<1x96xf32> to vector<4x96xf32>
    %242 = arith.addf %240, %241 : vector<4x96xf32>
    %243 = vector.extract_strided_slice %239 {offsets = [0, 0], sizes = [4, 32], strides = [1, 1]} : vector<4x96xf32> to vector<4x32xf32>
    %244 = vector.extract_strided_slice %242 {offsets = [0, 0], sizes = [4, 32], strides = [1, 1]} : vector<4x96xf32> to vector<4x32xf32>
    %245 = arith.addf %243, %244 : vector<4x32xf32>
    %246 = arith.negf %245 : vector<4x32xf32>
    %247 = math.exp %246 : vector<4x32xf32>
    %cst_107 = arith.constant 1.000000e+00 : f32
    %248 = vector.broadcast %cst_107 : f32 to vector<4x32xf32>
    %249 = arith.addf %248, %247 : vector<4x32xf32>
    %250 = arith.divf %248, %249 : vector<4x32xf32>
    %251 = vector.extract_strided_slice %239 {offsets = [0, 32], sizes = [4, 32], strides = [1, 1]} : vector<4x96xf32> to vector<4x32xf32>
    %252 = vector.extract_strided_slice %242 {offsets = [0, 32], sizes = [4, 32], strides = [1, 1]} : vector<4x96xf32> to vector<4x32xf32>
    %253 = arith.addf %251, %252 : vector<4x32xf32>
    %254 = arith.negf %253 : vector<4x32xf32>
    %255 = math.exp %254 : vector<4x32xf32>
    %cst_108 = arith.constant 1.000000e+00 : f32
    %256 = vector.broadcast %cst_108 : f32 to vector<4x32xf32>
    %257 = arith.addf %256, %255 : vector<4x32xf32>
    %258 = arith.divf %256, %257 : vector<4x32xf32>
    %259 = vector.extract_strided_slice %239 {offsets = [0, 64], sizes = [4, 32], strides = [1, 1]} : vector<4x96xf32> to vector<4x32xf32>
    %260 = vector.extract_strided_slice %242 {offsets = [0, 64], sizes = [4, 32], strides = [1, 1]} : vector<4x96xf32> to vector<4x32xf32>
    %261 = arith.mulf %250, %260 : vector<4x32xf32>
    %262 = arith.addf %259, %261 : vector<4x32xf32>
    %263 = math.tanh %262 : vector<4x32xf32>
    %cst_109 = arith.constant 1.000000e+00 : f32
    %264 = vector.broadcast %cst_109 : f32 to vector<4x32xf32>
    %265 = arith.subf %264, %258 : vector<4x32xf32>
    %266 = arith.mulf %265, %263 : vector<4x32xf32>
    %267 = arith.mulf %258, %175 : vector<4x32xf32>
    %268 = arith.addf %266, %267 : vector<4x32xf32>
    %cst_110 = arith.constant dense<0.000000e+00> : vector<4x96xf32>
    %269 = tpu.matmul %268, %21, %cst_110 {dimension_numbers = #tpu.dot_dimension_numbers<[1], [0], [0], [1], [0, 0, 1, 1], [], []>} : vector<4x32xf32>, vector<32x96xf32>, vector<4x96xf32> -> vector<4x96xf32>
    %270 = vector.broadcast %25 : vector<1x96xf32> to vector<4x96xf32>
    %271 = arith.addf %269, %270 : vector<4x96xf32>
    %cst_111 = arith.constant dense<0.000000e+00> : vector<4x96xf32>
    %272 = tpu.matmul %207, %23, %cst_111 {dimension_numbers = #tpu.dot_dimension_numbers<[1], [0], [0], [1], [0, 0, 1, 1], [], []>} : vector<4x32xf32>, vector<32x96xf32>, vector<4x96xf32> -> vector<4x96xf32>
    %273 = vector.broadcast %27 : vector<1x96xf32> to vector<4x96xf32>
    %274 = arith.addf %272, %273 : vector<4x96xf32>
    %275 = vector.extract_strided_slice %271 {offsets = [0, 0], sizes = [4, 32], strides = [1, 1]} : vector<4x96xf32> to vector<4x32xf32>
    %276 = vector.extract_strided_slice %274 {offsets = [0, 0], sizes = [4, 32], strides = [1, 1]} : vector<4x96xf32> to vector<4x32xf32>
    %277 = arith.addf %275, %276 : vector<4x32xf32>
    %278 = arith.negf %277 : vector<4x32xf32>
    %279 = math.exp %278 : vector<4x32xf32>
    %cst_112 = arith.constant 1.000000e+00 : f32
    %280 = vector.broadcast %cst_112 : f32 to vector<4x32xf32>
    %281 = arith.addf %280, %279 : vector<4x32xf32>
    %282 = arith.divf %280, %281 : vector<4x32xf32>
    %283 = vector.extract_strided_slice %271 {offsets = [0, 32], sizes = [4, 32], strides = [1, 1]} : vector<4x96xf32> to vector<4x32xf32>
    %284 = vector.extract_strided_slice %274 {offsets = [0, 32], sizes = [4, 32], strides = [1, 1]} : vector<4x96xf32> to vector<4x32xf32>
    %285 = arith.addf %283, %284 : vector<4x32xf32>
    %286 = arith.negf %285 : vector<4x32xf32>
    %287 = math.exp %286 : vector<4x32xf32>
    %cst_113 = arith.constant 1.000000e+00 : f32
    %288 = vector.broadcast %cst_113 : f32 to vector<4x32xf32>
    %289 = arith.addf %288, %287 : vector<4x32xf32>
    %290 = arith.divf %288, %289 : vector<4x32xf32>
    %291 = vector.extract_strided_slice %271 {offsets = [0, 64], sizes = [4, 32], strides = [1, 1]} : vector<4x96xf32> to vector<4x32xf32>
    %292 = vector.extract_strided_slice %274 {offsets = [0, 64], sizes = [4, 32], strides = [1, 1]} : vector<4x96xf32> to vector<4x32xf32>
    %293 = arith.mulf %282, %292 : vector<4x32xf32>
    %294 = arith.addf %291, %293 : vector<4x32xf32>
    %295 = math.tanh %294 : vector<4x32xf32>
    %cst_114 = arith.constant 1.000000e+00 : f32
    %296 = vector.broadcast %cst_114 : f32 to vector<4x32xf32>
    %297 = arith.subf %296, %290 : vector<4x32xf32>
    %298 = arith.mulf %297, %295 : vector<4x32xf32>
    %299 = arith.mulf %290, %207 : vector<4x32xf32>
    %300 = arith.addf %298, %299 : vector<4x32xf32>
    %301 = vector.extract_strided_slice %220 {offsets = [0, 2], sizes = [4, 2], strides = [1, 1]} : vector<4x4xf32> to vector<4x2xf32>
    %302 = arith.subf %235, %301 : vector<4x2xf32>
    %303 = arith.mulf %302, %302 : vector<4x2xf32>
    %cst_115 = arith.constant dense<0.000000e+00> : vector<4xf32>
    %304 = vector.multi_reduction <add>, %303, %cst_115 [1] : vector<4x2xf32> to vector<4xf32>
    %305 = vector.shape_cast %304 : vector<4xf32> to vector<4x1xf32>
    %306 = math.sqrt %305 : vector<4x1xf32>
    %307 = arith.addf %214, %306 : vector<4x1xf32>
    %308 = vector.extract_strided_slice %218 {offsets = [0, 0], sizes = [4, 2], strides = [1, 1]} : vector<4x4xf32> to vector<4x2xf32>
    %309 = vector.extract_strided_slice %218 {offsets = [0, 2], sizes = [4, 2], strides = [1, 1]} : vector<4x4xf32> to vector<4x2xf32>
    %cst_116 = arith.constant 1.000000e-01 : f32
    %310 = vector.broadcast %cst_116 : f32 to vector<4x2xf32>
    %311 = arith.mulf %309, %310 : vector<4x2xf32>
    %312 = arith.addf %308, %311 : vector<4x2xf32>
    %313 = vector.extract_strided_slice %220 {offsets = [0, 0], sizes = [4, 2], strides = [1, 1]} : vector<4x4xf32> to vector<4x2xf32>
    %314 = arith.subf %312, %313 : vector<4x2xf32>
    %315 = arith.mulf %314, %314 : vector<4x2xf32>
    %cst_117 = arith.constant dense<0.000000e+00> : vector<4xf32>
    %316 = vector.multi_reduction <add>, %315, %cst_117 [1] : vector<4x2xf32> to vector<4xf32>
    %317 = vector.shape_cast %316 : vector<4xf32> to vector<4x1xf32>
    %318 = math.sqrt %317 : vector<4x1xf32>
    %319 = arith.addf %31, %318 : vector<4x1xf32>
    %320 = arith.subf %235, %301 : vector<4x2xf32>
    %321 = arith.mulf %320, %320 : vector<4x2xf32>
    %cst_118 = arith.constant dense<0.000000e+00> : vector<4xf32>
    %322 = vector.multi_reduction <add>, %321, %cst_118 [1] : vector<4x2xf32> to vector<4xf32>
    %323 = vector.shape_cast %322 : vector<4xf32> to vector<4x1xf32>
    %324 = math.sqrt %323 : vector<4x1xf32>
    %325 = arith.addf %32, %324 : vector<4x1xf32>
    %c3 = arith.constant 3 : index
    %c0_119 = arith.constant 0 : index
    %c0_120 = arith.constant 0 : index
    %326 = vector.load %arg1[%c3, %c0_119, %c0_120] : memref<6x4x16xf32, #tpu.memory_space<vmem>>, vector<1x4x16xf32>
    %327 = vector.shape_cast %326 : vector<1x4x16xf32> to vector<4x16xf32>
    %c0_121 = arith.constant 0 : index
    %c3_122 = arith.constant 3 : index
    %c0_123 = arith.constant 0 : index
    %c0_124 = arith.constant 0 : index
    %328 = vector.load %arg2[%c0_121, %c3_122, %c0_123, %c0_124] : memref<1x6x4x4xf32, #tpu.memory_space<vmem>>, vector<1x1x4x4xf32>
    %329 = vector.shape_cast %328 : vector<1x1x4x4xf32> to vector<4x4xf32>
    %c0_125 = arith.constant 0 : index
    %c3_126 = arith.constant 3 : index
    %c0_127 = arith.constant 0 : index
    %c0_128 = arith.constant 0 : index
    %330 = vector.load %arg3[%c0_125, %c3_126, %c0_127, %c0_128] : memref<1x6x4x4xf32, #tpu.memory_space<vmem>>, vector<1x1x4x4xf32>
    %331 = vector.shape_cast %330 : vector<1x1x4x4xf32> to vector<4x4xf32>
    %cst_129 = arith.constant dense<0.000000e+00> : vector<4x128xf32>
    %332 = tpu.matmul %300, %1, %cst_129 {dimension_numbers = #tpu.dot_dimension_numbers<[1], [0], [0], [1], [0, 0, 1, 1], [], []>} : vector<4x32xf32>, vector<32x128xf32>, vector<4x128xf32> -> vector<4x128xf32>
    %333 = vector.extract_strided_slice %332 {offsets = [0, 0], sizes = [4, 32], strides = [1, 1]} : vector<4x128xf32> to vector<4x32xf32>
    %334 = vector.broadcast %3 : vector<1x32xf32> to vector<4x32xf32>
    %335 = arith.addf %333, %334 : vector<4x32xf32>
    %cst_130 = arith.constant 0.000000e+00 : f32
    %336 = vector.broadcast %cst_130 : f32 to vector<4x32xf32>
    %337 = arith.maximumf %335, %336 : vector<4x32xf32>
    %338 = vector.extract_strided_slice %332 {offsets = [0, 32], sizes = [4, 96], strides = [1, 1]} : vector<4x128xf32> to vector<4x96xf32>
    %cst_131 = arith.constant dense<0.000000e+00> : vector<4x32xf32>
    %339 = tpu.matmul %337, %5, %cst_131 {dimension_numbers = #tpu.dot_dimension_numbers<[1], [0], [0], [1], [0, 0, 1, 1], [], []>} : vector<4x32xf32>, vector<32x32xf32>, vector<4x32xf32> -> vector<4x32xf32>
    %340 = vector.broadcast %7 : vector<1x32xf32> to vector<4x32xf32>
    %341 = arith.addf %339, %340 : vector<4x32xf32>
    %cst_132 = arith.constant 0.000000e+00 : f32
    %342 = vector.broadcast %cst_132 : f32 to vector<4x32xf32>
    %343 = arith.maximumf %341, %342 : vector<4x32xf32>
    %cst_133 = arith.constant dense<0.000000e+00> : vector<4x2xf32>
    %344 = tpu.matmul %343, %9, %cst_133 {dimension_numbers = #tpu.dot_dimension_numbers<[1], [0], [0], [1], [0, 0, 1, 1], [], []>} : vector<4x32xf32>, vector<32x2xf32>, vector<4x2xf32> -> vector<4x2xf32>
    %345 = vector.broadcast %11 : vector<1x2xf32> to vector<4x2xf32>
    %346 = arith.addf %344, %345 : vector<4x2xf32>
    %cst_134 = arith.constant dense<0.000000e+00> : vector<4x96xf32>
    %347 = tpu.matmul %327, %13, %cst_134 {dimension_numbers = #tpu.dot_dimension_numbers<[1], [0], [0], [1], [0, 0, 1, 1], [], []>} : vector<4x16xf32>, vector<16x96xf32>, vector<4x96xf32> -> vector<4x96xf32>
    %348 = arith.addf %347, %338 : vector<4x96xf32>
    %349 = vector.broadcast %15 : vector<1x96xf32> to vector<4x96xf32>
    %350 = arith.addf %348, %349 : vector<4x96xf32>
    %cst_135 = arith.constant dense<0.000000e+00> : vector<4x96xf32>
    %351 = tpu.matmul %268, %17, %cst_135 {dimension_numbers = #tpu.dot_dimension_numbers<[1], [0], [0], [1], [0, 0, 1, 1], [], []>} : vector<4x32xf32>, vector<32x96xf32>, vector<4x96xf32> -> vector<4x96xf32>
    %352 = vector.broadcast %19 : vector<1x96xf32> to vector<4x96xf32>
    %353 = arith.addf %351, %352 : vector<4x96xf32>
    %354 = vector.extract_strided_slice %350 {offsets = [0, 0], sizes = [4, 32], strides = [1, 1]} : vector<4x96xf32> to vector<4x32xf32>
    %355 = vector.extract_strided_slice %353 {offsets = [0, 0], sizes = [4, 32], strides = [1, 1]} : vector<4x96xf32> to vector<4x32xf32>
    %356 = arith.addf %354, %355 : vector<4x32xf32>
    %357 = arith.negf %356 : vector<4x32xf32>
    %358 = math.exp %357 : vector<4x32xf32>
    %cst_136 = arith.constant 1.000000e+00 : f32
    %359 = vector.broadcast %cst_136 : f32 to vector<4x32xf32>
    %360 = arith.addf %359, %358 : vector<4x32xf32>
    %361 = arith.divf %359, %360 : vector<4x32xf32>
    %362 = vector.extract_strided_slice %350 {offsets = [0, 32], sizes = [4, 32], strides = [1, 1]} : vector<4x96xf32> to vector<4x32xf32>
    %363 = vector.extract_strided_slice %353 {offsets = [0, 32], sizes = [4, 32], strides = [1, 1]} : vector<4x96xf32> to vector<4x32xf32>
    %364 = arith.addf %362, %363 : vector<4x32xf32>
    %365 = arith.negf %364 : vector<4x32xf32>
    %366 = math.exp %365 : vector<4x32xf32>
    %cst_137 = arith.constant 1.000000e+00 : f32
    %367 = vector.broadcast %cst_137 : f32 to vector<4x32xf32>
    %368 = arith.addf %367, %366 : vector<4x32xf32>
    %369 = arith.divf %367, %368 : vector<4x32xf32>
    %370 = vector.extract_strided_slice %350 {offsets = [0, 64], sizes = [4, 32], strides = [1, 1]} : vector<4x96xf32> to vector<4x32xf32>
    %371 = vector.extract_strided_slice %353 {offsets = [0, 64], sizes = [4, 32], strides = [1, 1]} : vector<4x96xf32> to vector<4x32xf32>
    %372 = arith.mulf %361, %371 : vector<4x32xf32>
    %373 = arith.addf %370, %372 : vector<4x32xf32>
    %374 = math.tanh %373 : vector<4x32xf32>
    %cst_138 = arith.constant 1.000000e+00 : f32
    %375 = vector.broadcast %cst_138 : f32 to vector<4x32xf32>
    %376 = arith.subf %375, %369 : vector<4x32xf32>
    %377 = arith.mulf %376, %374 : vector<4x32xf32>
    %378 = arith.mulf %369, %268 : vector<4x32xf32>
    %379 = arith.addf %377, %378 : vector<4x32xf32>
    %cst_139 = arith.constant dense<0.000000e+00> : vector<4x96xf32>
    %380 = tpu.matmul %379, %21, %cst_139 {dimension_numbers = #tpu.dot_dimension_numbers<[1], [0], [0], [1], [0, 0, 1, 1], [], []>} : vector<4x32xf32>, vector<32x96xf32>, vector<4x96xf32> -> vector<4x96xf32>
    %381 = vector.broadcast %25 : vector<1x96xf32> to vector<4x96xf32>
    %382 = arith.addf %380, %381 : vector<4x96xf32>
    %cst_140 = arith.constant dense<0.000000e+00> : vector<4x96xf32>
    %383 = tpu.matmul %300, %23, %cst_140 {dimension_numbers = #tpu.dot_dimension_numbers<[1], [0], [0], [1], [0, 0, 1, 1], [], []>} : vector<4x32xf32>, vector<32x96xf32>, vector<4x96xf32> -> vector<4x96xf32>
    %384 = vector.broadcast %27 : vector<1x96xf32> to vector<4x96xf32>
    %385 = arith.addf %383, %384 : vector<4x96xf32>
    %386 = vector.extract_strided_slice %382 {offsets = [0, 0], sizes = [4, 32], strides = [1, 1]} : vector<4x96xf32> to vector<4x32xf32>
    %387 = vector.extract_strided_slice %385 {offsets = [0, 0], sizes = [4, 32], strides = [1, 1]} : vector<4x96xf32> to vector<4x32xf32>
    %388 = arith.addf %386, %387 : vector<4x32xf32>
    %389 = arith.negf %388 : vector<4x32xf32>
    %390 = math.exp %389 : vector<4x32xf32>
    %cst_141 = arith.constant 1.000000e+00 : f32
    %391 = vector.broadcast %cst_141 : f32 to vector<4x32xf32>
    %392 = arith.addf %391, %390 : vector<4x32xf32>
    %393 = arith.divf %391, %392 : vector<4x32xf32>
    %394 = vector.extract_strided_slice %382 {offsets = [0, 32], sizes = [4, 32], strides = [1, 1]} : vector<4x96xf32> to vector<4x32xf32>
    %395 = vector.extract_strided_slice %385 {offsets = [0, 32], sizes = [4, 32], strides = [1, 1]} : vector<4x96xf32> to vector<4x32xf32>
    %396 = arith.addf %394, %395 : vector<4x32xf32>
    %397 = arith.negf %396 : vector<4x32xf32>
    %398 = math.exp %397 : vector<4x32xf32>
    %cst_142 = arith.constant 1.000000e+00 : f32
    %399 = vector.broadcast %cst_142 : f32 to vector<4x32xf32>
    %400 = arith.addf %399, %398 : vector<4x32xf32>
    %401 = arith.divf %399, %400 : vector<4x32xf32>
    %402 = vector.extract_strided_slice %382 {offsets = [0, 64], sizes = [4, 32], strides = [1, 1]} : vector<4x96xf32> to vector<4x32xf32>
    %403 = vector.extract_strided_slice %385 {offsets = [0, 64], sizes = [4, 32], strides = [1, 1]} : vector<4x96xf32> to vector<4x32xf32>
    %404 = arith.mulf %393, %403 : vector<4x32xf32>
    %405 = arith.addf %402, %404 : vector<4x32xf32>
    %406 = math.tanh %405 : vector<4x32xf32>
    %cst_143 = arith.constant 1.000000e+00 : f32
    %407 = vector.broadcast %cst_143 : f32 to vector<4x32xf32>
    %408 = arith.subf %407, %401 : vector<4x32xf32>
    %409 = arith.mulf %408, %406 : vector<4x32xf32>
    %410 = arith.mulf %401, %300 : vector<4x32xf32>
    %411 = arith.addf %409, %410 : vector<4x32xf32>
    %412 = vector.extract_strided_slice %331 {offsets = [0, 2], sizes = [4, 2], strides = [1, 1]} : vector<4x4xf32> to vector<4x2xf32>
    %413 = arith.subf %346, %412 : vector<4x2xf32>
    %414 = arith.mulf %413, %413 : vector<4x2xf32>
    %cst_144 = arith.constant dense<0.000000e+00> : vector<4xf32>
    %415 = vector.multi_reduction <add>, %414, %cst_144 [1] : vector<4x2xf32> to vector<4xf32>
    %416 = vector.shape_cast %415 : vector<4xf32> to vector<4x1xf32>
    %417 = math.sqrt %416 : vector<4x1xf32>
    %418 = arith.addf %307, %417 : vector<4x1xf32>
    %419 = vector.extract_strided_slice %329 {offsets = [0, 0], sizes = [4, 2], strides = [1, 1]} : vector<4x4xf32> to vector<4x2xf32>
    %420 = vector.extract_strided_slice %329 {offsets = [0, 2], sizes = [4, 2], strides = [1, 1]} : vector<4x4xf32> to vector<4x2xf32>
    %cst_145 = arith.constant 1.000000e-01 : f32
    %421 = vector.broadcast %cst_145 : f32 to vector<4x2xf32>
    %422 = arith.mulf %420, %421 : vector<4x2xf32>
    %423 = arith.addf %419, %422 : vector<4x2xf32>
    %424 = vector.extract_strided_slice %331 {offsets = [0, 0], sizes = [4, 2], strides = [1, 1]} : vector<4x4xf32> to vector<4x2xf32>
    %425 = arith.subf %423, %424 : vector<4x2xf32>
    %426 = arith.mulf %425, %425 : vector<4x2xf32>
    %cst_146 = arith.constant dense<0.000000e+00> : vector<4xf32>
    %427 = vector.multi_reduction <add>, %426, %cst_146 [1] : vector<4x2xf32> to vector<4xf32>
    %428 = vector.shape_cast %427 : vector<4xf32> to vector<4x1xf32>
    %429 = math.sqrt %428 : vector<4x1xf32>
    %430 = arith.addf %319, %429 : vector<4x1xf32>
    %431 = arith.subf %346, %412 : vector<4x2xf32>
    %432 = arith.mulf %431, %431 : vector<4x2xf32>
    %cst_147 = arith.constant dense<0.000000e+00> : vector<4xf32>
    %433 = vector.multi_reduction <add>, %432, %cst_147 [1] : vector<4x2xf32> to vector<4xf32>
    %434 = vector.shape_cast %433 : vector<4xf32> to vector<4x1xf32>
    %435 = math.sqrt %434 : vector<4x1xf32>
    %436 = arith.addf %325, %435 : vector<4x1xf32>
    %c4 = arith.constant 4 : index
    %c0_148 = arith.constant 0 : index
    %c0_149 = arith.constant 0 : index
    %437 = vector.load %arg1[%c4, %c0_148, %c0_149] : memref<6x4x16xf32, #tpu.memory_space<vmem>>, vector<1x4x16xf32>
    %438 = vector.shape_cast %437 : vector<1x4x16xf32> to vector<4x16xf32>
    %c0_150 = arith.constant 0 : index
    %c4_151 = arith.constant 4 : index
    %c0_152 = arith.constant 0 : index
    %c0_153 = arith.constant 0 : index
    %439 = vector.load %arg2[%c0_150, %c4_151, %c0_152, %c0_153] : memref<1x6x4x4xf32, #tpu.memory_space<vmem>>, vector<1x1x4x4xf32>
    %440 = vector.shape_cast %439 : vector<1x1x4x4xf32> to vector<4x4xf32>
    %c0_154 = arith.constant 0 : index
    %c4_155 = arith.constant 4 : index
    %c0_156 = arith.constant 0 : index
    %c0_157 = arith.constant 0 : index
    %441 = vector.load %arg3[%c0_154, %c4_155, %c0_156, %c0_157] : memref<1x6x4x4xf32, #tpu.memory_space<vmem>>, vector<1x1x4x4xf32>
    %442 = vector.shape_cast %441 : vector<1x1x4x4xf32> to vector<4x4xf32>
    %cst_158 = arith.constant dense<0.000000e+00> : vector<4x128xf32>
    %443 = tpu.matmul %411, %1, %cst_158 {dimension_numbers = #tpu.dot_dimension_numbers<[1], [0], [0], [1], [0, 0, 1, 1], [], []>} : vector<4x32xf32>, vector<32x128xf32>, vector<4x128xf32> -> vector<4x128xf32>
    %444 = vector.extract_strided_slice %443 {offsets = [0, 0], sizes = [4, 32], strides = [1, 1]} : vector<4x128xf32> to vector<4x32xf32>
    %445 = vector.broadcast %3 : vector<1x32xf32> to vector<4x32xf32>
    %446 = arith.addf %444, %445 : vector<4x32xf32>
    %cst_159 = arith.constant 0.000000e+00 : f32
    %447 = vector.broadcast %cst_159 : f32 to vector<4x32xf32>
    %448 = arith.maximumf %446, %447 : vector<4x32xf32>
    %449 = vector.extract_strided_slice %443 {offsets = [0, 32], sizes = [4, 96], strides = [1, 1]} : vector<4x128xf32> to vector<4x96xf32>
    %cst_160 = arith.constant dense<0.000000e+00> : vector<4x32xf32>
    %450 = tpu.matmul %448, %5, %cst_160 {dimension_numbers = #tpu.dot_dimension_numbers<[1], [0], [0], [1], [0, 0, 1, 1], [], []>} : vector<4x32xf32>, vector<32x32xf32>, vector<4x32xf32> -> vector<4x32xf32>
    %451 = vector.broadcast %7 : vector<1x32xf32> to vector<4x32xf32>
    %452 = arith.addf %450, %451 : vector<4x32xf32>
    %cst_161 = arith.constant 0.000000e+00 : f32
    %453 = vector.broadcast %cst_161 : f32 to vector<4x32xf32>
    %454 = arith.maximumf %452, %453 : vector<4x32xf32>
    %cst_162 = arith.constant dense<0.000000e+00> : vector<4x2xf32>
    %455 = tpu.matmul %454, %9, %cst_162 {dimension_numbers = #tpu.dot_dimension_numbers<[1], [0], [0], [1], [0, 0, 1, 1], [], []>} : vector<4x32xf32>, vector<32x2xf32>, vector<4x2xf32> -> vector<4x2xf32>
    %456 = vector.broadcast %11 : vector<1x2xf32> to vector<4x2xf32>
    %457 = arith.addf %455, %456 : vector<4x2xf32>
    %cst_163 = arith.constant dense<0.000000e+00> : vector<4x96xf32>
    %458 = tpu.matmul %438, %13, %cst_163 {dimension_numbers = #tpu.dot_dimension_numbers<[1], [0], [0], [1], [0, 0, 1, 1], [], []>} : vector<4x16xf32>, vector<16x96xf32>, vector<4x96xf32> -> vector<4x96xf32>
    %459 = arith.addf %458, %449 : vector<4x96xf32>
    %460 = vector.broadcast %15 : vector<1x96xf32> to vector<4x96xf32>
    %461 = arith.addf %459, %460 : vector<4x96xf32>
    %cst_164 = arith.constant dense<0.000000e+00> : vector<4x96xf32>
    %462 = tpu.matmul %379, %17, %cst_164 {dimension_numbers = #tpu.dot_dimension_numbers<[1], [0], [0], [1], [0, 0, 1, 1], [], []>} : vector<4x32xf32>, vector<32x96xf32>, vector<4x96xf32> -> vector<4x96xf32>
    %463 = vector.broadcast %19 : vector<1x96xf32> to vector<4x96xf32>
    %464 = arith.addf %462, %463 : vector<4x96xf32>
    %465 = vector.extract_strided_slice %461 {offsets = [0, 0], sizes = [4, 32], strides = [1, 1]} : vector<4x96xf32> to vector<4x32xf32>
    %466 = vector.extract_strided_slice %464 {offsets = [0, 0], sizes = [4, 32], strides = [1, 1]} : vector<4x96xf32> to vector<4x32xf32>
    %467 = arith.addf %465, %466 : vector<4x32xf32>
    %468 = arith.negf %467 : vector<4x32xf32>
    %469 = math.exp %468 : vector<4x32xf32>
    %cst_165 = arith.constant 1.000000e+00 : f32
    %470 = vector.broadcast %cst_165 : f32 to vector<4x32xf32>
    %471 = arith.addf %470, %469 : vector<4x32xf32>
    %472 = arith.divf %470, %471 : vector<4x32xf32>
    %473 = vector.extract_strided_slice %461 {offsets = [0, 32], sizes = [4, 32], strides = [1, 1]} : vector<4x96xf32> to vector<4x32xf32>
    %474 = vector.extract_strided_slice %464 {offsets = [0, 32], sizes = [4, 32], strides = [1, 1]} : vector<4x96xf32> to vector<4x32xf32>
    %475 = arith.addf %473, %474 : vector<4x32xf32>
    %476 = arith.negf %475 : vector<4x32xf32>
    %477 = math.exp %476 : vector<4x32xf32>
    %cst_166 = arith.constant 1.000000e+00 : f32
    %478 = vector.broadcast %cst_166 : f32 to vector<4x32xf32>
    %479 = arith.addf %478, %477 : vector<4x32xf32>
    %480 = arith.divf %478, %479 : vector<4x32xf32>
    %481 = vector.extract_strided_slice %461 {offsets = [0, 64], sizes = [4, 32], strides = [1, 1]} : vector<4x96xf32> to vector<4x32xf32>
    %482 = vector.extract_strided_slice %464 {offsets = [0, 64], sizes = [4, 32], strides = [1, 1]} : vector<4x96xf32> to vector<4x32xf32>
    %483 = arith.mulf %472, %482 : vector<4x32xf32>
    %484 = arith.addf %481, %483 : vector<4x32xf32>
    %485 = math.tanh %484 : vector<4x32xf32>
    %cst_167 = arith.constant 1.000000e+00 : f32
    %486 = vector.broadcast %cst_167 : f32 to vector<4x32xf32>
    %487 = arith.subf %486, %480 : vector<4x32xf32>
    %488 = arith.mulf %487, %485 : vector<4x32xf32>
    %489 = arith.mulf %480, %379 : vector<4x32xf32>
    %490 = arith.addf %488, %489 : vector<4x32xf32>
    %cst_168 = arith.constant dense<0.000000e+00> : vector<4x96xf32>
    %491 = tpu.matmul %490, %21, %cst_168 {dimension_numbers = #tpu.dot_dimension_numbers<[1], [0], [0], [1], [0, 0, 1, 1], [], []>} : vector<4x32xf32>, vector<32x96xf32>, vector<4x96xf32> -> vector<4x96xf32>
    %492 = vector.broadcast %25 : vector<1x96xf32> to vector<4x96xf32>
    %493 = arith.addf %491, %492 : vector<4x96xf32>
    %cst_169 = arith.constant dense<0.000000e+00> : vector<4x96xf32>
    %494 = tpu.matmul %411, %23, %cst_169 {dimension_numbers = #tpu.dot_dimension_numbers<[1], [0], [0], [1], [0, 0, 1, 1], [], []>} : vector<4x32xf32>, vector<32x96xf32>, vector<4x96xf32> -> vector<4x96xf32>
    %495 = vector.broadcast %27 : vector<1x96xf32> to vector<4x96xf32>
    %496 = arith.addf %494, %495 : vector<4x96xf32>
    %497 = vector.extract_strided_slice %493 {offsets = [0, 0], sizes = [4, 32], strides = [1, 1]} : vector<4x96xf32> to vector<4x32xf32>
    %498 = vector.extract_strided_slice %496 {offsets = [0, 0], sizes = [4, 32], strides = [1, 1]} : vector<4x96xf32> to vector<4x32xf32>
    %499 = arith.addf %497, %498 : vector<4x32xf32>
    %500 = arith.negf %499 : vector<4x32xf32>
    %501 = math.exp %500 : vector<4x32xf32>
    %cst_170 = arith.constant 1.000000e+00 : f32
    %502 = vector.broadcast %cst_170 : f32 to vector<4x32xf32>
    %503 = arith.addf %502, %501 : vector<4x32xf32>
    %504 = arith.divf %502, %503 : vector<4x32xf32>
    %505 = vector.extract_strided_slice %493 {offsets = [0, 32], sizes = [4, 32], strides = [1, 1]} : vector<4x96xf32> to vector<4x32xf32>
    %506 = vector.extract_strided_slice %496 {offsets = [0, 32], sizes = [4, 32], strides = [1, 1]} : vector<4x96xf32> to vector<4x32xf32>
    %507 = arith.addf %505, %506 : vector<4x32xf32>
    %508 = arith.negf %507 : vector<4x32xf32>
    %509 = math.exp %508 : vector<4x32xf32>
    %cst_171 = arith.constant 1.000000e+00 : f32
    %510 = vector.broadcast %cst_171 : f32 to vector<4x32xf32>
    %511 = arith.addf %510, %509 : vector<4x32xf32>
    %512 = arith.divf %510, %511 : vector<4x32xf32>
    %513 = vector.extract_strided_slice %493 {offsets = [0, 64], sizes = [4, 32], strides = [1, 1]} : vector<4x96xf32> to vector<4x32xf32>
    %514 = vector.extract_strided_slice %496 {offsets = [0, 64], sizes = [4, 32], strides = [1, 1]} : vector<4x96xf32> to vector<4x32xf32>
    %515 = arith.mulf %504, %514 : vector<4x32xf32>
    %516 = arith.addf %513, %515 : vector<4x32xf32>
    %517 = math.tanh %516 : vector<4x32xf32>
    %cst_172 = arith.constant 1.000000e+00 : f32
    %518 = vector.broadcast %cst_172 : f32 to vector<4x32xf32>
    %519 = arith.subf %518, %512 : vector<4x32xf32>
    %520 = arith.mulf %519, %517 : vector<4x32xf32>
    %521 = arith.mulf %512, %411 : vector<4x32xf32>
    %522 = arith.addf %520, %521 : vector<4x32xf32>
    %523 = vector.extract_strided_slice %442 {offsets = [0, 2], sizes = [4, 2], strides = [1, 1]} : vector<4x4xf32> to vector<4x2xf32>
    %524 = arith.subf %457, %523 : vector<4x2xf32>
    %525 = arith.mulf %524, %524 : vector<4x2xf32>
    %cst_173 = arith.constant dense<0.000000e+00> : vector<4xf32>
    %526 = vector.multi_reduction <add>, %525, %cst_173 [1] : vector<4x2xf32> to vector<4xf32>
    %527 = vector.shape_cast %526 : vector<4xf32> to vector<4x1xf32>
    %528 = math.sqrt %527 : vector<4x1xf32>
    %529 = arith.addf %418, %528 : vector<4x1xf32>
    %530 = vector.extract_strided_slice %440 {offsets = [0, 0], sizes = [4, 2], strides = [1, 1]} : vector<4x4xf32> to vector<4x2xf32>
    %531 = vector.extract_strided_slice %440 {offsets = [0, 2], sizes = [4, 2], strides = [1, 1]} : vector<4x4xf32> to vector<4x2xf32>
    %cst_174 = arith.constant 1.000000e-01 : f32
    %532 = vector.broadcast %cst_174 : f32 to vector<4x2xf32>
    %533 = arith.mulf %531, %532 : vector<4x2xf32>
    %534 = arith.addf %530, %533 : vector<4x2xf32>
    %535 = vector.extract_strided_slice %442 {offsets = [0, 0], sizes = [4, 2], strides = [1, 1]} : vector<4x4xf32> to vector<4x2xf32>
    %536 = arith.subf %534, %535 : vector<4x2xf32>
    %537 = arith.mulf %536, %536 : vector<4x2xf32>
    %cst_175 = arith.constant dense<0.000000e+00> : vector<4xf32>
    %538 = vector.multi_reduction <add>, %537, %cst_175 [1] : vector<4x2xf32> to vector<4xf32>
    %539 = vector.shape_cast %538 : vector<4xf32> to vector<4x1xf32>
    %540 = math.sqrt %539 : vector<4x1xf32>
    %541 = arith.addf %430, %540 : vector<4x1xf32>
    %542 = arith.subf %457, %523 : vector<4x2xf32>
    %543 = arith.mulf %542, %542 : vector<4x2xf32>
    %cst_176 = arith.constant dense<0.000000e+00> : vector<4xf32>
    %544 = vector.multi_reduction <add>, %543, %cst_176 [1] : vector<4x2xf32> to vector<4xf32>
    %545 = vector.shape_cast %544 : vector<4xf32> to vector<4x1xf32>
    %546 = math.sqrt %545 : vector<4x1xf32>
    %547 = arith.addf %436, %546 : vector<4x1xf32>
    %c0_177 = arith.constant 0 : index
    %c5 = arith.constant 5 : index
    %c0_178 = arith.constant 0 : index
    %c0_179 = arith.constant 0 : index
    %548 = vector.load %arg2[%c0_177, %c5, %c0_178, %c0_179] : memref<1x6x4x4xf32, #tpu.memory_space<vmem>>, vector<1x1x4x4xf32>
    %549 = vector.shape_cast %548 : vector<1x1x4x4xf32> to vector<4x4xf32>
    %c0_180 = arith.constant 0 : index
    %c5_181 = arith.constant 5 : index
    %c0_182 = arith.constant 0 : index
    %c0_183 = arith.constant 0 : index
    %550 = vector.load %arg3[%c0_180, %c5_181, %c0_182, %c0_183] : memref<1x6x4x4xf32, #tpu.memory_space<vmem>>, vector<1x1x4x4xf32>
    %551 = vector.shape_cast %550 : vector<1x1x4x4xf32> to vector<4x4xf32>
    %cst_184 = arith.constant dense<0.000000e+00> : vector<4x128xf32>
    %552 = tpu.matmul %522, %1, %cst_184 {dimension_numbers = #tpu.dot_dimension_numbers<[1], [0], [0], [1], [0, 0, 1, 1], [], []>} : vector<4x32xf32>, vector<32x128xf32>, vector<4x128xf32> -> vector<4x128xf32>
    %553 = vector.extract_strided_slice %552 {offsets = [0, 0], sizes = [4, 32], strides = [1, 1]} : vector<4x128xf32> to vector<4x32xf32>
    %554 = vector.broadcast %3 : vector<1x32xf32> to vector<4x32xf32>
    %555 = arith.addf %553, %554 : vector<4x32xf32>
    %cst_185 = arith.constant 0.000000e+00 : f32
    %556 = vector.broadcast %cst_185 : f32 to vector<4x32xf32>
    %557 = arith.maximumf %555, %556 : vector<4x32xf32>
    %cst_186 = arith.constant dense<0.000000e+00> : vector<4x32xf32>
    %558 = tpu.matmul %557, %5, %cst_186 {dimension_numbers = #tpu.dot_dimension_numbers<[1], [0], [0], [1], [0, 0, 1, 1], [], []>} : vector<4x32xf32>, vector<32x32xf32>, vector<4x32xf32> -> vector<4x32xf32>
    %559 = vector.broadcast %7 : vector<1x32xf32> to vector<4x32xf32>
    %560 = arith.addf %558, %559 : vector<4x32xf32>
    %cst_187 = arith.constant 0.000000e+00 : f32
    %561 = vector.broadcast %cst_187 : f32 to vector<4x32xf32>
    %562 = arith.maximumf %560, %561 : vector<4x32xf32>
    %cst_188 = arith.constant dense<0.000000e+00> : vector<4x2xf32>
    %563 = tpu.matmul %562, %9, %cst_188 {dimension_numbers = #tpu.dot_dimension_numbers<[1], [0], [0], [1], [0, 0, 1, 1], [], []>} : vector<4x32xf32>, vector<32x2xf32>, vector<4x2xf32> -> vector<4x2xf32>
    %564 = vector.broadcast %11 : vector<1x2xf32> to vector<4x2xf32>
    %565 = arith.addf %563, %564 : vector<4x2xf32>
    %566 = vector.extract_strided_slice %551 {offsets = [0, 2], sizes = [4, 2], strides = [1, 1]} : vector<4x4xf32> to vector<4x2xf32>
    %567 = arith.subf %565, %566 : vector<4x2xf32>
    %568 = arith.mulf %567, %567 : vector<4x2xf32>
    %cst_189 = arith.constant dense<0.000000e+00> : vector<4xf32>
    %569 = vector.multi_reduction <add>, %568, %cst_189 [1] : vector<4x2xf32> to vector<4xf32>
    %570 = vector.shape_cast %569 : vector<4xf32> to vector<4x1xf32>
    %571 = math.sqrt %570 : vector<4x1xf32>
    %572 = arith.addf %529, %571 : vector<4x1xf32>
    %573 = vector.extract_strided_slice %549 {offsets = [0, 0], sizes = [4, 2], strides = [1, 1]} : vector<4x4xf32> to vector<4x2xf32>
    %574 = vector.extract_strided_slice %549 {offsets = [0, 2], sizes = [4, 2], strides = [1, 1]} : vector<4x4xf32> to vector<4x2xf32>
    %cst_190 = arith.constant 1.000000e-01 : f32
    %575 = vector.broadcast %cst_190 : f32 to vector<4x2xf32>
    %576 = arith.mulf %574, %575 : vector<4x2xf32>
    %577 = arith.addf %573, %576 : vector<4x2xf32>
    %578 = vector.extract_strided_slice %551 {offsets = [0, 0], sizes = [4, 2], strides = [1, 1]} : vector<4x4xf32> to vector<4x2xf32>
    %579 = arith.subf %577, %578 : vector<4x2xf32>
    %580 = arith.mulf %579, %579 : vector<4x2xf32>
    %cst_191 = arith.constant dense<0.000000e+00> : vector<4xf32>
    %581 = vector.multi_reduction <add>, %580, %cst_191 [1] : vector<4x2xf32> to vector<4xf32>
    %582 = vector.shape_cast %581 : vector<4xf32> to vector<4x1xf32>
    %583 = math.sqrt %582 : vector<4x1xf32>
    %584 = arith.addf %541, %583 : vector<4x1xf32>
    %585 = arith.subf %565, %566 : vector<4x2xf32>
    %586 = arith.mulf %585, %585 : vector<4x2xf32>
    %cst_192 = arith.constant dense<0.000000e+00> : vector<4xf32>
    %587 = vector.multi_reduction <add>, %586, %cst_192 [1] : vector<4x2xf32> to vector<4xf32>
    %588 = vector.shape_cast %587 : vector<4xf32> to vector<4x1xf32>
    %589 = math.sqrt %588 : vector<4x1xf32>
    %590 = arith.addf %547, %589 : vector<4x1xf32>
    %591 = vector.shape_cast %572 : vector<4x1xf32> to vector<1x4x1xf32>
    %cst_193 = arith.constant dense<0.000000e+00> : vector<1xf32>
    %592 = vector.multi_reduction <add>, %591, %cst_193 [1, 2] : vector<1x4x1xf32> to vector<1xf32>
    %593 = vector.shape_cast %592 : vector<1xf32> to vector<1x1x1xf32>
    %594 = vector.extract %593[0, 0, 0] : f32 from vector<1x1x1xf32>
    %595 = vector.broadcast %594 : f32 to vector<1x1xf32>
    %596 = vector.shape_cast %595 : vector<1x1xf32> to vector<1x1x1xf32>
    %597 = vector.broadcast %596 : vector<1x1x1xf32> to vector<1x8x128xf32>
    %c0_194 = arith.constant 0 : index
    %c0_195 = arith.constant 0 : index
    %c0_196 = arith.constant 0 : index
    %598 = vector.load %arg18[%c0_194, %c0_195, %c0_196] : memref<1x8x128xf32, #tpu.memory_space<vmem>>, vector<1x8x128xf32>
    tpu.vector_store %arg18[%c0_194, %c0_195, %c0_196], %597 {strides = array<i32>} : memref<1x8x128xf32, #tpu.memory_space<vmem>>, vector<1x8x128xf32>,
    %599 = vector.shape_cast %584 : vector<4x1xf32> to vector<1x4x1xf32>
    %cst_197 = arith.constant dense<0.000000e+00> : vector<1xf32>
    %600 = vector.multi_reduction <add>, %599, %cst_197 [1, 2] : vector<1x4x1xf32> to vector<1xf32>
    %601 = vector.shape_cast %600 : vector<1xf32> to vector<1x1x1xf32>
    %602 = vector.extract %601[0, 0, 0] : f32 from vector<1x1x1xf32>
    %603 = vector.broadcast %602 : f32 to vector<1x1xf32>
    %604 = vector.shape_cast %603 : vector<1x1xf32> to vector<1x1x1xf32>
    %605 = vector.broadcast %604 : vector<1x1x1xf32> to vector<1x8x128xf32>
    %c0_198 = arith.constant 0 : index
    %c0_199 = arith.constant 0 : index
    %c0_200 = arith.constant 0 : index
    %606 = vector.load %arg19[%c0_198, %c0_199, %c0_200] : memref<1x8x128xf32, #tpu.memory_space<vmem>>, vector<1x8x128xf32>
    tpu.vector_store %arg19[%c0_198, %c0_199, %c0_200], %605 {strides = array<i32>} : memref<1x8x128xf32, #tpu.memory_space<vmem>>, vector<1x8x128xf32>,
    %607 = vector.shape_cast %590 : vector<4x1xf32> to vector<1x4x1xf32>
    %cst_201 = arith.constant dense<0.000000e+00> : vector<1xf32>
    %608 = vector.multi_reduction <add>, %607, %cst_201 [1, 2] : vector<1x4x1xf32> to vector<1xf32>
    %609 = vector.shape_cast %608 : vector<1xf32> to vector<1x1x1xf32>
    %610 = vector.extract %609[0, 0, 0] : f32 from vector<1x1x1xf32>
    %611 = vector.broadcast %610 : f32 to vector<1x1xf32>
    %612 = vector.shape_cast %611 : vector<1x1xf32> to vector<1x1x1xf32>
    %613 = vector.broadcast %612 : vector<1x1x1xf32> to vector<1x8x128xf32>
    %c0_202 = arith.constant 0 : index
    %c0_203 = arith.constant 0 : index
    %c0_204 = arith.constant 0 : index
    %614 = vector.load %arg20[%c0_202, %c0_203, %c0_204] : memref<1x8x128xf32, #tpu.memory_space<vmem>>, vector<1x8x128xf32>
    tpu.vector_store %arg20[%c0_202, %c0_203, %c0_204], %613 {strides = array<i32>} : memref<1x8x128xf32, #tpu.memory_space<vmem>>, vector<1x8x128xf32>,
    return
  }
  func.func @transform_0(%arg0: i32) -> (i32, i32, i32) {
    %c0_i32 = arith.constant 0 : i32
    %c0_i32_0 = arith.constant 0 : i32
    %c0_i32_1 = arith.constant 0 : i32
    %c0_i32_2 = arith.constant 0 : i32
    return %c0_i32, %c0_i32_0, %c0_i32_1 : i32, i32, i32
  }
  func.func @transform_1(%arg0: i32) -> (i32, i32, i32, i32) {
    %c0_i32 = arith.constant 0 : i32
    %c0_i32_0 = arith.constant 0 : i32
    %c0_i32_1 = arith.constant 0 : i32
    %c0_i32_2 = arith.constant 0 : i32
    return %arg0, %c0_i32, %c0_i32_0, %c0_i32_1 : i32, i32, i32, i32
  }
  func.func @transform_2(%arg0: i32) -> (i32, i32, i32, i32) {
    %c0_i32 = arith.constant 0 : i32
    %c0_i32_0 = arith.constant 0 : i32
    %c0_i32_1 = arith.constant 0 : i32
    %c0_i32_2 = arith.constant 0 : i32
    return %arg0, %c0_i32, %c0_i32_0, %c0_i32_1 : i32, i32, i32, i32
  }
  func.func @transform_3(%arg0: i32) -> (i32, i32, i32) {
    %c0_i32 = arith.constant 0 : i32
    %c0_i32_0 = arith.constant 0 : i32
    %c0_i32_1 = arith.constant 0 : i32
    return %arg0, %c0_i32, %c0_i32_0 : i32, i32, i32
  }
  func.func @transform_4(%arg0: i32) -> (i32, i32, i32) {
    %c0_i32 = arith.constant 0 : i32
    %c0_i32_0 = arith.constant 0 : i32
    %c0_i32_1 = arith.constant 0 : i32
    return %arg0, %c0_i32, %c0_i32_0 : i32, i32, i32
  }
  func.func @transform_5(%arg0: i32) -> (i32, i32, i32) {
    %c0_i32 = arith.constant 0 : i32
    %c0_i32_0 = arith.constant 0 : i32
    %c0_i32_1 = arith.constant 0 : i32
    return %arg0, %c0_i32, %c0_i32_0 : i32, i32, i32
  }
  func.func @transform_6(%arg0: i32) -> (i32, i32, i32) {
    %c0_i32 = arith.constant 0 : i32
    %c0_i32_0 = arith.constant 0 : i32
    %c0_i32_1 = arith.constant 0 : i32
    return %arg0, %c0_i32, %c0_i32_0 : i32, i32, i32
  }
  func.func @transform_7(%arg0: i32) -> (i32, i32, i32) {
    %c0_i32 = arith.constant 0 : i32
    %c0_i32_0 = arith.constant 0 : i32
    %c0_i32_1 = arith.constant 0 : i32
    return %arg0, %c0_i32, %c0_i32_0 : i32, i32, i32
  }
  func.func @transform_8(%arg0: i32) -> (i32, i32, i32) {
    %c0_i32 = arith.constant 0 : i32
    %c0_i32_0 = arith.constant 0 : i32
    %c0_i32_1 = arith.constant 0 : i32
    return %arg0, %c0_i32, %c0_i32_0 : i32, i32, i32
  }
  func.func @transform_9(%arg0: i32) -> (i32, i32, i32) {
    %c0_i32 = arith.constant 0 : i32
    %c0_i32_0 = arith.constant 0 : i32
    %c0_i32_1 = arith.constant 0 : i32
    return %arg0, %c0_i32, %c0_i32_0 : i32, i32, i32
  }
  func.func @transform_10(%arg0: i32) -> (i32, i32, i32) {
    %c0_i32 = arith.constant 0 : i32
    %c0_i32_0 = arith.constant 0 : i32
    %c0_i32_1 = arith.constant 0 : i32
    return %arg0, %c0_i32, %c0_i32_0 : i32, i32, i32
  }
  func.func @transform_11(%arg0: i32) -> (i32, i32, i32) {
    %c0_i32 = arith.constant 0 : i32
    %c0_i32_0 = arith.constant 0 : i32
    %c0_i32_1 = arith.constant 0 : i32
    return %arg0, %c0_i32, %c0_i32_0 : i32, i32, i32
  }
  func.func @transform_12(%arg0: i32) -> (i32, i32, i32) {
    %c0_i32 = arith.constant 0 : i32
    %c0_i32_0 = arith.constant 0 : i32
    %c0_i32_1 = arith.constant 0 : i32
    return %arg0, %c0_i32, %c0_i32_0 : i32, i32, i32
  }
  func.func @transform_13(%arg0: i32) -> (i32, i32, i32) {
    %c0_i32 = arith.constant 0 : i32
    %c0_i32_0 = arith.constant 0 : i32
    %c0_i32_1 = arith.constant 0 : i32
    return %arg0, %c0_i32, %c0_i32_0 : i32, i32, i32
  }
  func.func @transform_14(%arg0: i32) -> (i32, i32, i32) {
    %c0_i32 = arith.constant 0 : i32
    %c0_i32_0 = arith.constant 0 : i32
    %c0_i32_1 = arith.constant 0 : i32
    return %arg0, %c0_i32, %c0_i32_0 : i32, i32, i32
  }
  func.func @transform_15(%arg0: i32) -> (i32, i32, i32) {
    %c0_i32 = arith.constant 0 : i32
    %c0_i32_0 = arith.constant 0 : i32
    %c0_i32_1 = arith.constant 0 : i32
    return %arg0, %c0_i32, %c0_i32_0 : i32, i32, i32
  }
  func.func @transform_16(%arg0: i32) -> (i32, i32, i32) {
    %c0_i32 = arith.constant 0 : i32
    %c0_i32_0 = arith.constant 0 : i32
    %c0_i32_1 = arith.constant 0 : i32
    return %arg0, %c0_i32, %c0_i32_0 : i32, i32, i32
  }
  func.func @transform_17(%arg0: i32) -> (i32, i32, i32) {
    %c0_i32 = arith.constant 0 : i32
    %c0_i32_0 = arith.constant 0 : i32
    %c0_i32_1 = arith.constant 0 : i32
    return %arg0, %c0_i32, %c0_i32_0 : i32, i32, i32
  }
  func.func @transform_18(%arg0: i32) -> (i32, i32, i32) {
    %c0_i32 = arith.constant 0 : i32
    %c0_i32_0 = arith.constant 0 : i32
    %c0_i32_1 = arith.constant 0 : i32
    return %arg0, %c0_i32, %c0_i32_0 : i32, i32, i32
  }
  func.func @transform_19(%arg0: i32) -> (i32, i32, i32) {
    %c0_i32 = arith.constant 0 : i32
    %c0_i32_0 = arith.constant 0 : i32
    %c0_i32_1 = arith.constant 0 : i32
    return %arg0, %c0_i32, %c0_i32_0 : i32, i32, i32
  }
}

</mosaic_0001>

<bundles_post_ra>
// kernel: tpu_custom_call.1
= control target key start
LH: loop header
LB: loop body
LE: loop exit
PB: predicated region body
PF: predicated region fallthrough
CT: control target
= control target key end

     0   :  { %s7299_s0 = inlined_call_operand.hbm [shape: f32[6,4,16], index: 0, kind: input, shape index: {}]   ;;  %s7300_s1 = inlined_call_operand.vmem [shape: f32[3,6,4,4], index: 1, kind: input, shape index: {}]   ;;  %s7301_s2 = inlined_call_operand.vmem [shape: f32[3,6,4,4], index: 2, kind: input, shape index: {}]   ;;  %s7302_s3 = inlined_call_operand.vmem [shape: f32[3,32,128], index: 3, kind: input, shape index: {}]   ;;  %s7303_s4 = inlined_call_operand.hbm [shape: f32[3,1,32], index: 4, kind: input, shape index: {}]   ;;  %s7304_s5 = inlined_call_operand.vmem [shape: f32[3,32,32], index: 5, kind: input, shape index: {}]   ;;  %s7305_s6 = inlined_call_operand.hbm [shape: f32[3,1,32], index: 6, kind: input, shape index: {}]   ;;  %s7306_s7 = inlined_call_operand.vmem [shape: f32[3,32,2], index: 7, kind: input, shape index: {}]   ;;  %s7307_s8 = inlined_call_operand.vmem [shape: f32[3,1,2], index: 8, kind: input, shape index: {}]   ;;  %s7308_s9 = inlined_call_operand.hbm [shape: f32[3,16,96], index: 9, kind: input, shape index: {}]   ;;  %s7309_s10 = inlined_call_operand.hbm [shape: f32[3,1,96], index: 10, kind: input, shape index: {}]   ;;  %s7310_s11 = inlined_call_operand.vmem [shape: f32[3,32,96], index: 11, kind: input, shape index: {}]   ;;  %s7311_s12 = inlined_call_operand.vmem [shape: f32[3,1,96], index: 12, kind: input, shape index: {}]   ;;  %s7312_s13 = inlined_call_operand.vmem [shape: f32[3,32,96], index: 13, kind: input, shape index: {}]   ;;  %s7313_s14 = inlined_call_operand.hbm [shape: f32[3,32,96], index: 14, kind: input, shape index: {}]   ;;  %s7314_s15 = inlined_call_operand.vmem [shape: f32[3,1,96], index: 15, kind: input, shape index: {}]   ;;  %s7315_s16 = inlined_call_operand.vmem [shape: f32[3,1,96], index: 16, kind: input, shape index: {}]   ;;  %s7316_s17 = inlined_call_operand.hbm [shape: f32[3,8,128], index: 17, kind: output, shape index: {0}]   ;;  %s7317_s18 = inlined_call_operand.hbm [shape: f32[3,8,128], index: 18, kind: output, shape index: {1}]   ;;  %s7318_s19 = inlined_call_operand.hbm [shape: f32[3,8,128], index: 19, kind: output, shape index: {2}]  }
   0x1   :  { %7344 = sst [smem:[#allocation29_spill]] %s7299_s0 }
   0x2   :  { %7345 = sst [smem:[#allocation30_spill]] %s7300_s1 }
   0x3   :  { %7346 = sst [smem:[#allocation31_spill]] %s7301_s2 }
   0x4   :  { %7347 = sst [smem:[#allocation32_spill]] %s7302_s3 }
   0x5   :  { %7348 = sst [smem:[#allocation33_spill]] %s7303_s4 }
   0x6   :  { %7349 = sst [smem:[#allocation34_spill]] %s7304_s5 }
   0x7   :  { %7350 = sst [smem:[#allocation35_spill]] %s7305_s6 }
   0x8   :  { %7351 = sst [smem:[#allocation36_spill]] %s7307_s8 }
   0x9   :  { %7352 = sst [smem:[#allocation37_spill]] %s7308_s9 }
   0xa   :  { %7353 = sst [smem:[#allocation38_spill]] %s7312_s13 }
   0xb   :  { %7354 = sst [smem:[#allocation39_spill]] %s7314_s15 }
   0xc   :  { %7355 = sst [smem:[#allocation40_spill]] %s7315_s16 }
   0xd   :  { %7356 = sst [smem:[#allocation41_spill]] %s7316_s17 }
   0xe   :  { %7357 = sst [smem:[#allocation42_spill]] %s7317_s18 }
   0xf   :  { %7358 = sst [smem:[#allocation43_spill]] %s7318_s19 }
  0x10   :  { %25 = vsyncpa [#allocation3], 0 }
  0x11   :  { %26 = vsyncpa [#allocation6], 0 }
  0x12   :  { %28 = vsyncpa [#allocation6 + $0x1], 0 }
  0x13   :  { %29 = vsyncpa [#allocation9], 0 }
  0x14   :  { %31 = vsyncpa [#allocation9 + $0x1], 0 }
  0x15   :  { %32 = vsyncpa [#allocation12], 0 }
  0x16   :  { %34 = vsyncpa [#allocation12 + $0x1], 0 }
  0x17   :  { %35 = vsyncpa [#allocation4], 0 }
  0x18   :  { %37 = vsyncpa [#allocation4 + $0x1], 0 }
  0x19   :  { %38 = vsyncpa [#allocation15], 0 }
  0x1a   :  { %40 = vsyncpa [#allocation15 + $0x1], 0  ;;  %s6290_s0 = smov 0   ;;  %s6292_s30 = smov 0  }
  0x1b   :  { %s6294_s20 = smov 0   ;;  %s6296_s21 = smov 0  }
  0x1c LB: > { %7359 = sst [smem:[#allocation23_spill]] %s6157_s0  ;;  %s6311_s1 = sadd.s32 1, %s6169_s21   ;;  %s6169_s21 = sphi %s6296_s21, %s7409_s21   ;;  %s6165_s20 = sphi %s6294_s20, %s7411_s20   ;;  %s6161_s30 = sphi %s6292_s30, %s7413_s30   ;;  %s6157_s0 = sphi %s6290_s0, %s7412_s0  }
  0x1d   : > { %7360 = sst [smem:[#allocation24_spill]] %s6165_s20  ;;  %s152_s22 = sadd.s32 1, %s6165_s20 }
  0x1e   : > { %7361 = sst [smem:[#allocation25_spill]] %s6311_s1  ;;  %s149_s2 = ssub.s32 %s6169_s21, %s6311_s1 }
  0x1f   : > { %p7325_p0 = scmp.ne.s32.totalorder %s6165_s20, %s6161_s30  ;;  %p150_p1 = scmp.eq.s32.totalorder %s149_s2, 0 }
  0x20   : > { %p160_p2 = scmp.eq.s32.totalorder %s6169_s21, 0  ;;  %p5725_p3 = scmp.lt.s32.totalorder %s6169_s21, 3 }
  0x21   : > { %s6321_s23 = scalar_select %p150_p1, %s6165_s20, %s152_s22  }
  0x22   : > { %p161_p4 = por %p160_p2, %p7325_p0  ;;  %s6328_s25 = sand.u32 1, %s6165_s20  }
  0x23   : > { %7362 = sst [smem:[#allocation26_spill]] %s6321_s23  ;;  %s6331_s3 = sshll.u32 %s6169_s21, 4 }
  0x24   : > { %s7363_s4 = sld [smem:[#allocation33_spill]]  ;;  %s619_s29 = scalar_lea.vmem [#allocation5], %s6328_s25 }
  0x25   : > { %s626_s22 = sshll.u32 %s619_s29, 4  ;;  %p6342_p5 = pnand %p5725_p3, %p161_p4  ;;  %s6340_s22 = int_to_ptr.vmem [resolvable:$true] %s626_s22 }
  0x26   : > { %s7365_s23 = sand.u32 1, %s6169_s21  }
  0x27   : > { %s7364_s2 = scalar_select %p6342_p5, 1, 0 }
  0x28   : > { %s6349_s1 = scalar_lea.sflag [#allocation6], %s7365_s23  ;;  %p6355_p7 = pneg %p6342_p5 }
  0x2a   : > { %s6337_s28 = scalar_lea.hbm %s7363_s4, %s6331_s3  ;;  %s5858_s18 = scalar_lea.hbm %s7363_s4, 48 }
  0x2b   : > { %s5853_s26 = scalar_lea.hbm %s6337_s28, 16  ;;  %p5859_p10 = scmp.lt.u32.totalorder %s6337_s28, %s7363_s4 }
  0x2c   : > { %p5854_p6 = scmp.ne.s32.totalorder %s6337_s28, %s5853_s26  ;;  %p5860_p11 = scmp.lt.u32.totalorder %s5858_s18, %s5853_s26 }
  0x2d   : > { %s7366_s27 = scalar_select %p6355_p7, 1, 0 }
  0x2e   : > { %p5856_p8 = pnand %p6355_p7, %p5854_p6  ;;  %p5861_p12 = por %p5860_p11, %p5859_p10 }
  0x2f   : > { %p5862_p13 = scmp.lt.u32.totalorder %s5853_s26, %s6337_s28 }
  0x30   : > { %p5857_p9 = pneg %p5856_p8 }
  0x31   : > { %p5863_p1 = por %p5862_p13, %p5861_p12 }
  0x33   : > { %p5864_p2 = pnand %p5863_p1, %p5857_p9 }
  0x35   : > { %5867 = shalt.err (!%p5864_p2)
}
  0x36   : > { %s5868_s23 = scalar_lea.vmem %s6340_s22, 16  ;;  %s6171_s19 = smov [#allocation5]  }
  0x37   : > { %p5869_p3 = scmp.ne.s32.totalorder %s6340_s22, %s5868_s23  ;;  %s5873_s29 = sshll.u32 %s6171_s19, 4  ;;  %s5874_s29 = int_to_ptr.vmem [resolvable:$false] %s5873_s29 }
  0x38   : > { %s5875_s17 = scalar_lea.vmem %s5874_s29, 32  ;;  %p5876_p8 = scmp.lt.s32.totalorder %s6340_s22, %s5874_s29 }
  0x39   : > { %p5871_p4 = pnand %p5869_p3, %p6355_p7  ;;  %p5877_p0 = scmp.lt.s32.totalorder %s5875_s17, %s5868_s23 }
  0x3b   : > { %p5872_p6 = pneg %p5871_p4  ;;  %p5878_p10 = por %p5877_p0, %p5876_p8 }
  0x3d   : > { %p5879_p11 = pnand %p5878_p10, %p5872_p6 }
  0x3f   : > { %5882 = shalt.err (!%p5879_p11)
}
  0x40   : > { %5701 = dma.hbm_to_vmem [thread:$0]  (!%p6342_p5), %s6337_s28, 16, %s6340_s22, %s6349_s1  }
  0x41   : > { %s4869_s18 = sshll.u32 %s6169_s21, 8  ;;  %s7367_s24 = sshll.u32 %s6328_s25, 4 }
  0x42   : > { %s676_s26 = scalar_lea.vmem [#allocation8], %s7367_s24  ;;  %s7368_s9 = sld [smem:[#allocation37_spill]] }
  0x43   : > { %s683_s19 = sshll.u32 %s676_s26, 4  ;;  %s7369_s17 = sand.u32 1, %s6169_s21   ;;  %s6387_s19 = int_to_ptr.vmem [resolvable:$true] %s683_s19 }
  0x44   : > { %s6391_s8 = scalar_lea.sflag [#allocation9], %s7369_s17 }
  0x48   : > { %s6385_s23 = scalar_lea.hbm %s7368_s9, %s4869_s18  ;;  %s5888_s4 = scalar_lea.hbm %s7368_s9, 768 }
  0x49   : > { %s5883_s15 = scalar_lea.hbm %s6385_s23, 256  ;;  %p5889_p13 = scmp.lt.u32.totalorder %s6385_s23, %s7368_s9 }
  0x4a   : > { %p5884_p0 = scmp.ne.s32.totalorder %s6385_s23, %s5883_s15  ;;  %p5890_p1 = scmp.lt.u32.totalorder %s5888_s4, %s5883_s15 }
  0x4b   : > { %p5892_p3 = scmp.lt.u32.totalorder %s5883_s15, %s6385_s23 }
  0x4c   : > { %p5886_p9 = pnand %p5884_p0, %p6355_p7  ;;  %p5891_p2 = por %p5890_p1, %p5889_p13 }
  0x4e   : > { %p5887_p12 = pneg %p5886_p9  ;;  %p5893_p4 = por %p5892_p3, %p5891_p2 }
  0x50   : > { %p5894_p6 = pnand %p5893_p4, %p5887_p12 }
  0x52   : > { %5897 = shalt.err (!%p5894_p6)
}
  0x53   : > { %s5898_s26 = scalar_lea.vmem %s6387_s19, 256  ;;  %s6172_s29 = smov [#allocation8]  }
  0x54   : > { %p5899_p8 = scmp.ne.s32.totalorder %s6387_s19, %s5898_s26  ;;  %s5903_s17 = sshll.u32 %s6172_s29, 4  ;;  %s5904_s17 = int_to_ptr.vmem [resolvable:$false] %s5903_s17 }
  0x55   : > { %s5905_s28 = scalar_lea.vmem %s5904_s17, 512  ;;  %p5906_p0 = scmp.lt.s32.totalorder %s6387_s19, %s5904_s17 }
  0x56   : > { %p5901_p10 = pnand %p5899_p8, %p6355_p7  ;;  %p5907_p9 = scmp.lt.s32.totalorder %s5905_s28, %s5898_s26 }
  0x58   : > { %p5902_p11 = pneg %p5901_p10  ;;  %p5908_p13 = por %p5907_p9, %p5906_p0 }
  0x5a   : > { %p5909_p1 = pnand %p5908_p13, %p5902_p11 }
  0x5c   : > { %5912 = shalt.err (!%p5909_p1)
}
  0x5d   : > { %s7327_s15 = smov 128   ;;  %s7328_s22 = smov 8  }
  0x5e   : > { %5707 = dma.hbm_to_vmem [thread:$0]  (!%p6342_p5), %s6385_s23, 256, %s6387_s19, %s6391_s8, %s7327_s15, %s7327_s15, %s7328_s22  }
  0x5f   : > { %s6419_s4 = sadd.s32 4294967295, %s6169_s21   ;;  %s7326_s18 = sadd.s32 4294967294, %s6169_s21  }
  0x60   : > { %p165_p12 = scmp.ne.s32.totalorder %s6161_s30, %s6157_s0  ;;  %p7334_p2 = scmp.eq.s32.totalorder %s6419_s4, 0 }
  0x61   : > { %p501_p3 = scmp.eq.s32.totalorder %s6419_s4, 2  ;;  %p507_p4 = scmp.eq.s32.totalorder %s7326_s18, 2 }
  0x62   : > { %p6430_p6 = por %p7334_p2, %p165_p12  ;;  %p4769_p8 = scmp.ge.s32.totalorder %s6169_s21, 1 }
  0x63   : > { %p7371_p10 = scmp.ne.s32.totalorder %s6165_s20, %s6161_s30  ;;  %p6442_p0 = por %p507_p4, %p165_p12 }
  0x64   : > { %s7370_s24 = scalar_select %p6430_p6, 1, 0 }
  0x65   : > { %p6438_p11 = por %p501_p3, %p7371_p10  ;;  %p566_p9 = scmp.lt.s32.totalorder %s6169_s21, 4 }
  0x66   : > { %s7374_s23 = scalar_select %p6442_p0, 1, 0 }
  0x67   : > { %s7372_s19 = scalar_select %p6438_p11, 1, 0 }
  0x68   : > { %7375 = sst [smem:[#allocation28_spill]] %s7374_s23  ;;  %p6447_p13 = pnand %p4769_p8, %p566_p9 }
  0x69   : > { %7373 = sst [smem:[#allocation27_spill]] %s7372_s19  ;;  %s6175_s29 = smov [#allocation2]  }
  0x6a   : > { %s7376_s26 = scalar_select %p6447_p13, 1, 0 }
  0x6b   : > { %s578_s17 = sshll.u32 %s6175_s29, 4  ;;  %p5694_p1 = pneg %p6447_p13  ;;  %s6451_s17 = int_to_ptr.vmem [resolvable:$true] %s578_s17 }
  0x6c   : > { %s7377_s6 = sld [smem:[#allocation35_spill]]  ;;  %s644_s22 = scalar_lea.vmem [#allocation7], %s6328_s25 }
  0x6d   : > { %s651_s9 = sshll.u32 %s644_s22, 4  ;;  %p6464_p12 = pnand %p5694_p1, %p7334_p2  ;;  %s652_s9 = int_to_ptr.vmem [resolvable:$true] %s651_s9 }
  0x6f   : > { %s7378_s20 = scalar_select %p6464_p12, 1, 0 }
  0x72   : > { %s6459_s15 = scalar_lea.hbm %s7377_s6, %s6331_s3  ;;  %s5918_s23 = scalar_lea.hbm %s7377_s6, 48 }
  0x73   : > { %s5913_s29 = scalar_lea.hbm %s6459_s15, 16  ;;  %p5919_p10 = scmp.lt.u32.totalorder %s6459_s15, %s7377_s6 }
  0x74   : > { %p5914_p3 = scmp.ne.s32.totalorder %s6459_s15, %s5913_s29  ;;  %p5920_p9 = scmp.lt.u32.totalorder %s5918_s23, %s5913_s29 }
  0x75   : > { %p5922_p1 = scmp.lt.u32.totalorder %s5913_s29, %s6459_s15 }
  0x76   : > { %p5916_p4 = pnand %p5914_p3, %p6355_p7  ;;  %p5921_p0 = por %p5920_p9, %p5919_p10 }
  0x78   : > { %p5917_p8 = pneg %p5916_p4  ;;  %p5923_p2 = por %p5922_p1, %p5921_p0 }
  0x7a   : > { %p5924_p11 = pnand %p5923_p2, %p5917_p8 }
  0x7c   : > { %5927 = shalt.err (!%p5924_p11)
}
  0x7d   : > { %s5928_s22 = scalar_lea.vmem %s652_s9, 16  ;;  %s6176_s16 = smov [#allocation7]  }
  0x7e   : > { %p5929_p6 = scmp.ne.s32.totalorder %s652_s9, %s5928_s22  ;;  %s5933_s13 = sshll.u32 %s6176_s16, 4  ;;  %s5934_s13 = int_to_ptr.vmem [resolvable:$false] %s5933_s13 }
  0x7f   : > { %s5935_s18 = scalar_lea.vmem %s5934_s13, 32  ;;  %p5936_p13 = scmp.lt.s32.totalorder %s652_s9, %s5934_s13 }
  0x80   : > { %p5931_p3 = pnand %p5929_p6, %p6355_p7  ;;  %p5937_p12 = scmp.lt.s32.totalorder %s5935_s18, %s5928_s22 }
  0x82   : > { %p5932_p4 = pneg %p5931_p3  ;;  %p5938_p5 = por %p5937_p12, %p5936_p13 }
  0x84   : > { %p5939_p9 = pnand %p5938_p5, %p5932_p4 }
  0x86   : > { %5942 = shalt.err (!%p5939_p9)
}
  0x87   : > { %p7379_p10 = scmp.ne.s32.totalorder %s7364_s2, 0  ;;  %s7380_s23 = sld [smem:[#allocation29_spill]] }
  0x88   : > { %p7381_p6 = scmp.ne.s32.totalorder %s7378_s20, 0 }
  0x89   : > { %5704 = dma.hbm_to_vmem [thread:$0]  (!%p7379_p10), %s6459_s15, 16, %s652_s9, %s6349_s1  }
  0x8a   : > { %p5945_p11 = pneg %p7381_p6 }
  0x8d   : > { %s5943_s29 = scalar_lea.hbm %s7380_s23, 384 }
  0x8e   : > { %p5944_p2 = scmp.ne.s32.totalorder %s7380_s23, %s5943_s29  ;;  %p5950_p5 = scmp.lt.u32.totalorder %s5943_s29, %s7380_s23 }
  0x90   : > { %p5946_p0 = pnand %p5945_p11, %p5944_p2 }
  0x92   : > { %p5947_p13 = pneg %p5946_p0 }
  0x94   : > { %p5952_p12 = pnand %p5950_p5, %p5947_p13 }
  0x96   : > { %5955 = shalt.err (!%p5952_p12)
}
  0x97   : > { %s5956_s9 = scalar_lea.vmem %s6451_s17, 384  ;;  %p5964_p4 = scmp.lt.s32.totalorder %s6451_s17, %s6451_s17 }
  0x98   : > { %p5957_p8 = scmp.ne.s32.totalorder %s6451_s17, %s5956_s9  ;;  %p5965_p9 = scmp.lt.s32.totalorder %s5956_s9, %s5956_s9 }
  0x9a   : > { %p5959_p1 = pnand %p5957_p8, %p5945_p11  ;;  %p5966_p10 = por %p5965_p9, %p5964_p4 }
  0x9c   : > { %p5960_p3 = pneg %p5959_p1 }
  0x9e   : > { %p5967_p7 = pnand %p5966_p10, %p5960_p3 }
  0xa0   : > { %5970 = shalt.err (!%p5967_p7)
}
  0xa1   : > { %s6177_s6 = smov 64   ;;  %s6178_s1 = smov 4  }
  0xa2   : > { %5697 = dma.hbm_to_vmem [thread:$0]  (!%p7381_p6), %s7380_s23, 384, %s6451_s17, [#allocation3], %s6177_s6, %s6177_s6, %s6178_s1  }
  0xa3   : > { %s6511_s19 = scalar_lea.hbm %s7309_s10, %s6331_s3  ;;  %s696_s29 = scalar_lea.vmem [#allocation10], %s6328_s25 }
  0xa4   : > { %s703_s28 = sshll.u32 %s696_s29, 4  ;;  %s5971_s13 = scalar_lea.hbm %s6511_s19, 16  ;;  %s704_s28 = int_to_ptr.vmem [resolvable:$true] %s703_s28 }
  0xa5   : > { %p5972_p7 = scmp.ne.s32.totalorder %s6511_s19, %s5971_s13  ;;  %p7382_p10 = scmp.ne.s32.totalorder %s7366_s27, 0 }
  0xa6   : > { %s5976_s17 = scalar_lea.hbm %s7309_s10, 48  ;;  %p5977_p6 = scmp.lt.u32.totalorder %s6511_s19, %s7309_s10 }
  0xa7   : > { %p5974_p2 = pnand %p5972_p7, %p7382_p10  ;;  %p5978_p0 = scmp.lt.u32.totalorder %s5976_s17, %s5971_s13 }
  0xa8   : > { %p5980_p5 = scmp.lt.u32.totalorder %s5971_s13, %s6511_s19 }
  0xa9   : > { %p5975_p11 = pneg %p5974_p2  ;;  %p5979_p13 = por %p5978_p0, %p5977_p6 }
  0xab   : > { %p5981_p12 = por %p5980_p5, %p5979_p13 }
  0xad   : > { %p5982_p8 = pnand %p5981_p12, %p5975_p11 }
  0xaf   : > { %5985 = shalt.err (!%p5982_p8)
}
  0xb0   : > { %s5986_s3 = scalar_lea.vmem %s704_s28, 16  ;;  %s6179_s1 = smov [#allocation10]  }
  0xb1   : > { %p5987_p1 = scmp.ne.s32.totalorder %s704_s28, %s5986_s3  ;;  %s5991_s15 = sshll.u32 %s6179_s1, 4  ;;  %s5992_s15 = int_to_ptr.vmem [resolvable:$false] %s5991_s15 }
  0xb2   : > { %s5993_s22 = scalar_lea.vmem %s5992_s15, 32  ;;  %p5994_p9 = scmp.lt.s32.totalorder %s704_s28, %s5992_s15 }
  0xb3   : > { %p5989_p3 = pnand %p5987_p1, %p7382_p10  ;;  %p5995_p7 = scmp.lt.s32.totalorder %s5993_s22, %s5986_s3 }
  0xb5   : > { %p5990_p4 = pneg %p5989_p3  ;;  %p5996_p2 = por %p5995_p7, %p5994_p9 }
  0xb7   : > { %p5997_p0 = pnand %p5996_p2, %p5990_p4 }
  0xb9   : > { %6000 = shalt.err (!%p5997_p0)
}
  0xba   : > { %p7383_p6 = scmp.ne.s32.totalorder %s7364_s2, 0  ;;  %s4778_s18 = sshll.u32 %s6328_s25, 5 }
  0xbb   : > { %s4870_s0 = sshll.u32 %s6169_s21, 9  ;;  %s736_s16 = scalar_lea.vmem [#allocation11], %s4778_s18 }
  0xbc   : > { %5710 = dma.hbm_to_vmem [thread:$0]  (!%p7383_p6), %s6511_s19, 16, %s704_s28, %s6391_s8  }
  0xbd   : > { %s6537_s20 = scalar_lea.hbm %s7313_s14, %s4870_s0  ;;  %s743_s17 = sshll.u32 %s736_s16, 4  ;;  %s6539_s17 = int_to_ptr.vmem [resolvable:$true] %s743_s17 }
  0xbe   : > { %s733_s9 = scalar_lea.sflag [#allocation12], %s6328_s25  ;;  %s6001_s6 = scalar_lea.hbm %s6537_s20, 512 }
  0xbf   : > { %p6002_p11 = scmp.ne.s32.totalorder %s6537_s20, %s6001_s6  ;;  %s6006_s28 = scalar_lea.hbm %s7313_s14, 1536 }
  0xc0   : > { %p6007_p12 = scmp.lt.u32.totalorder %s6537_s20, %s7313_s14  ;;  %p6008_p8 = scmp.lt.u32.totalorder %s6006_s28, %s6001_s6 }
  0xc1   : > { %p6004_p13 = pnand %p6002_p11, %p7382_p10  ;;  %p6010_p3 = scmp.lt.u32.totalorder %s6001_s6, %s6537_s20 }
  0xc2   : > { %p6009_p1 = por %p6008_p8, %p6007_p12 }
  0xc3   : > { %p6005_p5 = pneg %p6004_p13 }
  0xc4   : > { %p6011_p4 = por %p6010_p3, %p6009_p1 }
  0xc6   : > { %p6012_p9 = pnand %p6011_p4, %p6005_p5 }
  0xc8   : > { %6015 = shalt.err (!%p6012_p9)
}
  0xc9   : > { %s6016_s15 = scalar_lea.vmem %s6539_s17, 512  ;;  %s6180_s22 = smov [#allocation11]  }
  0xca   : > { %p6017_p7 = scmp.ne.s32.totalorder %s6539_s17, %s6016_s15  ;;  %s6021_s18 = sshll.u32 %s6180_s22, 4  ;;  %s6022_s18 = int_to_ptr.vmem [resolvable:$false] %s6021_s18 }
  0xcb   : > { %s6023_s0 = scalar_lea.vmem %s6022_s18, 1024  ;;  %p6024_p11 = scmp.lt.s32.totalorder %s6539_s17, %s6022_s18 }
  0xcc   : > { %p6019_p2 = pnand %p6017_p7, %p7382_p10  ;;  %p6025_p13 = scmp.lt.s32.totalorder %s6023_s0, %s6016_s15 }
  0xce   : > { %p6020_p0 = pneg %p6019_p2  ;;  %p6026_p12 = por %p6025_p13, %p6024_p11 }
  0xd0   : > { %p6027_p8 = pnand %p6026_p12, %p6020_p0 }
  0xd2   : > { %6030 = shalt.err (!%p6027_p8)
}
  0xd3   : > { %s7384_s29 = smov 8   ;;  %s7385_s13 = smov 128  }
  0xd4   : > { %5713 = dma.hbm_to_vmem [thread:$0]  (!%p7383_p6), %s6537_s20, 512, %s6539_s17, %s733_s9, %s7385_s13, %s7385_s13, %s7384_s29  }
  0xd5   : > { %p7386_p10 = scmp.ne.s32.totalorder %s7376_s26, 0 }
  0xd6   : > { %p7387_p5 = scmp.eq.s32.totalorder (!%p7386_p10), %s6419_s4, 0 }
  0xd7   : > { %767 = sbr.rel (%p7386_p10) target bundleno = 9817 (0x2659), region = 88 }
  0xde   : > { %6132 = dma.done.wait (%p7387_p5), [#allocation3], 384   ;;  %p7388_p1 = pmov %p7387_p5 }
  0xdf   : > { %s6575_s2 = sand.u32 1, %s6419_s4   ;;  %s6578_s27 = sand.u32 1, %s6161_s30  }
  0xe0   : > { %6134 = vsyncadd (%p7388_p1), [#allocation3], 4294966912  ;;  %s774_s25 = scalar_lea.sflag [#allocation6], %s6575_s2  ;;  %s776_s20 = scalar_lea.vmem [#allocation5], %s6578_s27 }
  0xe1   : > { %p7389_p6 = scmp.ne.s32.totalorder %s7370_s24, 0 }
  0xe3   : > { %6136 = dma.done.wait (%p7389_p6), %s774_s25, 32  }
  0xe4   : > { %6138 = vsyncadd (%p7389_p6), %s774_s25, 4294967264  ;;  %s4783_s26 = sshll.u32 %s6578_s27, 4  ;;  %s784_s16 = scalar_lea.vmem [#allocation7], %s6578_s27 }
  0xe5   : > { %s790_s17 = scalar_lea.sflag [#allocation9], %s6575_s2  ;;  %s6589_s9 = scalar_lea.vmem [#allocation8], %s4783_s26 }
  0xe6   : > { %6140 = dma.done.wait (%p7389_p6), %s790_s17, 272  }
  0xe7   : > { %6142 = vsyncadd (%p7389_p6), %s790_s17, 4294967024  ;;  %s4784_s6 = sshll.u32 %s6578_s27, 5  ;;  %s801_s8 = scalar_lea.vmem [#allocation10], %s6578_s27 }
  0xe8   : > { %s807_s19 = scalar_lea.sflag [#allocation12], %s6578_s27  ;;  %s6598_s28 = scalar_lea.vmem [#allocation11], %s4784_s6 }
  0xe9   : > { %6144 = dma.done.wait (%p7389_p6), %s807_s19, 512  }
  0xea   : > { %6146 = vsyncadd (%p7389_p6), %s807_s19, 4294966784  ;;  %p939_p3 = scmp.lt.s32.totalorder %s6419_s4, 2  ;;  %v6181_v0 = vmov 0.0|0.0   ;;  %vm6182_vm0 = vmmov 0   ;;  %v6183_v1 = vmov 0.0   ;;  %s7390_s22 = sld [smem:[#allocation32_spill]] }
  0xeb   : > { %5454 = vmatprep.subr.bf16.mxu0 %v6181_v0  ;;  %5064 = vmatprep.mubr.msk.f32.mxu0 %vm6182_vm0, %v6183_v1  ;;  %s7391_s5 = sld [smem:[#allocation34_spill]]  ;;  %v6658_v17 = vld [vmem:[%s776_s20] ss:$0 sm:$0xff]  ;;  %v1002_v19 = vld [vmem:[%s6589_s9 + $0x8] sm:$0xff]  ;;  %s6184_s15 = smov 96   ;;  %vm1021_vm1 = vcmask 261120  }
  0xec   : > { %s6609_s3 = scalar_select %p939_p3, %s6419_s4, 2  ;;  %5460 = vmatprep.subr.bf16.mxu1 %v6181_v0  ;;  %5075 = vmatprep.mubr.msk.f32.mxu1 %vm6182_vm0, %v6183_v1  ;;  %v1001_v18 = vld [vmem:[%s6589_s9] sm:$0xff]  ;;  %vm1266_vm2 = vcmask 130048   ;;  %vm1638_vm3 = vcmask 11264   ;;  %vm4341_vm12 = vcmask 3072  }
  0xed   : > { %v6668_v23 = vpack.c.bf16 %v1002_v19, %v1001_v18  ;;  %v1019_v27 = vld [vmem:[#allocation2] sm:$0xf]  ;;  %s6185_s0 = smov 64   ;;  %v1014_v62 = vld [vmem:[%s6598_s28 + $0x8] sm:$0xff]  ;;  %v1015_v63 = vld [vmem:[%s6598_s28 + $0x10] sm:$0xff]  ;;  %s7393_s26 = sld [smem:[#allocation40_spill]] }
  0xee   : > { %s6615_s24 = sshll.u32 %s6609_s3, 5  ;;  %v6697_v35 = vld [vmem:[%s784_s16] ss:$0 sm:$0xff]  ;;  %s7395_s29 = sld [smem:[#allocation31_spill]] }
  0xef   : > { %s6648_s17 = scalar_lea.vmem %s7306_s7, %s6615_s24  ;;  %s971_s1 = scalar_lea.vmem %s7310_s11, %s6615_s24  ;;  %v6713_v48 = vld [vmem:[%s801_s8] ss:$0 sm:$0xff] }
  0xf0   : > { %s953_s18 = scalar_lea.vmem %s7390_s22, %s6615_s24  ;;  %v996_v14 = vld [vmem:[%s6648_s17] sm:$0xff]  ;;  %v997_v15 = vld [vmem:[%s6648_s17 + $0x8] sm:$0xff]  ;;  %v1006_v29 = vld [vmem:[%s971_s1 + $0x10] sm:$0xff]  ;;  %s5667_s22 = smul.u32 24, %s6609_s3 }
  0xf1   : > { %s958_s13 = scalar_lea.vmem %s7391_s5, %s6615_s24  ;;  %v986_v2 = vld [vmem:[%s953_s18] sm:$0xff]  ;;  %v987_v3 = vld [vmem:[%s953_s18 + $0x8] sm:$0xff]  ;;  %v988_v4 = vld [vmem:[%s953_s18 + $0x10] sm:$0xff]  ;;  %v6652_v16 = vpack.c.bf16 %v997_v15, %v996_v14  ;;  %s7397_s19 = sld [smem:[#allocation36_spill]] }
  0xf2   : > { %v6625_v5 = vpack.c.bf16 %v987_v3, %v986_v2  ;;  %v989_v6 = vld [vmem:[%s953_s18 + $0x18] sm:$0xff]  ;;  %v991_v7 = vld [vmem:[%s958_s13] sm:$0xff]  ;;  %v992_v8 = vld [vmem:[%s958_s13 + $0x8] sm:$0xff]  ;;  %s974_s18 = scalar_lea.vmem %s7311_s12, %s6609_s3  ;;  %s7398_s8 = sld [smem:[#allocation27_spill]] }
  0xf3   : > { %v6627_v9 = vpack.c.bf16 %v992_v8, %v991_v7  ;;  %v6630_v10 = vpack.c.bf16 %v989_v6, %v988_v4  ;;  %v993_v11 = vld [vmem:[%s958_s13 + $0x10] sm:$0xff]  ;;  %v994_v12 = vld [vmem:[%s958_s13 + $0x18] sm:$0xff]  ;;  %v1004_v25 = vld [vmem:[%s971_s1] sm:$0xff]  ;;  %s7392_s13 = sld [smem:[#allocation38_spill]]  ;;  %s7400_s6 = sld [smem:[#allocation42_spill]] }
  0xf4   : > { %5456 = vmatpush3.bf16.msra.mxu0 %v6625_v5  ;;  %v6640_v13 = vpack.c.bf16 %v994_v12, %v993_v11  ;;  %v1005_v26 = vld [vmem:[%s971_s1 + $0x8] sm:$0xff]  ;;  %v1007_v30 = vld [vmem:[%s971_s1 + $0x18] sm:$0xff]  ;;  %v998_v32 = vld [vmem:[%s6648_s17 + $0x10] sm:$0xff]  ;;  %s7394_s1 = sld [smem:[#allocation39_spill]] }
  0xf5   : > { %5457 = vmatprep.subr.bf16.mxu0 %v6181_v0  ;;  %5462 = vmatpush3.bf16.msra.mxu1 %v6627_v9  ;;  %v6674_v28 = vpack.c.bf16 %v1005_v26, %v1004_v25  ;;  %v6679_v31 = vpack.c.bf16 %v1007_v30, %v1006_v29  ;;  %v999_v33 = vld [vmem:[%s6648_s17 + $0x18] sm:$0xff]  ;;  %v6707_v42 = vld [vmem:[%s974_s18] ss:$0 sm:$0xff]  ;;  %s985_s17 = scalar_lea.vmem %s7393_s26, %s6609_s3  ;;  %s6186_s26 = smov 126  }
  0xf6   : > { %5463 = vmatprep.subr.bf16.mxu1 %v6181_v0  ;;  %v6691_v34 = vpack.c.bf16 %v999_v33, %v998_v32  ;;  %v1013_v61 = vld [vmem:[%s6598_s28] sm:$0xff]  ;;  %v1016_v3 = vld [vmem:[%s6598_s28 + $0x18] sm:$0xff]  ;;  %s7399_s28 = sld [smem:[#allocation41_spill]] }
  0xf7   : > { %v6726_v2 = vpack.c.bf16 %v1014_v62, %v1013_v61  ;;  %v6732_v12 = vpack.c.bf16 %v1016_v3, %v1015_v63 }
  0xf8   : > { %5459 = vmatpush3.bf16.msra.mxu0 %v6630_v10  ;;  %p7401_p9 = scmp.ne.s32.totalorder %s7398_s8, 0 }
  0xf9   : > { %5466 = vmatprep.subr.bf16.mxu0 %v6181_v0  ;;  %5465 = vmatpush3.bf16.msra.mxu1 %v6640_v13  ;;  %s979_s25 = scalar_lea.vmem %s7392_s13, %s6615_s24  ;;  %s7081_s13 = scalar_lea.vmem %s7395_s29, %s5667_s22 }
  0xfa   : > { %5472 = vmatprep.subr.bf16.mxu1 %v6181_v0  ;;  %v1009_v4 = vld [vmem:[%s979_s25] sm:$0xff]  ;;  %v1010_v6 = vld [vmem:[%s979_s25 + $0x8] sm:$0xff]  ;;  %v1011_v8 = vld [vmem:[%s979_s25 + $0x10] sm:$0xff]  ;;  %s982_s9 = scalar_lea.vmem %s7394_s1, %s6609_s3  ;;  %s7396_s24 = sld [smem:[#allocation30_spill]] }
  0xfb   : > { %5065 = vmatmul.mubr.f32.vlgmr.msra.gmra.mrb[0].mxu0 %v6183_v1  ;;  %v6729_v7 = vpack.c.bf16 %v1010_v6, %v1009_v4  ;;  %v1012_v11 = vld [vmem:[%s979_s25 + $0x18] sm:$0xff]  ;;  %v6777_v30 = vld [vmem:[%s982_s9] ss:$0 sm:$0xff]  ;;  %s966_s1 = scalar_lea.vmem %s7397_s19, %s6609_s3  ;;  %s6187_s25 = smov [#allocation13]  }
  0xfc   : > { %5086 = vmatprep.mubr.msk.f32.mxu0 %vm6182_vm0, %v6183_v1  ;;  %5468 = vmatpush3.bf16.msra.mxu0 %v6652_v16  ;;  %v6736_v14 = vpack.c.bf16 %v1012_v11, %v1011_v8 }
  0xfd   : > { %5469 = vmatprep.subr.bf16.mxu0 %v6181_v0 }
 0x100   : > { %5471 = vmatpush3.bf16.msra.mxu0 %v6691_v34 }
 0x101   : > { %5481 = vmatprep.subr.bf16.mxu0 %v6181_v0 }
 0x1ce   : > { %v1091_v20 = vpop.f32.mrb[0].mxu0 }
 0x1cf   : > { %v1101_v21 = vadd.f32 %v6658_v17, %v1091_v20  ;;  %1263 = vrot.lane.b32.xlu0 %v1091_v20, %s6184_s15  ;;  %v5066_v22 = vpop.f32.mrb[1].mxu0 }
 0x1d1   : > { %v1102_v24 = vmax.f32 %v1101_v21, 0.0 }
 0x1d3   : > { %5076 = vmatmul.mubr.msk.f32.vlgmr.msra.gmra.mrb[0].mxu1 %vm1021_vm1, %v1102_v24  ;;  %v6759_v24 = vld [vmem:[%s985_s17] ss:$0 sm:$0xff] }
 0x1d4   : > { %5474 = vmatpush3.bf16.msra.mxu1 %v6668_v23  ;;  %5093 = vmatprep.mubr.msk.f32.mxu1 %vm6182_vm0, %v6183_v1 }
 0x1d5   : > { %5475 = vmatprep.subr.bf16.mxu1 %v6181_v0 }
 0x1d7   : > { %5094 = vmatmul.mubr.msk.f32.vlgmr.msra.gmra.mrb[2].mxu1 %vm1266_vm2, %v1019_v27 }
 0x1d8   : > { %5477 = vmatpush3.bf16.msra.mxu1 %v6674_v28  ;;  %5104 = vmatprep.mubr.msk.f32.mxu1 %vm6182_vm0, %v6183_v1 }
 0x1d9   : > { %5478 = vmatprep.subr.bf16.mxu1 %v6181_v0 }
 0x1dc   : > { %5480 = vmatpush3.bf16.msra.mxu1 %v6679_v31 }
 0x1dd   : > { %5487 = vmatprep.subr.bf16.mxu1 %v6181_v0 }
 0x1df   : > { %5105 = vmatmul.mubr.f32.vlgmr.msra.gmra.mrb[4].mxu1 %v6183_v1 }
 0x1e0   : > { %5126 = vmatprep.mubr.msk.f32.mxu1 %vm6182_vm0, %v6183_v1  ;;  %5489 = vmatpush3.bf16.msra.mxu1 %v6726_v2 }
 0x1e1   : > { %5490 = vmatprep.subr.bf16.mxu1 %v6181_v0 }
 0x1e4   : > { %5492 = vmatpush3.bf16.msra.mxu1 %v6732_v12 }
 0x1e5   : > { %5499 = vmatprep.subr.bf16.mxu1 %v6181_v0 }
 0x1e7   : > { %5127 = vmatmul.mubr.f32.vlgmr.msra.gmra.mrb[6].mxu1 %v6183_v1 }
 0x1e8   : > { %5501 = vmatpush3.bf16.msra.mxu1 %v6627_v9  ;;  %5148 = vmatprep.mubr.msk.f32.mxu1 %vm6182_vm0, %v6183_v1 }
 0x1e9   : > { %5502 = vmatprep.subr.bf16.mxu1 %v6181_v0 }
 0x1ec   : > { %5504 = vmatpush3.bf16.msra.mxu1 %v6640_v13 }
 0x1ed   : > { %5511 = vmatprep.subr.bf16.mxu1 %v6181_v0 }
 0x241   : > { %v1264_v46 = vpop.permute.xlu0 %1263 }
 0x2a6   : > { %v1178_v36 = vpop.f32.mrb[0].mxu1 }
 0x2a7   : > { %v1179_v37 = vadd.f32 %v6697_v35, %v1178_v36  ;;  %v5077_v38 = vpop.f32.mrb[1].mxu1 }
 0x2a9   : > { %v1182_v39 = vmax.f32 %v1179_v37, 0.0 }
 0x2aa   : > { %v1336_v40 = vpop.f32.mrb[2].mxu1 }
 0x2ab   : > { %5087 = vmatmul.mubr.msk.f32.vlgmr.msra.gmra.mrb[2].mxu0 %vm1021_vm1, %v1182_v39  ;;  %v5095_v41 = vpop.f32.mrb[3].mxu1  ;;  %v1337_v47 = vadd.f32 %v1336_v40, %v1264_v46 }
 0x2ac   : > { %5115 = vmatprep.mubr.msk.f32.mxu0 %vm6182_vm0, %v6183_v1  ;;  %5483 = vmatpush3.bf16.msra.mxu0 %v6729_v7 }
 0x2ad   : > { %v1346_v49 = vadd.f32 %v6713_v48, %v1337_v47  ;;  %5484 = vmatprep.subr.bf16.mxu0 %v6181_v0 }
 0x2b0   : > { %5486 = vmatpush3.bf16.msra.mxu0 %v6736_v14 }
 0x2b1   : > { %5493 = vmatprep.subr.bf16.mxu0 %v6181_v0 }
 0x2b2   : > { %v1419_v43 = vpop.f32.mrb[4].mxu1 }
 0x2b3   : > { %v1420_v44 = vadd.f32 %v6707_v42, %v1419_v43  ;;  %v5106_v45 = vpop.f32.mrb[5].mxu1 }
 0x2b5   : > { %1431 = vrot.lane.b32.xlu0 %v1420_v44, %s6185_s0  ;;  %v1423_v50 = vadd.f32 %v1420_v44, %v1346_v49 }
 0x2b7   : > { %v4808_v51 = vmul.f32 -1.442695, %v1423_v50 }
 0x2b9   : > { %5771 = vpow2.f32 %v4808_v51 }
 0x2ba   : > { %v1602_v25 = vpop.f32.mrb[6].mxu1 }
 0x2bb   : > { %v1603_v26 = vadd.f32 %v6759_v24, %v1602_v25  ;;  %v5128_v27 = vpop.f32.mrb[7].mxu1 }
 0x2c3   : > { %v5772_v52 = vpop.eup %5771 }
 0x2c4   : > { %v1427_v53 = vadd.f32 1.0, %v5772_v52 }
 0x2c6   : > { %5773 = vrcp.f32 %v1427_v53 }
 0x2d0   : > { %v5774_v54 = vpop.eup %5773 }
 0x2d1   : > { %v1441_v18 = vsub.f32 1.0, %v5774_v54  ;;  %v1447_v20 = vmul.f32 0.0, %v5774_v54 }
 0x327   : > { %v1432_v55 = vpop.permute.xlu0 %1431 }
 0x328   : > { %v1434_v56 = vmul.f32 %v5774_v54, %v1432_v55 }
 0x32a   : > { %1436 = vrot.lane.b32.xlu1 %v1434_v56, %s6185_s0 }
 0x37e   : > { %v6717_v57 = vpop.f32.mrb[2].mxu0 }
 0x37f   : > { %v5088_v58 = vpop.f32.mrb[3].mxu0 }
 0x39c   : > { %v1437_v59 = vpop.permute.xlu1 %1436 }
 0x39d   : > { %v1439_v60 = vadd.f32 %v1437_v59, %v1346_v49 }
 0x39f   : > { %5775 = vtanh.f32 %v1439_v60  ;;  %v1651_v60 = vld [vmem:[#allocation2 + $0x4] sm:$0xf] }
 0x3a9   : > { %v5776_v15 = vpop.eup %5775 }
 0x3aa   : > { %1443 = vrot.lane.b32.xlu1 %v5776_v15, %s6184_s15 }
 0x3ae   : > { %1614 = vrot.lane.b32.xlu1 %v1603_v26, %s6185_s0 }
 0x41c   : > { %v1444_v19 = vpop.permute.xlu1 %1443 }
 0x41d   : > { %v1446_v21 = vmul.f32 %v1444_v19, %v1441_v18 }
 0x41f   : > { %v6751_v22 = vadd.f32 %v1447_v20, %v1446_v21 }
 0x420   : > { %v1615_v41 = vpop.permute.xlu1 %1614 }
 0x421   : > { %1456 = vrot.lane.b32.xlu0 %v6751_v22, %s6184_s15 }
 0x493   : > { %v6763_v29 = vpop.permute.xlu0 %1456 }
 0x494   : > { %5116 = vmatmul.mubr.msk.f32.vlgmr.msra.gmra.mrb[4].mxu0 %vm1021_vm1, %v6763_v29 }
 0x495   : > { %5495 = vmatpush3.bf16.msra.mxu0 %v6625_v5  ;;  %5137 = vmatprep.mubr.msk.f32.mxu0 %vm6182_vm0, %v6183_v1 }
 0x496   : > { %5496 = vmatprep.subr.bf16.mxu0 %v6181_v0 }
 0x499   : > { %5498 = vmatpush3.bf16.msra.mxu0 %v6630_v10 }
 0x49a   : > { %5505 = vmatprep.subr.bf16.mxu0 %v6181_v0 }
 0x567   : > { %v1526_v32 = vpop.f32.mrb[4].mxu0 }
 0x568   : > { %v1527_v33 = vadd.f32 %v6777_v30, %v1526_v32  ;;  %v5117_v36 = vpop.f32.mrb[5].mxu0 }
 0x56a   : > { %v1606_v37 = vadd.f32 %v1603_v26, %v1527_v33 }
 0x56c   : > { %v4812_v38 = vmul.f32 -1.442695, %v1606_v37 }
 0x56e   : > { %5777 = vpow2.f32 %v4812_v38 }
 0x578   : > { %v5778_v39 = vpop.eup %5777 }
 0x579   : > { %v1610_v40 = vadd.f32 1.0, %v5778_v39 }
 0x57b   : > { %5779 = vrcp.f32 %v1610_v40 }
 0x585   : > { %v5780_v43 = vpop.eup %5779 }
 0x586   : > { %v1617_v44 = vmul.f32 %v5780_v43, %v1615_v41  ;;  %v1624_v49 = vsub.f32 1.0, %v5780_v43  ;;  %v1630_v51 = vmul.f32 0.0, %v5780_v43 }
 0x588   : > { %1619 = vrot.lane.b32.xlu0 %v1617_v44, %s6185_s0 }
 0x5fa   : > { %v1620_v45 = vpop.permute.xlu0 %1619 }
 0x5fb   : > { %v1622_v46 = vadd.f32 %v1620_v45, %v1527_v33 }
 0x5fd   : > { %5781 = vtanh.f32 %v1622_v46 }
 0x607   : > { %v5782_v47 = vpop.eup %5781 }
 0x608   : > { %1626 = vrot.lane.b32.xlu1 %v5782_v47, %s6184_s15 }
 0x67a   : > { %v1627_v50 = vpop.permute.xlu1 %1626 }
 0x67b   : > { %v1629_v52 = vmul.f32 %v1627_v50, %v1624_v49 }
 0x67d   : > { %v6782_v53 = vadd.f32 %v1630_v51, %v1629_v52 }
 0x67f   : > { %1655 = vrot.lane.b32.xlu0 %v6782_v53, %s6184_s15 }
 0x6f1   : > { %v1656_v54 = vpop.permute.xlu0 %1655 }
 0x6f2   : > { %5138 = vmatmul.mubr.msk.f32.vlgmr.msra.gmra.mrb[6].mxu0 %vm1021_vm1, %v1656_v54 }
 0x6f3   : > { %5507 = vmatpush3.bf16.msra.mxu0 %v6652_v16  ;;  %5159 = vmatprep.mubr.msk.f32.mxu0 %vm6182_vm0, %v6183_v1 }
 0x6f4   : > { %5508 = vmatprep.subr.bf16.mxu0 %v6181_v0 }
 0x6f7   : > { %5510 = vmatpush3.bf16.msra.mxu0 %v6691_v34 }
 0x6f8   : > { %5514 = vmatprep.subr.bf16.mxu0 %v6181_v0 }
 0x7c5   : > { %v1725_v55 = vpop.f32.mrb[6].mxu0 }
 0x7c6   : > { %v1729_v56 = vadd.f32 %v6658_v17, %v1725_v55  ;;  %1879 = vrot.lane.b32.xlu1 %v1725_v55, %s6184_s15  ;;  %v5139_v58 = vpop.f32.mrb[7].mxu0 }
 0x7c8   : > { %v1730_v59 = vmax.f32 %v1729_v56, 0.0 }
 0x7ca   : > { %5149 = vmatmul.mubr.msk.f32.vlgmr.msra.gmra.mrb[8].mxu1 %vm1021_vm1, %v1730_v59 }
 0x7cb   : > { %5513 = vmatpush3.bf16.msra.mxu1 %v6668_v23  ;;  %5166 = vmatprep.mubr.msk.f32.mxu1 %vm6182_vm0, %v6183_v1 }
 0x7cc   : > { %5520 = vmatprep.subr.bf16.mxu1 %v6181_v0 }
 0x7ce   : > { %5167 = vmatmul.mubr.msk.f32.vlgmr.msra.gmra.mrb[10].mxu1 %vm1266_vm2, %v1651_v60 }
 0x7cf   : > { %5522 = vmatpush3.bf16.msra.mxu1 %v6729_v7  ;;  %5188 = vmatprep.mubr.msk.f32.mxu1 %vm6182_vm0, %v6183_v1 }
 0x7d0   : > { %5523 = vmatprep.subr.bf16.mxu1 %v6181_v0 }
 0x7d3   : > { %5525 = vmatpush3.bf16.msra.mxu1 %v6736_v14 }
 0x7d4   : > { %5532 = vmatprep.subr.bf16.mxu1 %v6181_v0 }
 0x838   : > { %v1880_v25 = vpop.permute.xlu1 %1879 }
 0x89d   : > { %v1800_v61 = vpop.f32.mrb[8].mxu1 }
 0x89e   : > { %v1801_v62 = vadd.f32 %v6697_v35, %v1800_v61  ;;  %v5150_v63 = vpop.f32.mrb[9].mxu1 }
 0x8a0   : > { %v1804_v3 = vmax.f32 %v1801_v62, 0.0 }
 0x8a1   : > { %v1951_v4 = vpop.f32.mrb[10].mxu1 }
 0x8a2   : > { %5160 = vmatmul.mubr.msk.f32.vlgmr.msra.gmra.mrb[8].mxu0 %vm1021_vm1, %v1804_v3  ;;  %v5168_v6 = vpop.f32.mrb[11].mxu1  ;;  %v1952_v26 = vadd.f32 %v1951_v4, %v1880_v25 }
 0x8a3   : > { %5516 = vmatpush3.bf16.msra.mxu0 %v6674_v28  ;;  %5177 = vmatprep.mubr.msk.f32.mxu0 %vm6182_vm0, %v6183_v1 }
 0x8a4   : > { %5517 = vmatprep.subr.bf16.mxu0 %v6181_v0  ;;  %v1955_v27 = vadd.f32 %v6713_v48, %v1952_v26 }
 0x8a7   : > { %5519 = vmatpush3.bf16.msra.mxu0 %v6679_v31 }
 0x8a8   : > { %5526 = vmatprep.subr.bf16.mxu0 %v6181_v0 }
 0x8aa   : > { %5178 = vmatmul.mubr.msk.f32.vlgmr.msra.gmra.mrb[10].mxu0 %vm1021_vm1, %v6763_v29 }
 0x8ab   : > { %5528 = vmatpush3.bf16.msra.mxu0 %v6726_v2  ;;  %5199 = vmatprep.mubr.msk.f32.mxu0 %vm6182_vm0, %v6183_v1 }
 0x8ac   : > { %5529 = vmatprep.subr.bf16.mxu0 %v6181_v0 }
 0x8af   : > { %5531 = vmatpush3.bf16.msra.mxu0 %v6732_v12 }
 0x8b0   : > { %5538 = vmatprep.subr.bf16.mxu0 %v6181_v0 }
 0x8b2   : > { %5200 = vmatmul.mubr.msk.f32.vlgmr.msra.gmra.mrb[12].mxu0 %vm1021_vm1, %v1656_v54 }
 0x8b3   : > { %5540 = vmatpush3.bf16.msra.mxu0 %v6627_v9  ;;  %5221 = vmatprep.mubr.msk.f32.mxu0 %vm6182_vm0, %v6183_v1 }
 0x8b4   : > { %5541 = vmatprep.subr.bf16.mxu0 %v6181_v0 }
 0x8b7   : > { %5543 = vmatpush3.bf16.msra.mxu0 %v6640_v13 }
 0x8b8   : > { %5550 = vmatprep.subr.bf16.mxu0 %v6181_v0 }
 0x975   : > { %v6830_v8 = vpop.f32.mrb[8].mxu0 }
 0x976   : > { %v5161_v11 = vpop.f32.mrb[9].mxu0 }
 0x97d   : > { %v2022_v15 = vpop.f32.mrb[10].mxu0 }
 0x97e   : > { %v2023_v18 = vadd.f32 %v6707_v42, %v2022_v15  ;;  %v5179_v19 = vpop.f32.mrb[11].mxu0 }
 0x980   : > { %2034 = vrot.lane.b32.xlu0 %v2023_v18, %s6185_s0  ;;  %v2026_v29 = vadd.f32 %v2023_v18, %v1955_v27 }
 0x982   : > { %v4819_v32 = vmul.f32 -1.442695, %v2026_v29 }
 0x984   : > { %5783 = vpow2.f32 %v4819_v32 }
 0x985   : > { %v2193_v20 = vpop.f32.mrb[12].mxu0 }
 0x986   : > { %v5201_v21 = vpop.f32.mrb[13].mxu0  ;;  %v2194_v44 = vadd.f32 %v6759_v24, %v2193_v20 }
 0x98e   : > { %v5784_v33 = vpop.eup %5783 }
 0x98f   : > { %v2030_v36 = vadd.f32 1.0, %v5784_v33 }
 0x991   : > { %5785 = vrcp.f32 %v2030_v36 }
 0x99b   : > { %v5786_v37 = vpop.eup %5785 }
 0x99c   : > { %v2044_v45 = vsub.f32 1.0, %v5786_v37  ;;  %v2050_v47 = vmul.f32 %v5786_v37, %v6751_v22 }
 0x9f2   : > { %v2035_v38 = vpop.permute.xlu0 %2034 }
 0x9f3   : > { %v2037_v39 = vmul.f32 %v5786_v37, %v2035_v38 }
 0x9f5   : > { %2039 = vrot.lane.b32.xlu1 %v2037_v39, %s6185_s0 }
 0xa67   : > { %v2040_v40 = vpop.permute.xlu1 %2039 }
 0xa68   : > { %v2042_v41 = vadd.f32 %v2040_v40, %v1955_v27  ;;  %v2241_v27 = vld [vmem:[#allocation2 + $0x8] sm:$0xf] }
 0xa6a   : > { %5787 = vtanh.f32 %v2042_v41 }
 0xa74   : > { %v5788_v43 = vpop.eup %5787 }
 0xa75   : > { %2046 = vrot.lane.b32.xlu0 %v5788_v43, %s6184_s15 }
 0xa79   : > { %2205 = vrot.lane.b32.xlu0 %v2194_v44, %s6185_s0 }
 0xae7   : > { %v2047_v46 = vpop.permute.xlu0 %2046 }
 0xae8   : > { %v2049_v49 = vmul.f32 %v2047_v46, %v2044_v45 }
 0xaea   : > { %v6840_v50 = vadd.f32 %v2050_v47, %v2049_v49 }
 0xaeb   : > { %v2206_v61 = vpop.permute.xlu0 %2205 }
 0xaec   : > { %2053 = vrot.lane.b32.xlu1 %v6840_v50, %s6184_s15 }
 0xb5e   : > { %v6844_v51 = vpop.permute.xlu1 %2053 }
 0xb5f   : > { %5189 = vmatmul.mubr.msk.f32.vlgmr.msra.gmra.mrb[12].mxu1 %vm1021_vm1, %v6844_v51 }
 0xb60   : > { %5534 = vmatpush3.bf16.msra.mxu1 %v6625_v5  ;;  %5210 = vmatprep.mubr.msk.f32.mxu1 %vm6182_vm0, %v6183_v1 }
 0xb61   : > { %5535 = vmatprep.subr.bf16.mxu1 %v6181_v0 }
 0xb64   : > { %5537 = vmatpush3.bf16.msra.mxu1 %v6630_v10 }
 0xb65   : > { %5544 = vmatprep.subr.bf16.mxu1 %v6181_v0 }
 0xc32   : > { %v2123_v22 = vpop.f32.mrb[12].mxu1 }
 0xc33   : > { %v2124_v52 = vadd.f32 %v6777_v30, %v2123_v22  ;;  %v5190_v54 = vpop.f32.mrb[13].mxu1 }
 0xc35   : > { %v2197_v55 = vadd.f32 %v2194_v44, %v2124_v52 }
 0xc37   : > { %v4822_v56 = vmul.f32 -1.442695, %v2197_v55 }
 0xc39   : > { %5789 = vpow2.f32 %v4822_v56 }
 0xc43   : > { %v5790_v58 = vpop.eup %5789 }
 0xc44   : > { %v2201_v59 = vadd.f32 1.0, %v5790_v58 }
 0xc46   : > { %5791 = vrcp.f32 %v2201_v59 }
 0xc50   : > { %v5792_v60 = vpop.eup %5791 }
 0xc51   : > { %v2208_v62 = vmul.f32 %v5792_v60, %v2206_v61  ;;  %v2215_v6 = vsub.f32 1.0, %v5792_v60  ;;  %v2221_v15 = vmul.f32 %v5792_v60, %v6782_v53 }
 0xc53   : > { %2210 = vrot.lane.b32.xlu1 %v2208_v62, %s6185_s0 }
 0xcc5   : > { %v2211_v63 = vpop.permute.xlu1 %2210 }
 0xcc6   : > { %v2213_v3 = vadd.f32 %v2211_v63, %v2124_v52 }
 0xcc8   : > { %5793 = vtanh.f32 %v2213_v3 }
 0xcd2   : > { %v5794_v4 = vpop.eup %5793 }
 0xcd3   : > { %2217 = vrot.lane.b32.xlu0 %v5794_v4, %s6184_s15 }
 0xd45   : > { %v2218_v11 = vpop.permute.xlu0 %2217 }
 0xd46   : > { %v2220_v18 = vmul.f32 %v2218_v11, %v2215_v6 }
 0xd48   : > { %v6858_v19 = vadd.f32 %v2221_v15, %v2220_v18 }
 0xd4a   : > { %2247 = vrot.lane.b32.xlu1 %v6858_v19, %s6184_s15 }
 0xdbc   : > { %v2248_v20 = vpop.permute.xlu1 %2247 }
 0xdbd   : > { %5211 = vmatmul.mubr.msk.f32.vlgmr.msra.gmra.mrb[14].mxu1 %vm1021_vm1, %v2248_v20 }
 0xdbe   : > { %5546 = vmatpush3.bf16.msra.mxu1 %v6652_v16  ;;  %5232 = vmatprep.mubr.msk.f32.mxu1 %vm6182_vm0, %v6183_v1 }
 0xdbf   : > { %5547 = vmatprep.subr.bf16.mxu1 %v6181_v0 }
 0xdc2   : > { %5549 = vmatpush3.bf16.msra.mxu1 %v6691_v34 }
 0xdc3   : > { %5553 = vmatprep.subr.bf16.mxu1 %v6181_v0 }
 0xe90   : > { %v2317_v53 = vpop.f32.mrb[14].mxu1 }
 0xe91   : > { %v2321_v21 = vadd.f32 %v6658_v17, %v2317_v53  ;;  %2471 = vrot.lane.b32.xlu0 %v2317_v53, %s6184_s15  ;;  %v5212_v25 = vpop.f32.mrb[15].mxu1 }
 0xe93   : > { %v2322_v26 = vmax.f32 %v2321_v21, 0.0 }
 0xe95   : > { %5222 = vmatmul.mubr.msk.f32.vlgmr.msra.gmra.mrb[14].mxu0 %vm1021_vm1, %v2322_v26 }
 0xe96   : > { %5552 = vmatpush3.bf16.msra.mxu0 %v6668_v23  ;;  %5239 = vmatprep.mubr.msk.f32.mxu0 %vm6182_vm0, %v6183_v1 }
 0xe97   : > { %5559 = vmatprep.subr.bf16.mxu0 %v6181_v0 }
 0xe99   : > { %5240 = vmatmul.mubr.msk.f32.vlgmr.msra.gmra.mrb[16].mxu0 %vm1266_vm2, %v2241_v27 }
 0xe9a   : > { %5561 = vmatpush3.bf16.msra.mxu0 %v6729_v7  ;;  %5261 = vmatprep.mubr.msk.f32.mxu0 %vm6182_vm0, %v6183_v1 }
 0xe9b   : > { %5562 = vmatprep.subr.bf16.mxu0 %v6181_v0 }
 0xe9e   : > { %5564 = vmatpush3.bf16.msra.mxu0 %v6736_v14 }
 0xe9f   : > { %5571 = vmatprep.subr.bf16.mxu0 %v6181_v0 }
 0xf03   : > { %v2472_v47 = vpop.permute.xlu0 %2471 }
 0xf68   : > { %v2392_v29 = vpop.f32.mrb[14].mxu0 }
 0xf69   : > { %v2393_v32 = vadd.f32 %v6697_v35, %v2392_v29  ;;  %v5223_v33 = vpop.f32.mrb[15].mxu0 }
 0xf6b   : > { %v2396_v36 = vmax.f32 %v2393_v32, 0.0 }
 0xf6c   : > { %v2543_v37 = vpop.f32.mrb[16].mxu0 }
 0xf6d   : > { %5233 = vmatmul.mubr.msk.f32.vlgmr.msra.gmra.mrb[16].mxu1 %vm1021_vm1, %v2396_v36  ;;  %v5241_v38 = vpop.f32.mrb[17].mxu0  ;;  %v2544_v49 = vadd.f32 %v2543_v37, %v2472_v47 }
 0xf6e   : > { %5555 = vmatpush3.bf16.msra.mxu1 %v6674_v28  ;;  %5250 = vmatprep.mubr.msk.f32.mxu1 %vm6182_vm0, %v6183_v1 }
 0xf6f   : > { %5556 = vmatprep.subr.bf16.mxu1 %v6181_v0 }
 0xf72   : > { %5558 = vmatpush3.bf16.msra.mxu1 %v6679_v31 }
 0xf73   : > { %5565 = vmatprep.subr.bf16.mxu1 %v6181_v0 }
 0xf75   : > { %5251 = vmatmul.mubr.msk.f32.vlgmr.msra.gmra.mrb[18].mxu1 %vm1021_vm1, %v6844_v51  ;;  %v2547_v51 = vadd.f32 %v6713_v48, %v2544_v49 }
 0xf76   : > { %5567 = vmatpush3.bf16.msra.mxu1 %v6726_v2  ;;  %5272 = vmatprep.mubr.msk.f32.mxu1 %vm6182_vm0, %v6183_v1 }
 0xf77   : > { %5568 = vmatprep.subr.bf16.mxu1 %v6181_v0 }
 0xf7a   : > { %5570 = vmatpush3.bf16.msra.mxu1 %v6732_v12 }
 0xf7b   : > { %5577 = vmatprep.subr.bf16.mxu1 %v6181_v0 }
 0xf7d   : > { %5273 = vmatmul.mubr.msk.f32.vlgmr.msra.gmra.mrb[20].mxu1 %vm1021_vm1, %v2248_v20 }
 0xf7e   : > { %5579 = vmatpush3.bf16.msra.mxu1 %v6627_v9  ;;  %5294 = vmatprep.mubr.msk.f32.mxu1 %vm6182_vm0, %v6183_v1 }
 0xf7f   : > { %5580 = vmatprep.subr.bf16.mxu1 %v6181_v0 }
 0xf82   : > { %5582 = vmatpush3.bf16.msra.mxu1 %v6640_v13 }
 0xf83   : > { %5589 = vmatprep.subr.bf16.mxu1 %v6181_v0 }
0x1040   : > { %v6906_v39 = vpop.f32.mrb[16].mxu1 }
0x1041   : > { %v5234_v40 = vpop.f32.mrb[17].mxu1 }
0x1048   : > { %v2614_v41 = vpop.f32.mrb[18].mxu1 }
0x1049   : > { %v2615_v43 = vadd.f32 %v6707_v42, %v2614_v41  ;;  %v5252_v44 = vpop.f32.mrb[19].mxu1 }
0x104b   : > { %2626 = vrot.lane.b32.xlu1 %v2615_v43, %s6185_s0  ;;  %v2618_v22 = vadd.f32 %v2615_v43, %v2547_v51 }
0x104d   : > { %v4830_v52 = vmul.f32 -1.442695, %v2618_v22  ;;  %v2853_v22 = vld [vmem:[#allocation2 + $0xc] sm:$0xf] }
0x104f   : > { %5795 = vpow2.f32 %v4830_v52 }
0x1050   : > { %v2785_v45 = vpop.f32.mrb[20].mxu1 }
0x1051   : > { %v5274_v46 = vpop.f32.mrb[21].mxu1  ;;  %v2786_v63 = vadd.f32 %v6759_v24, %v2785_v45 }
0x1059   : > { %v5796_v54 = vpop.eup %5795 }
0x105a   : > { %v2622_v55 = vadd.f32 1.0, %v5796_v54 }
0x105c   : > { %5797 = vrcp.f32 %v2622_v55 }
0x1066   : > { %v5798_v56 = vpop.eup %5797 }
0x1067   : > { %v2636_v3 = vsub.f32 1.0, %v5798_v56  ;;  %v2642_v6 = vmul.f32 %v5798_v56, %v6840_v50 }
0x10bd   : > { %v2627_v58 = vpop.permute.xlu1 %2626 }
0x10be   : > { %v2629_v59 = vmul.f32 %v5798_v56, %v2627_v58 }
0x10c0   : > { %2631 = vrot.lane.b32.xlu0 %v2629_v59, %s6185_s0 }
0x1132   : > { %v2632_v60 = vpop.permute.xlu0 %2631 }
0x1133   : > { %v2634_v61 = vadd.f32 %v2632_v60, %v2547_v51 }
0x1135   : > { %5799 = vtanh.f32 %v2634_v61 }
0x113f   : > { %v5800_v62 = vpop.eup %5799 }
0x1140   : > { %2638 = vrot.lane.b32.xlu1 %v5800_v62, %s6184_s15 }
0x1144   : > { %2797 = vrot.lane.b32.xlu1 %v2786_v63, %s6185_s0 }
0x11b2   : > { %v2639_v4 = vpop.permute.xlu1 %2638 }
0x11b3   : > { %v2641_v11 = vmul.f32 %v2639_v4, %v2636_v3 }
0x11b5   : > { %v6916_v15 = vadd.f32 %v2642_v6, %v2641_v11 }
0x11b6   : > { %v2798_v32 = vpop.permute.xlu1 %2797 }
0x11b7   : > { %2645 = vrot.lane.b32.xlu0 %v6916_v15, %s6184_s15 }
0x1229   : > { %v6920_v18 = vpop.permute.xlu0 %2645 }
0x122a   : > { %5262 = vmatmul.mubr.msk.f32.vlgmr.msra.gmra.mrb[18].mxu0 %vm1021_vm1, %v6920_v18 }
0x122b   : > { %5573 = vmatpush3.bf16.msra.mxu0 %v6625_v5  ;;  %5283 = vmatprep.mubr.msk.f32.mxu0 %vm6182_vm0, %v6183_v1 }
0x122c   : > { %5574 = vmatprep.subr.bf16.mxu0 %v6181_v0 }
0x122f   : > { %5576 = vmatpush3.bf16.msra.mxu0 %v6630_v10 }
0x1230   : > { %5583 = vmatprep.subr.bf16.mxu0 %v6181_v0 }
0x12fd   : > { %v2715_v50 = vpop.f32.mrb[18].mxu0 }
0x12fe   : > { %v2716_v20 = vadd.f32 %v6777_v30, %v2715_v50  ;;  %v5263_v53 = vpop.f32.mrb[19].mxu0 }
0x1300   : > { %v2789_v21 = vadd.f32 %v2786_v63, %v2716_v20 }
0x1302   : > { %v4833_v25 = vmul.f32 -1.442695, %v2789_v21 }
0x1304   : > { %5801 = vpow2.f32 %v4833_v25 }
0x130e   : > { %v5802_v26 = vpop.eup %5801 }
0x130f   : > { %v2793_v27 = vadd.f32 1.0, %v5802_v26 }
0x1311   : > { %5803 = vrcp.f32 %v2793_v27 }
0x131b   : > { %v5804_v29 = vpop.eup %5803 }
0x131c   : > { %v2800_v33 = vmul.f32 %v5804_v29, %v2798_v32  ;;  %v2807_v40 = vsub.f32 1.0, %v5804_v29  ;;  %v2813_v43 = vmul.f32 %v5804_v29, %v6858_v19 }
0x131e   : > { %2802 = vrot.lane.b32.xlu0 %v2800_v33, %s6185_s0 }
0x1390   : > { %v2803_v36 = vpop.permute.xlu0 %2802 }
0x1391   : > { %v2805_v37 = vadd.f32 %v2803_v36, %v2716_v20 }
0x1393   : > { %5805 = vtanh.f32 %v2805_v37 }
0x139d   : > { %v5806_v38 = vpop.eup %5805 }
0x139e   : > { %2809 = vrot.lane.b32.xlu1 %v5806_v38, %s6184_s15 }
0x1410   : > { %v2810_v41 = vpop.permute.xlu1 %2809 }
0x1411   : > { %v2812_v44 = vmul.f32 %v2810_v41, %v2807_v40 }
0x1413   : > { %v6934_v45 = vadd.f32 %v2813_v43, %v2812_v44 }
0x1415   : > { %2859 = vrot.lane.b32.xlu0 %v6934_v45, %s6184_s15 }
0x1487   : > { %v2860_v46 = vpop.permute.xlu0 %2859 }
0x1488   : > { %5284 = vmatmul.mubr.msk.f32.vlgmr.msra.gmra.mrb[20].mxu0 %vm1021_vm1, %v2860_v46 }
0x1489   : > { %5585 = vmatpush3.bf16.msra.mxu0 %v6652_v16  ;;  %5305 = vmatprep.mubr.msk.f32.mxu0 %vm6182_vm0, %v6183_v1 }
0x148a   : > { %5586 = vmatprep.subr.bf16.mxu0 %v6181_v0 }
0x148d   : > { %5588 = vmatpush3.bf16.msra.mxu0 %v6691_v34 }
0x148e   : > { %5592 = vmatprep.subr.bf16.mxu0 %v6181_v0 }
0x155b   : > { %v2929_v19 = vpop.f32.mrb[20].mxu0 }
0x155c   : > { %v2933_v47 = vadd.f32 %v6658_v17, %v2929_v19  ;;  %3083 = vrot.lane.b32.xlu1 %v2929_v19, %s6184_s15  ;;  %v5285_v49 = vpop.f32.mrb[21].mxu0 }
0x155e   : > { %v2934_v51 = vmax.f32 %v2933_v47, 0.0 }
0x1560   : > { %5295 = vmatmul.mubr.msk.f32.vlgmr.msra.gmra.mrb[22].mxu1 %vm1021_vm1, %v2934_v51 }
0x1561   : > { %5591 = vmatpush3.bf16.msra.mxu1 %v6668_v23  ;;  %5312 = vmatprep.mubr.msk.f32.mxu1 %vm6182_vm0, %v6183_v1 }
0x1562   : > { %5598 = vmatprep.subr.bf16.mxu1 %v6181_v0 }
0x1564   : > { %5313 = vmatmul.mubr.msk.f32.vlgmr.msra.gmra.mrb[24].mxu1 %vm1266_vm2, %v2853_v22 }
0x1565   : > { %5600 = vmatpush3.bf16.msra.mxu1 %v6729_v7  ;;  %5334 = vmatprep.mubr.msk.f32.mxu1 %vm6182_vm0, %v6183_v1 }
0x1566   : > { %5601 = vmatprep.subr.bf16.mxu1 %v6181_v0 }
0x1569   : > { %5603 = vmatpush3.bf16.msra.mxu1 %v6736_v14 }
0x156a   : > { %5610 = vmatprep.subr.bf16.mxu1 %v6181_v0 }
0x15ce   : > { %v3084_v11 = vpop.permute.xlu1 %3083 }
0x1633   : > { %v3004_v52 = vpop.f32.mrb[22].mxu1 }
0x1634   : > { %v3005_v54 = vadd.f32 %v6697_v35, %v3004_v52  ;;  %v5296_v55 = vpop.f32.mrb[23].mxu1 }
0x1636   : > { %v3008_v56 = vmax.f32 %v3005_v54, 0.0 }
0x1637   : > { %v3155_v58 = vpop.f32.mrb[24].mxu1 }
0x1638   : > { %5306 = vmatmul.mubr.msk.f32.vlgmr.msra.gmra.mrb[22].mxu0 %vm1021_vm1, %v3008_v56  ;;  %v5314_v59 = vpop.f32.mrb[25].mxu1 }
0x1639   : > { %5594 = vmatpush3.bf16.msra.mxu0 %v6674_v28  ;;  %5323 = vmatprep.mubr.msk.f32.mxu0 %vm6182_vm0, %v6183_v1 }
0x163a   : > { %5595 = vmatprep.subr.bf16.mxu0 %v6181_v0 }
0x163d   : > { %5597 = vmatpush3.bf16.msra.mxu0 %v6679_v31 }
0x163e   : > { %5604 = vmatprep.subr.bf16.mxu0 %v6181_v0 }
0x1640   : > { %5324 = vmatmul.mubr.msk.f32.vlgmr.msra.gmra.mrb[24].mxu0 %vm1021_vm1, %v6920_v18  ;;  %v3156_v18 = vadd.f32 %v3155_v58, %v3084_v11 }
0x1641   : > { %5606 = vmatpush3.bf16.msra.mxu0 %v6726_v2  ;;  %5345 = vmatprep.mubr.msk.f32.mxu0 %vm6182_vm0, %v6183_v1 }
0x1642   : > { %5607 = vmatprep.subr.bf16.mxu0 %v6181_v0  ;;  %v3159_v50 = vadd.f32 %v6713_v48, %v3156_v18 }
0x1645   : > { %5609 = vmatpush3.bf16.msra.mxu0 %v6732_v12 }
0x1646   : > { %5616 = vmatprep.subr.bf16.mxu0 %v6181_v0 }
0x1648   : > { %5346 = vmatmul.mubr.msk.f32.vlgmr.msra.gmra.mrb[26].mxu0 %vm1021_vm1, %v2860_v46 }
0x1649   : > { %5618 = vmatpush3.bf16.msra.mxu0 %v6627_v9  ;;  %5367 = vmatprep.mubr.msk.f32.mxu0 %vm6182_vm0, %v6183_v1 }
0x164a   : > { %5619 = vmatprep.subr.bf16.mxu0 %v6181_v0 }
0x164d   : > { %5621 = vmatpush3.bf16.msra.mxu0 %v6640_v13 }
0x164e   : > { %5628 = vmatprep.subr.bf16.mxu0 %v6181_v0 }
0x170b   : > { %v6982_v60 = vpop.f32.mrb[22].mxu0 }
0x170c   : > { %v5307_v61 = vpop.f32.mrb[23].mxu0 }
0x1713   : > { %v3226_v62 = vpop.f32.mrb[24].mxu0 }
0x1714   : > { %v3227_v63 = vadd.f32 %v6707_v42, %v3226_v62  ;;  %v5325_v3 = vpop.f32.mrb[25].mxu0 }
0x1716   : > { %3238 = vrot.lane.b32.xlu0 %v3227_v63, %s6185_s0  ;;  %v3230_v20 = vadd.f32 %v3227_v63, %v3159_v50 }
0x1718   : > { %v4841_v53 = vmul.f32 -1.442695, %v3230_v20 }
0x171a   : > { %5807 = vpow2.f32 %v4841_v53  ;;  %v3465_v53 = vld [vmem:[#allocation2 + $0x10] sm:$0xf] }
0x171b   : > { %v3397_v4 = vpop.f32.mrb[26].mxu0 }
0x171c   : > { %v5347_v6 = vpop.f32.mrb[27].mxu0  ;;  %v3398_v37 = vadd.f32 %v6759_v24, %v3397_v4 }
0x1724   : > { %v5808_v21 = vpop.eup %5807 }
0x1725   : > { %v3234_v25 = vadd.f32 1.0, %v5808_v21 }
0x1727   : > { %5809 = vrcp.f32 %v3234_v25 }
0x1731   : > { %v5810_v26 = vpop.eup %5809 }
0x1732   : > { %v3248_v38 = vsub.f32 1.0, %v5810_v26  ;;  %v3254_v41 = vmul.f32 %v5810_v26, %v6916_v15 }
0x1788   : > { %v3239_v27 = vpop.permute.xlu0 %3238 }
0x1789   : > { %v3241_v29 = vmul.f32 %v5810_v26, %v3239_v27 }
0x178b   : > { %3243 = vrot.lane.b32.xlu1 %v3241_v29, %s6185_s0 }
0x17fd   : > { %v3244_v32 = vpop.permute.xlu1 %3243 }
0x17fe   : > { %v3246_v33 = vadd.f32 %v3244_v32, %v3159_v50 }
0x1800   : > { %5811 = vtanh.f32 %v3246_v33 }
0x180a   : > { %v5812_v36 = vpop.eup %5811 }
0x180b   : > { %3250 = vrot.lane.b32.xlu0 %v5812_v36, %s6184_s15 }
0x180f   : > { %3409 = vrot.lane.b32.xlu0 %v3398_v37, %s6185_s0 }
0x187d   : > { %v3251_v40 = vpop.permute.xlu0 %3250 }
0x187e   : > { %v3253_v43 = vmul.f32 %v3251_v40, %v3248_v38 }
0x1880   : > { %v6992_v44 = vadd.f32 %v3254_v41, %v3253_v43 }
0x1881   : > { %v3410_v55 = vpop.permute.xlu0 %3409 }
0x1882   : > { %3257 = vrot.lane.b32.xlu1 %v6992_v44, %s6184_s15 }
0x18f4   : > { %v6996_v46 = vpop.permute.xlu1 %3257 }
0x18f5   : > { %5335 = vmatmul.mubr.msk.f32.vlgmr.msra.gmra.mrb[26].mxu1 %vm1021_vm1, %v6996_v46 }
0x18f6   : > { %5612 = vmatpush3.bf16.msra.mxu1 %v6625_v5  ;;  %5356 = vmatprep.mubr.msk.f32.mxu1 %vm6182_vm0, %v6183_v1 }
0x18f7   : > { %5613 = vmatprep.subr.bf16.mxu1 %v6181_v0 }
0x18fa   : > { %5615 = vmatpush3.bf16.msra.mxu1 %v6630_v10 }
0x18fb   : > { %5622 = vmatprep.subr.bf16.mxu1 %v6181_v0 }
0x19c8   : > { %v3327_v15 = vpop.f32.mrb[26].mxu1 }
0x19c9   : > { %v3328_v19 = vadd.f32 %v6777_v30, %v3327_v15  ;;  %v5336_v47 = vpop.f32.mrb[27].mxu1 }
0x19cb   : > { %v3401_v49 = vadd.f32 %v3398_v37, %v3328_v19 }
0x19cd   : > { %v4844_v51 = vmul.f32 -1.442695, %v3401_v49 }
0x19cf   : > { %5813 = vpow2.f32 %v4844_v51 }
0x19d9   : > { %v5814_v22 = vpop.eup %5813 }
0x19da   : > { %v3405_v52 = vadd.f32 1.0, %v5814_v22 }
0x19dc   : > { %5815 = vrcp.f32 %v3405_v52 }
0x19e6   : > { %v5816_v54 = vpop.eup %5815 }
0x19e7   : > { %v3412_v56 = vmul.f32 %v5816_v54, %v3410_v55  ;;  %v3419_v62 = vsub.f32 1.0, %v5816_v54  ;;  %v3425_v3 = vmul.f32 %v5816_v54, %v6934_v45 }
0x19e9   : > { %3414 = vrot.lane.b32.xlu1 %v3412_v56, %s6185_s0 }
0x1a5b   : > { %v3415_v58 = vpop.permute.xlu1 %3414 }
0x1a5c   : > { %v3417_v59 = vadd.f32 %v3415_v58, %v3328_v19 }
0x1a5e   : > { %5817 = vtanh.f32 %v3417_v59 }
0x1a68   : > { %v5818_v61 = vpop.eup %5817 }
0x1a69   : > { %3421 = vrot.lane.b32.xlu0 %v5818_v61, %s6184_s15 }
0x1adb   : > { %v3422_v63 = vpop.permute.xlu0 %3421 }
0x1adc   : > { %v3424_v4 = vmul.f32 %v3422_v63, %v3419_v62  ;;  %v1020_v63 = vld [vmem:[%s7081_s13] sm:$0xf] }
0x1ade   : > { %v7010_v6 = vadd.f32 %v3425_v3, %v3424_v4  ;;  %v7090_v3 = vld [vmem:[%s7081_s13 + $0x8] sm:$0xf] }
0x1ae0   : > { %3471 = vrot.lane.b32.xlu1 %v7010_v6, %s6184_s15 }
0x1b52   : > { %v3472_v11 = vpop.permute.xlu1 %3471 }
0x1b53   : > { %5357 = vmatmul.mubr.msk.f32.vlgmr.msra.gmra.mrb[28].mxu1 %vm1021_vm1, %v3472_v11 }
0x1b54   : > { %5624 = vmatpush3.bf16.msra.mxu1 %v6652_v16  ;;  %5378 = vmatprep.mubr.msk.f32.mxu1 %vm6182_vm0, %v6183_v1 }
0x1b55   : > { %5625 = vmatprep.subr.bf16.mxu1 %v6181_v0 }
0x1b58   : > { %5627 = vmatpush3.bf16.msra.mxu1 %v6691_v34 }
0x1b59   : > { %5631 = vmatprep.subr.bf16.mxu1 %v6181_v0 }
0x1c26   : > { %v3541_v45 = vpop.f32.mrb[28].mxu1 }
0x1c27   : > { %v3545_v18 = vadd.f32 %v6658_v17, %v3541_v45  ;;  %3695 = vrot.lane.b32.xlu0 %v3541_v45, %s6184_s15  ;;  %v5358_v50 = vpop.f32.mrb[29].mxu1 }
0x1c29   : > { %v3546_v20 = vmax.f32 %v3545_v18, 0.0 }
0x1c2b   : > { %5368 = vmatmul.mubr.msk.f32.vlgmr.msra.gmra.mrb[28].mxu0 %vm1021_vm1, %v3546_v20 }
0x1c2c   : > { %5630 = vmatpush3.bf16.msra.mxu0 %v6668_v23  ;;  %5385 = vmatprep.mubr.msk.f32.mxu0 %vm6182_vm0, %v6183_v1 }
0x1c2d   : > { %5637 = vmatprep.subr.bf16.mxu0 %v6181_v0 }
0x1c2f   : > { %5386 = vmatmul.mubr.msk.f32.vlgmr.msra.gmra.mrb[30].mxu0 %vm1266_vm2, %v3465_v53 }
0x1c30   : > { %5639 = vmatpush3.bf16.msra.mxu0 %v6729_v7  ;;  %5407 = vmatprep.mubr.msk.f32.mxu0 %vm6182_vm0, %v6183_v1 }
0x1c31   : > { %5640 = vmatprep.subr.bf16.mxu0 %v6181_v0 }
0x1c34   : > { %5642 = vmatpush3.bf16.msra.mxu0 %v6736_v14 }
0x1c35   : > { %5649 = vmatprep.subr.bf16.mxu0 %v6181_v0 }
0x1c99   : > { %v3696_v29 = vpop.permute.xlu0 %3695 }
0x1cfe   : > { %v3616_v17 = vpop.f32.mrb[28].mxu0 }
0x1cff   : > { %v3617_v23 = vadd.f32 %v6697_v35, %v3616_v17  ;;  %v5369_v21 = vpop.f32.mrb[29].mxu0  ;;  %v7110_v17 = vld [vmem:[%s966_s1] ss:$0 sm:$0xff]  ;;  %s4379_s1 = scalar_lea.sflag [#allocation4], %s6578_s27 }
0x1d01   : > { %v3620_v25 = vmax.f32 %v3617_v23, 0.0 }
0x1d02   : > { %v3767_v26 = vpop.f32.mrb[30].mxu0 }
0x1d03   : > { %5379 = vmatmul.mubr.msk.f32.vlgmr.msra.gmra.mrb[30].mxu1 %vm1021_vm1, %v3620_v25  ;;  %v5387_v27 = vpop.f32.mrb[31].mxu0 }
0x1d04   : > { %5633 = vmatpush3.bf16.msra.mxu1 %v6674_v28  ;;  %5396 = vmatprep.mubr.msk.f32.mxu1 %vm6182_vm0, %v6183_v1 }
0x1d05   : > { %5634 = vmatprep.subr.bf16.mxu1 %v6181_v0 }
0x1d08   : > { %5636 = vmatpush3.bf16.msra.mxu1 %v6679_v31 }
0x1d09   : > { %5643 = vmatprep.subr.bf16.mxu1 %v6181_v0 }
0x1d0b   : > { %5397 = vmatmul.mubr.msk.f32.vlgmr.msra.gmra.mrb[32].mxu1 %vm1021_vm1, %v6996_v46 }
0x1d0c   : > { %5645 = vmatpush3.bf16.msra.mxu1 %v6726_v2  ;;  %5418 = vmatprep.mubr.msk.f32.mxu1 %vm6182_vm0, %v6183_v1 }
0x1d0d   : > { %5646 = vmatprep.subr.bf16.mxu1 %v6181_v0 }
0x1d10   : > { %5648 = vmatpush3.bf16.msra.mxu1 %v6732_v12 }
0x1d11   : > { %5655 = vmatprep.subr.bf16.mxu1 %v6181_v0 }
0x1d13   : > { %5419 = vmatmul.mubr.msk.f32.vlgmr.msra.gmra.mrb[34].mxu1 %vm1021_vm1, %v3472_v11 }
0x1d14   : > { %5657 = vmatpush3.bf16.msra.mxu1 %v6627_v9  ;;  %5440 = vmatprep.mubr.msk.f32.mxu1 %vm6182_vm0, %v6183_v1  ;;  %v3768_v9 = vadd.f32 %v3767_v26, %v3696_v29  ;;  %v1259_v26 = vadd.f32 %v7110_v17, %v6717_v57  ;;  %v4835_v57 = vld [vmem:[%s7081_s13 + $0xc] sm:$0xf]  ;;  %v4846_v29 = vld [vmem:[%s7081_s13 + $0x10] sm:$0xf] }
0x1d15   : > { %5658 = vmatprep.subr.bf16.mxu1 %v6181_v0 }
0x1d16   : > { %v3771_v32 = vadd.f32 %v6713_v48, %v3768_v9  ;;  %v4857_v9 = vld [vmem:[%s7081_s13 + $0x14] sm:$0xf] }
0x1d18   : > { %5660 = vmatpush3.bf16.msra.mxu1 %v6640_v13 }
0x1dd6   : > { %v7057_v28 = vpop.f32.mrb[30].mxu1 }
0x1dd7   : > { %v5380_v31 = vpop.f32.mrb[31].mxu1 }
0x1dde   : > { %v3838_v35 = vpop.f32.mrb[32].mxu1 }
0x1ddf   : > { %v3839_v2 = vadd.f32 %v6707_v42, %v3838_v35  ;;  %v5398_v7 = vpop.f32.mrb[33].mxu1 }
0x1de1   : > { %3850 = vrot.lane.b32.xlu1 %v3839_v2, %s6185_s0  ;;  %v3842_v33 = vadd.f32 %v3839_v2, %v3771_v32  ;;  %v4813_v2 = vld [vmem:[%s7081_s13 + $0x4] sm:$0xf] }
0x1de3   : > { %v4852_v36 = vmul.f32 -1.442695, %v3842_v33 }
0x1de5   : > { %5819 = vpow2.f32 %v4852_v36  ;;  %v1875_v36 = vadd.f32 %v7110_v17, %v6830_v8 }
0x1de6   : > { %v4009_v12 = vpop.f32.mrb[34].mxu1 }
0x1de7   : > { %v5420_v14 = vpop.f32.mrb[35].mxu1  ;;  %v4010_v15 = vadd.f32 %v6759_v24, %v4009_v12 }
0x1def   : > { %v5820_v37 = vpop.eup %5819 }
0x1df0   : > { %v3846_v13 = vadd.f32 1.0, %v5820_v37  ;;  %v2467_v37 = vadd.f32 %v7110_v17, %v6906_v39 }
0x1df2   : > { %5821 = vrcp.f32 %v3846_v13 }
0x1dfc   : > { %v5822_v38 = vpop.eup %5821 }
0x1dfd   : > { %v3860_v48 = vsub.f32 1.0, %v5822_v38  ;;  %v3866_v47 = vmul.f32 %v5822_v38, %v6992_v44 }
0x1e53   : > { %v3851_v40 = vpop.permute.xlu1 %3850 }
0x1e54   : > { %v3853_v41 = vmul.f32 %v5822_v38, %v3851_v40 }
0x1e56   : > { %3855 = vrot.lane.b32.xlu0 %v3853_v41, %s6185_s0 }
0x1ec8   : > { %v3856_v42 = vpop.permute.xlu0 %3855 }
0x1ec9   : > { %v3858_v43 = vadd.f32 %v3856_v42, %v3771_v32 }
0x1ecb   : > { %5823 = vtanh.f32 %v3858_v43 }
0x1ed5   : > { %v5824_v46 = vpop.eup %5823 }
0x1ed6   : > { %3862 = vrot.lane.b32.xlu1 %v5824_v46, %s6184_s15 }
0x1eda   : > { %4021 = vrot.lane.b32.xlu1 %v4010_v15, %s6185_s0 }
0x1f48   : > { %v3863_v19 = vpop.permute.xlu1 %3862 }
0x1f49   : > { %v3865_v49 = vmul.f32 %v3863_v19, %v3860_v48 }
0x1f4b   : > { %v3867_v51 = vadd.f32 %v3866_v47, %v3865_v49 }
0x1f4c   : > { %v4022_v59 = vpop.permute.xlu1 %4021 }
0x1f4d   : > { %3869 = vrot.lane.b32.xlu0 %v3867_v51, %s6184_s15 }
0x1fbf   : > { %v3870_v22 = vpop.permute.xlu0 %3869 }
0x1fc0   : > { %5408 = vmatmul.mubr.msk.f32.vlgmr.msra.gmra.mrb[32].mxu0 %vm1021_vm1, %v3870_v22 }
0x1fc1   : > { %5651 = vmatpush3.bf16.msra.mxu0 %v6625_v5  ;;  %5429 = vmatprep.mubr.msk.f32.mxu0 %vm6182_vm0, %v6183_v1 }
0x1fc2   : > { %5652 = vmatprep.subr.bf16.mxu0 %v6181_v0 }
0x1fc5   : > { %5654 = vmatpush3.bf16.msra.mxu0 %v6630_v10 }
0x1fc6   : > { %5661 = vmatprep.subr.bf16.mxu0 %v6181_v0 }
0x2093   : > { %v3939_v24 = vpop.f32.mrb[32].mxu0 }
0x2094   : > { %v3940_v44 = vadd.f32 %v6777_v30, %v3939_v24  ;;  %v5409_v52 = vpop.f32.mrb[33].mxu0 }
0x2096   : > { %v4013_v54 = vadd.f32 %v4010_v15, %v3940_v44 }
0x2098   : > { %v4855_v55 = vmul.f32 -1.442695, %v4013_v54 }
0x209a   : > { %5825 = vpow2.f32 %v4855_v55 }
0x20a4   : > { %v5826_v56 = vpop.eup %5825 }
0x20a5   : > { %v4017_v58 = vadd.f32 1.0, %v5826_v56 }
0x20a7   : > { %5827 = vrcp.f32 %v4017_v58 }
0x20b1   : > { %v5828_v5 = vpop.eup %5827 }
0x20b2   : > { %v4024_v61 = vmul.f32 %v5828_v5, %v4022_v59  ;;  %v4031_v53 = vsub.f32 1.0, %v5828_v5  ;;  %v4037_v21 = vmul.f32 %v5828_v5, %v7010_v6 }
0x20b4   : > { %4026 = vrot.lane.b32.xlu0 %v4024_v61, %s6185_s0  ;;  %s943_s0 = scalar_lea.vmem %s7396_s24, %s5667_s22 }
0x20b5   : > { %v7092_v4 = vld [vmem:[%s943_s0 + $0xc] sm:$0xf]  ;;  %v7097_v45 = vld [vmem:[%s943_s0 + $0x10] sm:$0xf]  ;;  %v7101_v50 = vld [vmem:[%s943_s0 + $0x14] sm:$0xf] }
0x20b6   : > { %v3444_v11 = vmul.f32 0.1, %v7092_v4  ;;  %v4056_v18 = vmul.f32 0.1, %v7097_v45  ;;  %v4321_v20 = vmul.f32 0.1, %v7101_v50 }
0x20b7   : > { %v4823_v7 = vld [vmem:[%s943_s0 + $0x8] sm:$0xf] }
0x20b8   : > { %v2832_v14 = vmul.f32 0.1, %v4823_v7 }
0x2126   : > { %v4027_v62 = vpop.permute.xlu0 %4026 }
0x2127   : > { %v4029_v10 = vadd.f32 %v4027_v62, %v3940_v44 }
0x2129   : > { %5829 = vtanh.f32 %v4029_v10 }
0x2133   : > { %v5830_v30 = vpop.eup %5829 }
0x2134   : > { %4033 = vrot.lane.b32.xlu1 %v5830_v30, %s6184_s15 }
0x2138   : > { %1633 = vrot.lane.b32.xlu1 %v1020_v63, %s6186_s26 }
0x213c   : > { %2816 = vrot.lane.b32.xlu1 %v7090_v3, %s6186_s26 }
0x2140   : > { %3446 = vrot.lane.b32.xlu1 %v3444_v11, %s6186_s26 }
0x2144   : > { %4058 = vrot.lane.b32.xlu1 %v4056_v18, %s6186_s26 }
0x2148   : > { %4323 = vrot.lane.b32.xlu1 %v4321_v20, %s6186_s26 }
0x21a6   : > { %v4034_v23 = vpop.permute.xlu1 %4033 }
0x21a7   : > { %v4036_v25 = vmul.f32 %v4034_v23, %v4031_v53 }
0x21a9   : > { %v4038_v27 = vadd.f32 %v4037_v21, %v4036_v25 }
0x21aa   : > { %v1634_v31 = vpop.permute.xlu1 %1633 }
0x21ab   : > { %v1636_v35 = vsub.f32 %v1259_v26, %v1634_v31  ;;  %4081 = vrot.lane.b32.xlu0 %v4038_v27, %s6184_s15 }
0x21ad   : > { %v1637_v12 = vmul.f32 %v1636_v35, %v1636_v35 }
0x21ae   : > { %v2817_v33 = vpop.permute.xlu1 %2816 }
0x21af   : > { %2224 = vrot.lane.b32.xlu0 %v4813_v2, %s6186_s26  ;;  %v1639_v6 = vsel %vm1638_vm3, %v1637_v12, 0.0  ;;  %v2819_v38 = vsub.f32 %v2467_v37, %v2817_v33 }
0x21b0   : > { %1640 = vadd.xlane.f32.xlu1 %v1639_v6 }
0x21b1   : > { %v2820_v43 = vmul.f32 %v2819_v38, %v2819_v38 }
0x21b2   : > { %v3447_v52 = vpop.permute.xlu1 %3446 }
0x21b3   : > { %2834 = vrot.lane.b32.xlu0 %v2832_v14, %s6186_s26  ;;  %v2821_v39 = vsel %vm1638_vm3, %v2820_v43, 0.0  ;;  %v3449_v54 = vadd.f32 %v7092_v4, %v3447_v52 }
0x21b5   : > { %v3450_v58 = vsub.f32 %v3449_v54, %v4835_v57 }
0x21b6   : > { %v4059_v55 = vpop.permute.xlu1 %4058 }
0x21b7   : > { %3428 = vrot.lane.b32.xlu0 %v4835_v57, %s6186_s26  ;;  %v4061_v5 = vadd.f32 %v7097_v45, %v4059_v55  ;;  %v3451_v30 = vmul.f32 %v3450_v58, %v3450_v58 }
0x21b9   : > { %v4062_v61 = vsub.f32 %v4061_v5, %v4846_v29  ;;  %v3452_v18 = vsel %vm1638_vm3, %v3451_v30, 0.0 }
0x21ba   : > { %v4324_v59 = vpop.permute.xlu1 %4323 }
0x21bb   : > { %4040 = vrot.lane.b32.xlu0 %v4846_v29, %s6186_s26  ;;  %v4326_v62 = vadd.f32 %v7101_v50, %v4324_v59  ;;  %v4063_v4 = vmul.f32 %v4062_v61, %v4062_v61  ;;  %v5852_v50 = vld [vmem:[%s784_s16] ss:$0 sm:$0xff]  ;;  %s7175_s16 = sshll.u32 %s6419_s4, 7 }
0x21bc   : > { %s7186_s24 = scalar_lea.hbm %s7399_s28, %s7175_s16  ;;  %s7196_s19 = scalar_lea.hbm %s7400_s6, %s7175_s16 }
0x21bd   : > { %v4327_v11 = vsub.f32 %v4326_v62, %v4857_v9 }
0x21bf   : > { %4305 = vrot.lane.b32.xlu0 %v4857_v9, %s6186_s26  ;;  %v4328_v20 = vmul.f32 %v4327_v11, %v4327_v11 }
0x21c1   : > { %v4329_v45 = vsel %vm1638_vm3, %v4328_v20, 0.0 }
0x221d   : > { %v4082_v32 = vpop.permute.xlu0 %4081 }
0x221e   : > { %5430 = vmatmul.mubr.msk.f32.vlgmr.msra.gmra.mrb[34].mxu0 %vm1021_vm1, %v4082_v32 }
0x221f   : > { %5663 = vmatpush3.bf16.msra.mxu0 %v6652_v16  ;;  %5451 = vmatprep.mubr.msk.f32.mxu0 %vm6182_vm0, %v6183_v1  ;;  %v3079_v1 = vadd.f32 %v7110_v17, %v6982_v60  ;;  %v5851_v60 = vld [vmem:[%s776_s20] ss:$0 sm:$0xff]  ;;  %s7172_s20 = sshll.u32 %s6578_s27, 3 }
0x2220   : > { %5664 = vmatprep.subr.bf16.mxu0 %v6181_v0  ;;  %v3691_v0 = vadd.f32 %v7110_v17, %v7057_v28  ;;  %s931_s3 = scalar_lea.vmem [#allocation14], %s7172_s20  ;;  %s924_s9 = scalar_lea.vmem [#allocation13], %s7172_s20 }
0x2221   : > { %v2225_v13 = vpop.permute.xlu0 %2224  ;;  %s4415_s15 = sshll.u32 %s931_s3, 4  ;;  %s4402_s22 = sshll.u32 %s924_s9, 4  ;;  %s7188_s22 = int_to_ptr.vmem [resolvable:$true] %s4402_s22  ;;  %s7198_s15 = int_to_ptr.vmem [resolvable:$true] %s4415_s15 }
0x2222   : > { %v2227_v40 = vsub.f32 %v1875_v36, %v2225_v13  ;;  %s7343_s18 = scalar_lea.vmem [#allocation16], %s7172_s20  ;;  %s6031_s13 = scalar_lea.vmem %s7188_s22, 128 }
0x2223   : > { %5666 = vmatpush3.bf16.msra.mxu0 %v6691_v34  ;;  %s4428_s29 = sshll.u32 %s7343_s18, 4  ;;  %p6032_p4 = scmp.ne.s32.totalorder %s7188_s22, %s6031_s13  ;;  %s7190_s29 = int_to_ptr.vmem [resolvable:$true] %s4428_s29 }
0x2224   : > { %v2228_v41 = vmul.f32 %v2227_v40, %v2227_v40 }
0x2225   : > { %v2835_v42 = vpop.permute.xlu0 %2834  ;;  %p6033_p7 = pnand %p6032_p4, %p7401_p9 }
0x2226   : > { %v2229_v16 = vsel %vm1638_vm3, %v2228_v41, 0.0  ;;  %v2837_v28 = vadd.f32 %v4823_v7, %v2835_v42 }
0x2227   : > { %2230 = vadd.xlane.f32.xlu0 %v2229_v16  ;;  %p6034_p2 = pneg %p6033_p7 }
0x2228   : > { %v2838_v56 = vsub.f32 %v2837_v28, %v7090_v3  ;;  %v4064_v3 = vsel %vm1638_vm3, %v4063_v4, 0.0 }
0x2229   : > { %v3429_v8 = vpop.permute.xlu0 %3428 }
0x222a   : > { %v3431_v46 = vsub.f32 %v3079_v1, %v3429_v8  ;;  %v2839_v10 = vmul.f32 %v2838_v56, %v2838_v56 }
0x222b   : > { %2822 = vadd.xlane.f32.xlu0 %v2821_v39 }
0x222c   : > { %v3432_v15 = vmul.f32 %v3431_v46, %v3431_v46  ;;  %v2840_v63 = vsel %vm1638_vm3, %v2839_v10, 0.0 }
0x222d   : > { %v4041_v34 = vpop.permute.xlu0 %4040  ;;  %2841 = vadd.xlane.f32.xlu1 %v2840_v63 }
0x222e   : > { %v4043_v48 = vsub.f32 %v3691_v0, %v4041_v34  ;;  %v3433_v19 = vsel %vm1638_vm3, %v3432_v15, 0.0 }
0x222f   : > { %3434 = vadd.xlane.f32.xlu0 %v3433_v19 }
0x2230   : > { %v4044_v47 = vmul.f32 %v4043_v48, %v4043_v48 }
0x2231   : > { %3453 = vadd.xlane.f32.xlu1 %v3452_v18 }
0x2232   : > { %v4045_v49 = vsel %vm1638_vm3, %v4044_v47, 0.0  ;;  %v4306_v47 = vpop.permute.xlu0 %4305 }
0x2233   : > { %4046 = vadd.xlane.f32.xlu0 %v4045_v49 }
0x2235   : > { %4065 = vadd.xlane.f32.xlu1 %v4064_v3 }
0x2239   : > { %4330 = vadd.xlane.f32.xlu1 %v4329_v45 }
0x223d   : > { %v7158_v26 = vpop.xlane.xlu1 %1640 }
0x223e   : > { %vm1644_vm14 = vcmp.eq.f32.partialorder %v7158_v26, inf  ;;  %v1647_v4 = vand.u32 2147483648, %v7158_v26  ;;  %vm1646_vm2 = vcmp.eq.f32.partialorder %v7158_v26, 0.0 }
0x22ba   : > { %v2842_v27 = vpop.xlane.xlu1 %2841 }
0x22bb   : > { %5831 = vrsqrt.f32 %v2842_v27  ;;  %vm2845_vm4 = vcmp.eq.f32.partialorder %v2842_v27, inf  ;;  %v2848_v6 = vand.u32 2147483648, %v2842_v27  ;;  %vm2847_vm5 = vcmp.eq.f32.partialorder %v2842_v27, 0.0 }
0x22be   : > { %v3454_v31 = vpop.xlane.xlu1 %3453 }
0x22bf   : > { %5833 = vrsqrt.f32 %v3454_v31  ;;  %vm3457_vm6 = vcmp.eq.f32.partialorder %v3454_v31, inf  ;;  %v3460_v29 = vand.u32 2147483648, %v3454_v31  ;;  %vm3459_vm7 = vcmp.eq.f32.partialorder %v3454_v31, 0.0 }
0x22c2   : > { %v4066_v35 = vpop.xlane.xlu1 %4065 }
0x22c3   : > { %5835 = vrsqrt.f32 %v4066_v35  ;;  %vm4069_vm8 = vcmp.eq.f32.partialorder %v4066_v35, inf  ;;  %v4072_v13 = vand.u32 2147483648, %v4066_v35  ;;  %vm4071_vm9 = vcmp.eq.f32.partialorder %v4066_v35, 0.0 }
0x22c5   : > { %v5832_v2 = vpop.eup %5831 }
0x22c6   : > { %v2844_v7 = vmul.f32 %v5832_v2, %v2842_v27  ;;  %v4331_v12 = vpop.xlane.xlu1 %4330 }
0x22c7   : > { %5837 = vrsqrt.f32 %v4331_v12  ;;  %vm4334_vm10 = vcmp.eq.f32.partialorder %v4331_v12, inf  ;;  %v4337_v16 = vand.u32 2147483648, %v4331_v12  ;;  %vm4336_vm11 = vcmp.eq.f32.partialorder %v4331_v12, 0.0 }
0x22c8   : > { %v2846_v14 = vsel %vm2845_vm4, %v2842_v27, %v2844_v7 }
0x22c9   : > { %v5834_v57 = vpop.eup %5833  ;;  %v2849_v32 = vsel %vm2847_vm5, %v2848_v6, %v2846_v14 }
0x22ca   : > { %v3456_v9 = vmul.f32 %v5834_v57, %v3454_v31 }
0x22cc   : > { %v3458_v33 = vsel %vm3457_vm6, %v3454_v31, %v3456_v9 }
0x22cd   : > { %v5836_v36 = vpop.eup %5835  ;;  %v3461_v37 = vsel %vm3459_vm7, %v3460_v29, %v3458_v33 }
0x22ce   : > { %v4068_v38 = vmul.f32 %v5836_v36, %v4066_v35  ;;  %v3462_v40 = vadd.f32 %v3461_v37, %v2849_v32 }
0x22d0   : > { %v4070_v41 = vsel %vm4069_vm8, %v4066_v35, %v4068_v38 }
0x22d1   : > { %v5838_v42 = vpop.eup %5837  ;;  %v4073_v43 = vsel %vm4071_vm9, %v4072_v13, %v4070_v41 }
0x22d2   : > { %v4074_v1 = vadd.f32 %v4073_v43, %v3462_v40  ;;  %v4333_v8 = vmul.f32 %v5838_v42, %v4331_v12 }
0x22d4   : > { %v4335_v46 = vsel %vm4334_vm10, %v4331_v12, %v4333_v8 }
0x22d5   : > { %v4338_v39 = vsel %vm4336_vm11, %v4337_v16, %v4335_v46 }
0x22d6   : > { %v4339_v0 = vadd.f32 %v4338_v39, %v4074_v1 }
0x22d8   : > { %v4354_v15 = vsel %vm4341_vm12, %v4339_v0, 0.0 }
0x22d9   : > { %4355 = vadd.xlane.f32.xlu1 %v4354_v15 }
0x22f1   : > { %v4151_v51 = vpop.f32.mrb[34].mxu0 }
0x22f2   : > { %v4155_v22 = vadd.f32 %v5851_v60, %v4151_v51  ;;  %v5431_v24 = vpop.f32.mrb[35].mxu0 }
0x22f4   : > { %v4156_v44 = vmax.f32 %v4155_v22, 0.0  ;;  %v2231_v22 = vpop.xlane.xlu0 %2230 }
0x22f5   : > { %5839 = vrsqrt.f32 %v2231_v22  ;;  %vm2234_vm13 = vcmp.eq.f32.partialorder %v2231_v22, inf  ;;  %v2237_v30 = vand.u32 2147483648, %v2231_v22  ;;  %vm2236_vm0 = vcmp.eq.f32.partialorder %v2231_v22, 0.0 }
0x22f6   : > { %5441 = vmatmul.mubr.msk.f32.vlgmr.msra.gmra.mrb[36].mxu1 %vm1021_vm1, %v4156_v44  ;;  %5841 = vrsqrt.f32 %v7158_v26 }
0x22f8   : > { %v2823_v24 = vpop.xlane.xlu0 %2822 }
0x22f9   : > { %5843 = vrsqrt.f32 %v2823_v24  ;;  %vm2826_vm15 = vcmp.eq.f32.partialorder %v2823_v24, inf  ;;  %v2829_v3 = vand.u32 2147483648, %v2823_v24 }
0x22fc   : > { %v3435_v44 = vpop.xlane.xlu0 %3434 }
0x22fd   : > { %5845 = vrsqrt.f32 %v3435_v44  ;;  %vm3440_vm5 = vcmp.eq.f32.partialorder %v3435_v44, 0.0 }
0x22ff   : > { %v5840_v28 = vpop.eup %5839 }
0x2300   : > { %v4047_v52 = vpop.xlane.xlu0 %4046  ;;  %v5842_v54 = vpop.eup %5841  ;;  %v2233_v55 = vmul.f32 %v5840_v28, %v2231_v22 }
0x2301   : > { %5847 = vrsqrt.f32 %v4047_v52  ;;  %v1643_v58 = vmul.f32 %v5842_v54, %v7158_v26  ;;  %vm4050_vm4 = vcmp.eq.f32.partialorder %v4047_v52, inf  ;;  %v4053_v31 = vand.u32 2147483648, %v4047_v52 }
0x2302   : > { %v2235_v62 = vsel %vm2234_vm13, %v2231_v22, %v2233_v55  ;;  %vm4052_vm6 = vcmp.eq.f32.partialorder %v4047_v52, 0.0 }
0x2303   : > { %v1645_v63 = vsel %vm1644_vm14, %v7158_v26, %v1643_v58  ;;  %v2238_v20 = vsel %vm2236_vm0, %v2237_v30, %v2235_v62 }
0x2366   : > { %v4356_v38 = vpop.xlane.xlu1 %4355 }
0x2367   : > { %v4357_v40 = vrot.slane %v4356_v38, 4 }
0x2369   : > { %v4358_v41 = vadd.f32 %v4357_v40, %v4356_v38 }
0x236b   : > { %v4359_v42 = vrot.slane %v4358_v41, 2 }
0x236d   : > { %v4360_v8 = vadd.f32 %v4359_v42, %v4358_v41 }
0x23c9   : > { %v4226_v53 = vpop.f32.mrb[36].mxu1 }
0x23ca   : > { %v4227_v23 = vadd.f32 %v5852_v50, %v4226_v53  ;;  %v5442_v21 = vpop.f32.mrb[37].mxu1  ;;  %v3441_v53 = vand.u32 2147483648, %v3435_v44  ;;  %v1648_v50 = vsel %vm1646_vm2, %v1647_v4, %v1645_v63 }
0x23cb   : > { %v2239_v21 = vadd.f32 %v2238_v20, %v1648_v50 }
0x23cc   : > { %v4230_v25 = vmax.f32 %v4227_v23, 0.0 }
0x23ce   : > { %5452 = vmatmul.mubr.msk.f32.vlgmr.msra.gmra.mrb[36].mxu0 %vm1021_vm1, %v4230_v25  ;;  %vm3438_vm1 = vcmp.eq.f32.partialorder %v3435_v44, inf }
0x24a1   : > { %v4300_v34 = vpop.f32.mrb[36].mxu0 }
0x24a2   : > { %v4301_v48 = vadd.f32 %v7110_v17, %v4300_v34  ;;  %v5453_v19 = vpop.f32.mrb[37].mxu0  ;;  %v5844_v17 = vpop.eup %5843 }
0x24a3   : > { %v5846_v56 = vpop.eup %5845  ;;  %v2825_v5 = vmul.f32 %v5844_v17, %v2823_v24 }
0x24a4   : > { %v4308_v49 = vsub.f32 %v4301_v48, %v4306_v47  ;;  %v5848_v61 = vpop.eup %5847  ;;  %v3437_v10 = vmul.f32 %v5846_v56, %v3435_v44  ;;  %v4361_v48 = vrot.slane %v4360_v8, 1 }
0x24a5   : > { %v4049_v11 = vmul.f32 %v5848_v61, %v4047_v52  ;;  %v2827_v18 = vsel %vm2826_vm15, %v2823_v24, %v2825_v5 }
0x24a6   : > { %v4309_v51 = vmul.f32 %v4308_v49, %v4308_v49  ;;  %v3439_v45 = vsel %vm3438_vm1, %v3435_v44, %v3437_v10 }
0x24a7   : > { %v4051_v25 = vsel %vm4050_vm4, %v4047_v52, %v4049_v11  ;;  %v3442_v27 = vsel %vm3440_vm5, %v3441_v53, %v3439_v45 }
0x24a8   : > { %v4310_v60 = vsel %vm1638_vm3, %v4309_v51, 0.0  ;;  %vm2828_vm3 = vcmp.eq.f32.partialorder %v2823_v24, 0.0  ;;  %v4054_v7 = vsel %vm4052_vm6, %v4053_v31, %v4051_v25 }
0x24a9   : > { %4311 = vadd.xlane.f32.xlu0 %v4310_v60  ;;  %v2830_v23 = vsel %vm2828_vm3, %v2829_v3, %v2827_v18  ;;  %v4362_v60 = vadd.f32 %v4361_v48, %v4360_v8 }
0x24aa   : > { %v2831_v35 = vadd.f32 %v2830_v23, %v2239_v21  ;;  %v3463_v29 = vadd.f32 %v3442_v27, %v2830_v23 }
0x24ac   : > { %v3443_v12 = vadd.f32 %v3442_v27, %v2831_v35  ;;  %v4075_v33 = vadd.f32 %v4054_v7, %v3463_v29 }
0x24ae   : > { %v4055_v26 = vadd.f32 %v4054_v7, %v3443_v12 }
0x2536   : > { %v4312_v59 = vpop.xlane.xlu0 %4311 }
0x2537   : > { %5849 = vrsqrt.f32 %v4312_v59  ;;  %vm4315_vm7 = vcmp.eq.f32.partialorder %v4312_v59, inf  ;;  %v4318_v14 = vand.u32 2147483648, %v4312_v59  ;;  %vm4317_vm8 = vcmp.eq.f32.partialorder %v4312_v59, 0.0 }
0x2541   : > { %v5850_v2 = vpop.eup %5849 }
0x2542   : > { %v4314_v6 = vmul.f32 %v5850_v2, %v4312_v59 }
0x2544   : > { %v4316_v57 = vsel %vm4315_vm7, %v4312_v59, %v4314_v6 }
0x2545   : > { %v4319_v9 = vsel %vm4317_vm8, %v4318_v14, %v4316_v57 }
0x2546   : > { %v4320_v32 = vadd.f32 %v4319_v9, %v4055_v26  ;;  %v4340_v37 = vadd.f32 %v4319_v9, %v4075_v33 }
0x2548   : > { %v4342_v36 = vsel %vm4341_vm12, %v4320_v32, 0.0  ;;  %v4366_v13 = vsel %vm4341_vm12, %v4340_v37, 0.0 }
0x2549   : > { %4343 = vadd.xlane.f32.xlu0 %v4342_v36 }
0x254d   : > { %4367 = vadd.xlane.f32.xlu0 %v4366_v13 }
0x25d6   : > { %v4344_v43 = vpop.xlane.xlu0 %4343 }
0x25d7   : > { %v4345_v16 = vrot.slane %v4344_v43, 4 }
0x25d9   : > { %v4346_v1 = vadd.f32 %v4345_v16, %v4344_v43 }
0x25da   : > { %v4368_v46 = vpop.xlane.xlu0 %4367 }
0x25db   : > { %v4347_v39 = vrot.slane %v4346_v1, 2  ;;  %v4369_v0 = vrot.slane %v4368_v46, 4 }
0x25dd   : > { %v4370_v15 = vadd.f32 %v4369_v0, %v4368_v46  ;;  %v4348_v34 = vadd.f32 %v4347_v39, %v4346_v1 }
0x25df   : > { %v4371_v19 = vrot.slane %v4370_v15, 2  ;;  %v4349_v47 = vrot.slane %v4348_v34, 1 }
0x25e1   : > { %v4372_v49 = vadd.f32 %v4371_v19, %v4370_v15  ;;  %v4350_v51 = vadd.f32 %v4349_v47, %v4348_v34 }
0x25e3   : > { %5668 = vpush %v4350_v51  ;;  %v4373_v22 = vrot.slane %v4372_v49, 1 }
0x25e4   : > { %5670 = vpush %v4362_v60 }
0x25e5   : > { %v4374_v24 = vadd.f32 %v4373_v22, %v4372_v49 }
0x25e7   : > { %5672 = vpush %v4374_v24 }
0x2614   : > { %s5669_s0 = spop %5668 }
0x2615   : > { %v4352_v44 = vstv %s5669_s0  ;;  %s5671_s4 = spop %5670  ;;  %s6035_s0 = sshll.u32 %s6187_s25, 4  ;;  %s6036_s0 = int_to_ptr.vmem [resolvable:$false] %s6035_s0 }
0x2616   : > { %4353 = vst [vmem:[%s924_s9] sm:$0xff] %v4352_v44  ;;  %v4364_v52 = vstv %s5671_s4  ;;  %s6037_s18 = scalar_lea.vmem %s6036_s0, 256  ;;  %p6038_p0 = scmp.lt.s32.totalorder %s7188_s22, %s6036_s0 }
0x2617   : > { %4365 = vst [vmem:[%s931_s3] sm:$0xff] %v4364_v52  ;;  %p6039_p11 = scmp.lt.s32.totalorder %s6037_s18, %s6031_s13 }
0x2619   : > { %p6040_p13 = por %p6039_p11, %p6038_p0 }
0x261b   : > { %p6041_p12 = pnand %p6040_p13, %p6034_p2 }
0x261d   : > { %6044 = shalt.err (!%p6041_p12)
}
0x261e   : > { %s6045_s27 = scalar_lea.hbm %s7186_s24, 128  ;;  %s6049_s4 = scalar_lea.hbm %s7399_s28, 384 }
0x261f   : > { %p6046_p8 = scmp.ne.s32.totalorder %s7186_s24, %s6045_s27  ;;  %p6050_p1 = scmp.lt.u32.totalorder %s7186_s24, %s7399_s28 }
0x2620   : > { %p6051_p6 = scmp.lt.u32.totalorder %s6049_s4, %s6045_s27  ;;  %p6053_p4 = scmp.lt.u32.totalorder %s6045_s27, %s7186_s24 }
0x2621   : > { %p6047_p10 = pnand %p6046_p8, %p7401_p9 }
0x2622   : > { %p6052_p3 = por %p6051_p6, %p6050_p1 }
0x2623   : > { %p6048_p5 = pneg %p6047_p10 }
0x2624   : > { %p6054_p7 = por %p6053_p4, %p6052_p3 }
0x2626   : > { %p6055_p2 = pnand %p6054_p7, %p6048_p5 }
0x2628   : > { %6058 = shalt.err (!%p6055_p2)
}
0x2629   : > { %5688 = dma.vmem_to_hbm [thread:$0]  (%p7401_p9), %s7188_s22, 128, %s7186_s24, %s4379_s1  }
0x262a   : > { %s7222_s18 = spop %5672  ;;  %s7402_s0 = sld [smem:[#allocation43_spill]] }
0x262b   : > { %v4376_v28 = vstv %s7222_s18  ;;  %s4384_s9 = scalar_lea.sflag [#allocation15], %s6575_s2  ;;  %s6059_s4 = scalar_lea.vmem %s7198_s15, 128 }
0x262c   : > { %p6060_p0 = scmp.ne.s32.totalorder %s7198_s15, %s6059_s4  ;;  %s6188_s26 = smov [#allocation14]  }
0x262d   : > { %s6063_s17 = sshll.u32 %s6188_s26, 4  ;;  %s6064_s17 = int_to_ptr.vmem [resolvable:$false] %s6063_s17 }
0x262e   : > { %p6061_p11 = pnand %p6060_p0, %p7401_p9  ;;  %s6065_s5 = scalar_lea.vmem %s6064_s17, 256 }
0x262f   : > { %p6066_p12 = scmp.lt.s32.totalorder %s7198_s15, %s6064_s17  ;;  %p6067_p8 = scmp.lt.s32.totalorder %s6065_s5, %s6059_s4 }
0x2630   : > { %s7403_s3 = smov %s7402_s0  ;;  %s7228_s27 = scalar_lea.hbm %s7402_s0, %s7175_s16 }
0x2631   : > { %p6062_p13 = pneg %p6061_p11  ;;  %p6068_p10 = por %p6067_p8, %p6066_p12 }
0x2633   : > { %p6069_p5 = pnand %p6068_p10, %p6062_p13 }
0x2635   : > { %6072 = shalt.err (!%p6069_p5)
}
0x2636   : > { %s6073_s16 = scalar_lea.hbm %s7196_s19, 128  ;;  %s6077_s1 = scalar_lea.hbm %s7400_s6, 384 }
0x2637   : > { %p6074_p1 = scmp.ne.s32.totalorder %s7196_s19, %s6073_s16  ;;  %p6078_p4 = scmp.lt.u32.totalorder %s7196_s19, %s7400_s6 }
0x2638   : > { %p6079_p7 = scmp.lt.u32.totalorder %s6077_s1, %s6073_s16  ;;  %p6081_p0 = scmp.lt.u32.totalorder %s6073_s16, %s7196_s19 }
0x2639   : > { %p6075_p6 = pnand %p6074_p1, %p7401_p9 }
0x263a   : > { %p6080_p2 = por %p6079_p7, %p6078_p4 }
0x263b   : > { %p6076_p3 = pneg %p6075_p6 }
0x263c   : > { %p6082_p11 = por %p6081_p0, %p6080_p2 }
0x263e   : > { %p6083_p13 = pnand %p6082_p11, %p6076_p3 }
0x2640   : > { %6086 = shalt.err (!%p6083_p13)
}
0x2641   : > { %5689 = dma.vmem_to_hbm [thread:$0]  (%p7401_p9), %s7198_s15, 128, %s7196_s19, %s4384_s9  }
0x2642   : > { %s7404_s5 = scalar_lea.vmem [#allocation16], %s7172_s20  ;;  %s6087_s25 = scalar_lea.vmem %s7190_s29, 128 }
0x2643   : > { %4377 = vst [vmem:[%s7404_s5] sm:$0xff] %v4376_v28  ;;  %p6088_p12 = scmp.ne.s32.totalorder %s7190_s29, %s6087_s25  ;;  %s6189_s0 = smov [#allocation16]  }
0x2644   : > { %s6091_s4 = sshll.u32 %s6189_s0, 4  ;;  %s6092_s4 = int_to_ptr.vmem [resolvable:$false] %s6091_s4 }
0x2645   : > { %p6089_p8 = pnand %p6088_p12, %p7401_p9  ;;  %s6093_s26 = scalar_lea.vmem %s6092_s4, 256 }
0x2646   : > { %p6094_p5 = scmp.lt.s32.totalorder %s7190_s29, %s6092_s4  ;;  %p6095_p1 = scmp.lt.s32.totalorder %s6093_s26, %s6087_s25 }
0x2647   : > { %p6090_p10 = pneg %p6089_p8 }
0x2648   : > { %p6096_p6 = por %p6095_p1, %p6094_p5 }
0x264a   : > { %p6097_p3 = pnand %p6096_p6, %p6090_p10 }
0x264c   : > { %6100 = shalt.err (!%p6097_p3)
}
0x264d   : > { %s6101_s20 = scalar_lea.hbm %s7228_s27, 128  ;;  %s6105_s17 = scalar_lea.hbm %s7403_s3, 384 }
0x264e   : > { %p6102_p4 = scmp.ne.s32.totalorder %s7228_s27, %s6101_s20  ;;  %p6106_p0 = scmp.lt.u32.totalorder %s7228_s27, %s7403_s3 }
0x264f   : > { %p6107_p11 = scmp.lt.u32.totalorder %s6105_s17, %s6101_s20  ;;  %p6109_p12 = scmp.lt.u32.totalorder %s6101_s20, %s7228_s27 }
0x2650   : > { %p6103_p7 = pnand %p6102_p4, %p7401_p9 }
0x2651   : > { %p6108_p13 = por %p6107_p11, %p6106_p0 }
0x2652   : > { %p6104_p2 = pneg %p6103_p7 }
0x2653   : > { %p6110_p8 = por %p6109_p12, %p6108_p13 }
0x2655   : > { %p6111_p10 = pnand %p6110_p8, %p6104_p2 }
0x2657   : > { %6114 = shalt.err (!%p6111_p10)
}
0x2658   : > { %5690 = dma.vmem_to_hbm [thread:$0]  (%p7401_p9), %s7190_s29, 128, %s7228_s27, %s4384_s9  }
0x2659 PF: > { %s7405_s24 = sld [smem:[#allocation23_spill]]  ;;  %s7406_s1 = sld [smem:[#allocation28_spill]] }
0x265a   : > { %p5727_p5 = scmp.ge.s32.totalorder %s6169_s21, 2 }
0x265f   : > { %s4440_s18 = sand.u32 1, %s7405_s24   ;;  %p7407_p1 = scmp.ne.s32.totalorder %s7406_s1, 0 }
0x2660   : > { %s4441_s13 = scalar_lea.sflag [#allocation4], %s4440_s18 }
0x2661   : > { %p5715_p6 = pnand %p5727_p5, %p7407_p1 }
0x2663   : > { %6148 = dma.done.wait (!%p5715_p6), %s4441_s13, 128  }
0x2664   : > { %6150 = vsyncadd (!%p5715_p6), %s4441_s13, 4294967168  ;;  %s7408_s5 = sadd.s32 4294967294, %s6169_s21  }
0x2665   : > { %s4449_s25 = sand.u32 1, %s7408_s5  }
0x2666   : > { %s4450_s8 = scalar_lea.sflag [#allocation15], %s4449_s25 }
0x2667   : > { %6152 = dma.done.wait (!%p5715_p6), %s4450_s8, 256  }
0x2668   : > { %6154 = vsyncadd (!%p5715_p6), %s4450_s8, 4294967040  ;;  %s7409_s21 = sld [smem:[#allocation25_spill]]  ;;  %s7410_s2 = sld [smem:[#allocation24_spill]] }
0x2669   : > { %s7411_s20 = sld [smem:[#allocation26_spill]]  ;;  %s7412_s0 = smov %s6161_s30 }
0x266e   : > { %p43_p9 = scmp.ge.s32.totalorder %s7409_s21, 5   ;;  %s7413_s30 = smov %s7410_s2 }
0x2670   :  { %45 = sbr.rel (!%p43_p9) target bundleno = 28 (0x1c), region = 264 }
0x2677   :  { %4464 = vsyncpa [#allocation3], 1 }
0x2678   :  { %4466 = vsyncpa [#allocation3 + $0x1], 1 }
0x2679   :  { %4467 = vsyncpa [#allocation6], 1 }
0x267a   :  { %4469 = vsyncpa [#allocation6 + $0x1], 1 }
0x267b   :  { %4470 = vsyncpa [#allocation9], 1 }
0x267c   :  { %4472 = vsyncpa [#allocation9 + $0x1], 1 }
0x267d   :  { %4473 = vsyncpa [#allocation12], 1 }
0x267e   :  { %4475 = vsyncpa [#allocation12 + $0x1], 1 }
0x267f   :  { %4476 = vsyncpa [#allocation4], 1 }
0x2680   :  { %4478 = vsyncpa [#allocation4 + $0x1], 1 }
0x2681   :  { %4479 = vsyncpa [#allocation15], 1 }
0x2682   :  { %4481 = vsyncpa [#allocation15 + $0x1], 1 }

</bundles_post_ra>
